<compile_context>
chip_gen: v6e
topology: v6e:2x2x1
jax: 0.10.0
libtpu: 0.0.40
codegen_flags: <defaults>
</compile_context>

<pallas_src>
import functools

import jax
import jax.numpy as jnp
from jax import lax
from jax.experimental import pallas as pl
from jax.experimental.pallas import tpu as pltpu

ITER_N = 5  # SqrtmLayer(out, 5)


def _attention_block_kernel(x_ref, bn_scale_ref, bn_shift_ref, wdr_ref,
                            wfc_ref, bfc_ref, o_ref, sflat_ref, *, true_m):
    x = x_ref[...]                                   # (Bt, Cin, Mp) f32, residual
    bt, cin, mp = x.shape
    wdr = wdr_ref[...]                               # (Cd, Cin) f32
    cd = wdr.shape[0]

    # ---- conv_for_DR: 1x1 conv == channel matmul.  bf16 MXU inputs, f32 acc.
    w_bf = jnp.broadcast_to(wdr.astype(jnp.bfloat16)[None], (bt, cd, cin))
    z = jnp.einsum('boc,bcm->bom', w_bf, x.astype(jnp.bfloat16),
                   preferred_element_type=jnp.float32)            # (Bt, Cd, Mp)

    # ---- bn_for_DR (eval mode, folded into scale/shift) + ReLU, f32 on the VPU.
    # TODO(synk): training-mode batch statistics are not reproduced here.
    z = z * bn_scale_ref[...][None] + bn_shift_ref[...][None]
    z = jnp.maximum(z, 0.0)
    if mp != true_m:                                 # zero the padded lanes
        lane = lax.broadcasted_iota(jnp.int32, (1, 1, mp), 2)
        z = z * (lane < true_m).astype(jnp.float32)

    # ---- CovpoolLayer: cov = z @ I_hat @ z^T with I_hat = (I - ones/M)/M.
    # Mean-center instead of materializing the (M, M) I_hat matrix.
    inv_m = jnp.float32(1.0 / true_m)
    mean = jnp.sum(z, axis=2, keepdims=True) * inv_m
    p = (z - mean) * inv_m          # padded lanes of z are 0 -> no contribution
    cov = jnp.einsum('bik,bjk->bij', p.astype(jnp.bfloat16),
                     z.astype(jnp.bfloat16),
                     preferred_element_type=jnp.float32)          # (Bt, Cd, Cd)

    # ---- SqrtmLayer: Newton-Schulz (iterN = 5), batched over Bt, kept in f32.
    row = lax.broadcasted_iota(jnp.int32, (cd, cd), 0)
    col = lax.broadcasted_iota(jnp.int32, (cd, cd), 1)
    eye = (row == col).astype(jnp.float32)
    i3 = (3.0 * eye)[None]                                        # (1, Cd, Cd)

    norm_a = jnp.sum(jnp.sum(cov * eye[None], axis=2, keepdims=True),
                     axis=1, keepdims=True)                       # (Bt,1,1) trace
    norm_a = jnp.maximum(norm_a, jnp.float32(1e-12))  # guard all-zero ReLU block
    a = cov * (1.0 / norm_a)                          # one divide, then multiply

    bmm = lambda u, v: jnp.einsum('bij,bjk->bik', u, v,
                                  preferred_element_type=jnp.float32)
    zy = 0.5 * (i3 - a)
    y = bmm(a, zy)
    zz = zy
    for _ in range(1, ITER_N - 1):                    # 3 unrolled iterations
        zy = 0.5 * (i3 - bmm(zz, y))
        y = bmm(y, zy)
        zz = bmm(zy, zz)
    s = 0.5 * bmm(y, i3 - bmm(zz, y)) * jnp.sqrt(norm_a)          # (Bt, Cd, Cd)

    # ---- TriuvecLayer + fc (fused, on the MXU): wfc is the Linear weight
    # scattered into a dense (planes, Cd, Cd) matrix (zero strictly below the
    # diagonal) and flattened row-major to (planes, Cd*Cd) in the wrapper, so
    # Linear(triuvec(s)) == flatten(s) contracted against it.  Flatten s into a
    # VMEM scratch with lane-aligned two-row (128-wide) stores — Mosaic has no
    # cheap register reshape that merges sublanes into lanes.
    if cd % 2 == 0:
        for i in range(0, cd, 2):
            sflat_ref[:, i * cd:(i + 2) * cd] = jnp.concatenate(
                [s[:, i, :], s[:, i + 1, :]], axis=-1)
    else:
        for i in range(cd):
            sflat_ref[:, i * cd:(i + 1) * cd] = s[:, i, :]

    # fc_t[p, b] = sum_k wfc[p, k] * sflat[b, k]  -> (planes, Bt), planes on
    # sublanes so no output transpose is needed before the channel gating.
    fc_t = lax.dot_general(wfc_ref[...], sflat_ref[...],
                           dimension_numbers=(((1,), (1,)), ((), ())),
                           preferred_element_type=jnp.float32)
    fc_t = fc_t + bfc_ref[...]                                    # + (planes, 1)

    # ---- sigmoid (EUP exp + approx reciprocal) + residual channel gating.
    att_t = pl.reciprocal(1.0 + jnp.exp(-fc_t), approx=True)      # (planes, Bt)
    for bi in range(bt):                              # bt is small and static
        o_ref[bi] = x[bi] * att_t[:, bi:bi + 1]       # lane-dense (Mp % 128 == 0)


def _pick_block_b(b, max_bt=8):
    """Largest per-step batch that divides b while keeping >= 2 grid steps when
    possible (keeps both v7x TensorCores busy); capped to bound VMEM."""
    best = 1
    for d in range(1, min(b, max_bt) + 1):
        if b % d == 0 and b // d >= 2:
            best = d
    return best


def attention_block(x, params, block_b=None):
    """x: (B, C, H, W) float32 (NCHW, like the PyTorch module)."""
    b, c, h, w = x.shape
    m = h * w
    mp = ((m + 127) // 128) * 128               # lane-dense spatial extent
    bt = _pick_block_b(b) if block_b is None else block_b
    assert b % bt == 0, "batch must be divisible by the per-step block"

    x2 = x.reshape(b, c, m).astype(jnp.float32)
    if mp != m:
        x2 = jnp.pad(x2, ((0, 0), (0, 0), (0, mp - m)))

    wdr = params["conv_w"]          # (Cd, Cin)
    bn_scale = params["bn_scale"]   # (Cd, 1)
    bn_shift = params["bn_shift"]   # (Cd, 1)
    wfc_full = params["fc_w_full"]  # (planes, Cd, Cd), zero below the diagonal
    bfc = params["fc_b"][:, None]   # (planes, 1)
    cd = wdr.shape[0]
    planes = wfc_full.shape[0]
    assert planes == c, "residual * attention broadcast needs planes == inplanes"
    wfc_flat = wfc_full.reshape(planes, cd * cd)    # row-major, matches kernel

    kernel = functools.partial(_attention_block_kernel, true_m=m)
    out = pl.pallas_call(
        kernel,
        out_shape=jax.ShapeDtypeStruct((b, c, mp), jnp.float32),
        grid_spec=pltpu.PrefetchScalarGridSpec(
            num_scalar_prefetch=0,
            grid=(b // bt,),
            in_specs=[
                pl.BlockSpec((bt, c, mp), lambda i: (i, 0, 0)),        # x
                pl.BlockSpec((cd, 1), lambda i: (0, 0)),               # bn scale
                pl.BlockSpec((cd, 1), lambda i: (0, 0)),               # bn shift
                pl.BlockSpec((cd, c), lambda i: (0, 0)),               # conv w
                pl.BlockSpec((planes, cd * cd), lambda i: (0, 0)),     # fc w (flat)
                pl.BlockSpec((planes, 1), lambda i: (0, 0)),           # fc b
            ],
            out_specs=pl.BlockSpec((bt, c, mp), lambda i: (i, 0, 0)),
            scratch_shapes=[pltpu.VMEM((bt, cd * cd), jnp.float32)],   # s flat
        ),
        # NOTE: blocks here are tiny; when growing Bt / spatial tiles / planes,
        # also set vmem_limit_bytes (scoped default is only 16/32 MiB) and chunk
        # the (planes, Cd*Cd) fc weight so it fits v7x's 64 MiB VMEM.
        compiler_params=pltpu.CompilerParams(
            dimension_semantics=("parallel",)),
    )(x2, bn_scale, bn_shift, wdr, wfc_flat, bfc)
    return out[:, :, :m].reshape(b, c, h, w)


def init_params(key, inplanes, planes, att_dim=64):
    """Deterministic synthetic parameters matching the PyTorch module shapes."""
    keys = jax.random.split(key, 7)
    cd = att_dim
    conv_w = jax.random.normal(keys[0], (cd, inplanes), jnp.float32) / jnp.sqrt(
        jnp.float32(inplanes))
    # BatchNorm2d (eval mode): fold gamma/beta + running stats into scale/shift.
    gamma = 1.0 + 0.1 * jax.random.normal(keys[1], (cd,), jnp.float32)
    beta = 0.1 * jax.random.normal(keys[2], (cd,), jnp.float32)
    run_mean = 0.1 * jax.random.normal(keys[3], (cd,), jnp.float32)
    run_var = 1.0 + 0.1 * jnp.abs(jax.random.normal(keys[4], (cd,), jnp.float32))
    eps = 1e-5
    inv_std = gamma / jnp.sqrt(run_var + eps)
    bn_scale = inv_std[:, None]
    bn_shift = (beta - run_mean * inv_std)[:, None]
    # fc: Linear(cd*(cd+1)/2, planes). Scatter its weights into a dense
    # (planes, cd, cd) matrix (row-major upper triangle, zeros elsewhere).
    tri_len = cd * (cd + 1) // 2
    fc_w = 0.02 * jax.random.normal(keys[5], (planes, tri_len), jnp.float32)
    fc_b = 0.02 * jax.random.normal(keys[6], (planes,), jnp.float32)
    rows, cols = jnp.triu_indices(cd)
    fc_w_full = jnp.zeros((planes, cd, cd), jnp.float32).at[:, rows, cols].set(fc_w)
    return dict(conv_w=conv_w, bn_scale=bn_scale, bn_shift=bn_shift,
                fc_w_full=fc_w_full, fc_b=fc_b)


def reference(x, params):
    """Pure-JAX reference of the PyTorch forward (eval-mode BN)."""
    P = lax.Precision.HIGHEST
    b, c, h, w = x.shape
    m = h * w
    x2 = x.reshape(b, c, m)
    z = jnp.einsum('ok,bkm->bom', params["conv_w"], x2, precision=P)
    z = z * params["bn_scale"][None] + params["bn_shift"][None]
    z = jnp.maximum(z, 0.0)
    cd = z.shape[1]
    i_hat = (jnp.eye(m, dtype=jnp.float32) - 1.0 / m) / m
    cov = jnp.einsum('bcm,mn,bdn->bcd', z, i_hat, z, precision=P)
    eye = jnp.eye(cd, dtype=jnp.float32)
    i3 = 3.0 * eye
    trace = jnp.trace(cov, axis1=1, axis2=2)[:, None, None]
    a = cov / trace
    bmm = lambda u, v: jnp.einsum('bij,bjk->bik', u, v, precision=P)
    zy = 0.5 * (i3 - a)
    y = bmm(a, zy)
    zz = zy
    for _ in range(1, ITER_N - 1):
        zy = 0.5 * (i3 - bmm(zz, y))
        y = bmm(y, zy)
        zz = bmm(zy, zz)
    s = 0.5 * bmm(y, i3 - bmm(zz, y)) * jnp.sqrt(trace)
    fc = jnp.einsum('pij,bij->bp', params["fc_w_full"], s, precision=P)
    fc = fc + params["fc_b"][None, :]
    att = jax.nn.sigmoid(fc)
    return x * att[:, :, None, None]


if __name__ == "__main__":
    key = jax.random.PRNGKey(0)
    B, C, H, W = 4, 16, 8, 8          # inplanes == planes == 16 (SE-style gating)
    ATT_DIM = 64                      # module default att_dim
    kx, kp = jax.random.split(key)
    x = jax.random.normal(kx, (B, C, H, W), jnp.float32)
    params = init_params(kp, inplanes=C, planes=C, att_dim=ATT_DIM)

    out = attention_block(x, params)
    out = jax.block_until_ready(out)
    assert out.shape == (B, C, H, W)

    ref = reference(x, params)
    max_diff = float(jnp.max(jnp.abs(out - ref)))
    assert max_diff < 5e-2, f"max abs diff too large: {max_diff}"
    print("KERNEL_OK")
</pallas_src>

<mosaic_0001>
module attributes {stable_mosaic.version = 11 : i64} {
  func.func @_attention_block_kernel(%arg0: i32, %arg1: memref<2x16x128xf32, #tpu.memory_space<vmem>>, %arg2: memref<64x1xf32, #tpu.memory_space<vmem>>, %arg3: memref<64x1xf32, #tpu.memory_space<vmem>>, %arg4: memref<64x16xf32, #tpu.memory_space<vmem>>, %arg5: memref<16x4096xf32, #tpu.memory_space<vmem>>, %arg6: memref<16x1xf32, #tpu.memory_space<vmem>>, %arg7: memref<2x16x128xf32, #tpu.memory_space<vmem>>, %arg8: memref<2x4096xf32, #tpu.memory_space<vmem>>) attributes {dimension_semantics = [#tpu.dimension_semantics<parallel>], iteration_bounds = array<i64: 2>, scalar_prefetch = 0 : i64, scratch_operands = 1 : i64, tpu.core_type = #tpu.core_type<tc>, window_params = [{transform_indices = @transform_0, window_bounds = array<i64: 2, 16, 128>}, {pipeline_mode = #tpu.pipeline_mode<synchronous>, transform_indices = @transform_1, window_bounds = array<i64: 64, 1>}, {pipeline_mode = #tpu.pipeline_mode<synchronous>, transform_indices = @transform_2, window_bounds = array<i64: 64, 1>}, {pipeline_mode = #tpu.pipeline_mode<synchronous>, transform_indices = @transform_3, window_bounds = array<i64: 64, 16>}, {pipeline_mode = #tpu.pipeline_mode<synchronous>, transform_indices = @transform_4, window_bounds = array<i64: 16, 4096>}, {pipeline_mode = #tpu.pipeline_mode<synchronous>, transform_indices = @transform_5, window_bounds = array<i64: 16, 1>}, {transform_indices = @transform_6, window_bounds = array<i64: 2, 16, 128>}]} {
    %c0 = arith.constant 0 : index
    %c0_0 = arith.constant 0 : index
    %c0_1 = arith.constant 0 : index
    %0 = vector.load %arg1[%c0, %c0_0, %c0_1] : memref<2x16x128xf32, #tpu.memory_space<vmem>>, vector<2x16x128xf32>
    %c0_2 = arith.constant 0 : index
    %c0_3 = arith.constant 0 : index
    %1 = vector.load %arg4[%c0_2, %c0_3] : memref<64x16xf32, #tpu.memory_space<vmem>>, vector<64x16xf32>
    %2 = arith.truncf %1 : vector<64x16xf32> to vector<64x16xbf16>
    %3 = vector.shape_cast %2 : vector<64x16xbf16> to vector<1x64x16xbf16>
    %4 = vector.shape_cast %3 : vector<1x64x16xbf16> to vector<1x64x16xbf16>
    %5 = vector.broadcast %4 : vector<1x64x16xbf16> to vector<2x64x16xbf16>
    %6 = arith.truncf %0 : vector<2x16x128xf32> to vector<2x16x128xbf16>
    "tpu.trace_start"() <{level = 10 : i32, message = "boc,bcm->bom"}> : () -> ()
    %cst = arith.constant dense<0.000000e+00> : vector<2x64x128xf32>
    %7 = tpu.matmul %5, %6, %cst {dimension_numbers = #tpu.dot_dimension_numbers<[2], [1], [1], [2], [0, 0, 0, 1, 1, 2], [0], [0]>} : vector<2x64x16xbf16>, vector<2x16x128xbf16>, vector<2x64x128xf32> -> vector<2x64x128xf32>
    "tpu.trace_stop"() : () -> ()
    %c0_4 = arith.constant 0 : index
    %c0_5 = arith.constant 0 : index
    %8 = vector.load %arg2[%c0_4, %c0_5] : memref<64x1xf32, #tpu.memory_space<vmem>>, vector<64x1xf32>
    %9 = vector.shape_cast %8 : vector<64x1xf32> to vector<1x64x1xf32>
    %10 = vector.broadcast %9 : vector<1x64x1xf32> to vector<2x64x128xf32>
    %11 = arith.mulf %7, %10 : vector<2x64x128xf32>
    %c0_6 = arith.constant 0 : index
    %c0_7 = arith.constant 0 : index
    %12 = vector.load %arg3[%c0_6, %c0_7] : memref<64x1xf32, #tpu.memory_space<vmem>>, vector<64x1xf32>
    %13 = vector.shape_cast %12 : vector<64x1xf32> to vector<1x64x1xf32>
    %14 = vector.broadcast %13 : vector<1x64x1xf32> to vector<2x64x128xf32>
    %15 = arith.addf %11, %14 : vector<2x64x128xf32>
    %cst_8 = arith.constant 0.000000e+00 : f32
    %16 = vector.broadcast %cst_8 : f32 to vector<2x64x128xf32>
    %17 = arith.maximumf %15, %16 : vector<2x64x128xf32>
    %18 = tpu.iota {dimensions = array<i32: 2>} : vector<1x1x128xi32>
    %c64_i32 = arith.constant 64 : i32
    %19 = vector.broadcast %c64_i32 : i32 to vector<1x1x128xi32>
    %20 = arith.cmpi slt, %18, %19 : vector<1x1x128xi32>
    %21 = arith.extui %20 : vector<1x1x128xi1> to vector<1x1x128xi32>
    %22 = arith.sitofp %21 : vector<1x1x128xi32> to vector<1x1x128xf32>
    %23 = vector.broadcast %22 : vector<1x1x128xf32> to vector<2x64x128xf32>
    %24 = arith.mulf %17, %23 : vector<2x64x128xf32>
    %cst_9 = arith.constant dense<0.000000e+00> : vector<2x64xf32>
    %25 = vector.multi_reduction <add>, %24, %cst_9 [2] : vector<2x64x128xf32> to vector<2x64xf32>
    %26 = vector.shape_cast %25 : vector<2x64xf32> to vector<2x64x1xf32>
    %cst_10 = arith.constant 1.562500e-02 : f32
    %27 = vector.broadcast %cst_10 : f32 to vector<2x64x1xf32>
    %28 = arith.mulf %26, %27 : vector<2x64x1xf32>
    %29 = vector.broadcast %28 : vector<2x64x1xf32> to vector<2x64x128xf32>
    %30 = arith.subf %24, %29 : vector<2x64x128xf32>
    %cst_11 = arith.constant 1.562500e-02 : f32
    %31 = vector.broadcast %cst_11 : f32 to vector<2x64x128xf32>
    %32 = arith.mulf %30, %31 : vector<2x64x128xf32>
    %33 = arith.truncf %32 : vector<2x64x128xf32> to vector<2x64x128xbf16>
    %34 = arith.truncf %24 : vector<2x64x128xf32> to vector<2x64x128xbf16>
    "tpu.trace_start"() <{level = 10 : i32, message = "bik,bjk->bij"}> : () -> ()
    %cst_12 = arith.constant dense<0.000000e+00> : vector<2x64x64xf32>
    %35 = tpu.matmul %33, %34, %cst_12 {dimension_numbers = #tpu.dot_dimension_numbers<[2], [2], [1], [1], [0, 0, 0, 1, 1, 1], [0], [0]>} : vector<2x64x128xbf16>, vector<2x64x128xbf16>, vector<2x64x64xf32> -> vector<2x64x64xf32>
    "tpu.trace_stop"() : () -> ()
    %36 = tpu.iota {dimensions = array<i32: 0>} : vector<64x64xi32>
    %37 = tpu.iota {dimensions = array<i32: 1>} : vector<64x64xi32>
    %38 = arith.cmpi eq, %36, %37 : vector<64x64xi32>
    %39 = arith.extui %38 : vector<64x64xi1> to vector<64x64xi32>
    %40 = arith.sitofp %39 : vector<64x64xi32> to vector<64x64xf32>
    %cst_13 = arith.constant 3.000000e+00 : f32
    %41 = vector.broadcast %cst_13 : f32 to vector<64x64xf32>
    %42 = arith.mulf %41, %40 : vector<64x64xf32>
    %43 = vector.shape_cast %42 : vector<64x64xf32> to vector<1x64x64xf32>
    %44 = vector.shape_cast %40 : vector<64x64xf32> to vector<1x64x64xf32>
    %45 = vector.broadcast %44 : vector<1x64x64xf32> to vector<2x64x64xf32>
    %46 = arith.mulf %35, %45 : vector<2x64x64xf32>
    %cst_14 = arith.constant dense<0.000000e+00> : vector<2x64xf32>
    %47 = vector.multi_reduction <add>, %46, %cst_14 [2] : vector<2x64x64xf32> to vector<2x64xf32>
    %48 = vector.shape_cast %47 : vector<2x64xf32> to vector<2x64x1xf32>
    %cst_15 = arith.constant dense<0.000000e+00> : vector<2x1xf32>
    %49 = vector.multi_reduction <add>, %48, %cst_15 [1] : vector<2x64x1xf32> to vector<2x1xf32>
    %50 = vector.shape_cast %49 : vector<2x1xf32> to vector<2x1x1xf32>
    %cst_16 = arith.constant 9.99999996E-13 : f32
    %51 = vector.broadcast %cst_16 : f32 to vector<2x1x1xf32>
    %52 = arith.maximumf %50, %51 : vector<2x1x1xf32>
    %cst_17 = arith.constant 1.000000e+00 : f32
    %53 = vector.broadcast %cst_17 : f32 to vector<2x1x1xf32>
    %54 = arith.divf %53, %52 : vector<2x1x1xf32>
    %55 = vector.broadcast %54 : vector<2x1x1xf32> to vector<2x64x64xf32>
    %56 = arith.mulf %35, %55 : vector<2x64x64xf32>
    %57 = vector.broadcast %43 : vector<1x64x64xf32> to vector<2x64x64xf32>
    %58 = arith.subf %57, %56 : vector<2x64x64xf32>
    %cst_18 = arith.constant 5.000000e-01 : f32
    %59 = vector.broadcast %cst_18 : f32 to vector<2x64x64xf32>
    %60 = arith.mulf %59, %58 : vector<2x64x64xf32>
    "tpu.trace_start"() <{level = 10 : i32, message = "bij,bjk->bik"}> : () -> ()
    %cst_19 = arith.constant dense<0.000000e+00> : vector<2x64x64xf32>
    %61 = tpu.matmul %56, %60, %cst_19 {dimension_numbers = #tpu.dot_dimension_numbers<[2], [1], [1], [2], [0, 0, 0, 1, 1, 2], [0], [0]>} : vector<2x64x64xf32>, vector<2x64x64xf32>, vector<2x64x64xf32> -> vector<2x64x64xf32>
    %cst_20 = arith.constant dense<0.000000e+00> : vector<2x64x64xf32>
    %62 = tpu.matmul %60, %61, %cst_20 {dimension_numbers = #tpu.dot_dimension_numbers<[2], [1], [1], [2], [0, 0, 0, 1, 1, 2], [0], [0]>} : vector<2x64x64xf32>, vector<2x64x64xf32>, vector<2x64x64xf32> -> vector<2x64x64xf32>
    "tpu.trace_stop"() : () -> ()
    %63 = vector.broadcast %43 : vector<1x64x64xf32> to vector<2x64x64xf32>
    %64 = arith.subf %63, %62 : vector<2x64x64xf32>
    %cst_21 = arith.constant 5.000000e-01 : f32
    %65 = vector.broadcast %cst_21 : f32 to vector<2x64x64xf32>
    %66 = arith.mulf %65, %64 : vector<2x64x64xf32>
    "tpu.trace_start"() <{level = 10 : i32, message = "bij,bjk->bik"}> : () -> ()
    %cst_22 = arith.constant dense<0.000000e+00> : vector<2x64x64xf32>
    %67 = tpu.matmul %61, %66, %cst_22 {dimension_numbers = #tpu.dot_dimension_numbers<[2], [1], [1], [2], [0, 0, 0, 1, 1, 2], [0], [0]>} : vector<2x64x64xf32>, vector<2x64x64xf32>, vector<2x64x64xf32> -> vector<2x64x64xf32>
    %cst_23 = arith.constant dense<0.000000e+00> : vector<2x64x64xf32>
    %68 = tpu.matmul %66, %60, %cst_23 {dimension_numbers = #tpu.dot_dimension_numbers<[2], [1], [1], [2], [0, 0, 0, 1, 1, 2], [0], [0]>} : vector<2x64x64xf32>, vector<2x64x64xf32>, vector<2x64x64xf32> -> vector<2x64x64xf32>
    %cst_24 = arith.constant dense<0.000000e+00> : vector<2x64x64xf32>
    %69 = tpu.matmul %68, %67, %cst_24 {dimension_numbers = #tpu.dot_dimension_numbers<[2], [1], [1], [2], [0, 0, 0, 1, 1, 2], [0], [0]>} : vector<2x64x64xf32>, vector<2x64x64xf32>, vector<2x64x64xf32> -> vector<2x64x64xf32>
    "tpu.trace_stop"() : () -> ()
    %70 = vector.broadcast %43 : vector<1x64x64xf32> to vector<2x64x64xf32>
    %71 = arith.subf %70, %69 : vector<2x64x64xf32>
    %cst_25 = arith.constant 5.000000e-01 : f32
    %72 = vector.broadcast %cst_25 : f32 to vector<2x64x64xf32>
    %73 = arith.mulf %72, %71 : vector<2x64x64xf32>
    "tpu.trace_start"() <{level = 10 : i32, message = "bij,bjk->bik"}> : () -> ()
    %cst_26 = arith.constant dense<0.000000e+00> : vector<2x64x64xf32>
    %74 = tpu.matmul %67, %73, %cst_26 {dimension_numbers = #tpu.dot_dimension_numbers<[2], [1], [1], [2], [0, 0, 0, 1, 1, 2], [0], [0]>} : vector<2x64x64xf32>, vector<2x64x64xf32>, vector<2x64x64xf32> -> vector<2x64x64xf32>
    %cst_27 = arith.constant dense<0.000000e+00> : vector<2x64x64xf32>
    %75 = tpu.matmul %73, %68, %cst_27 {dimension_numbers = #tpu.dot_dimension_numbers<[2], [1], [1], [2], [0, 0, 0, 1, 1, 2], [0], [0]>} : vector<2x64x64xf32>, vector<2x64x64xf32>, vector<2x64x64xf32> -> vector<2x64x64xf32>
    %cst_28 = arith.constant dense<0.000000e+00> : vector<2x64x64xf32>
    %76 = tpu.matmul %75, %74, %cst_28 {dimension_numbers = #tpu.dot_dimension_numbers<[2], [1], [1], [2], [0, 0, 0, 1, 1, 2], [0], [0]>} : vector<2x64x64xf32>, vector<2x64x64xf32>, vector<2x64x64xf32> -> vector<2x64x64xf32>
    "tpu.trace_stop"() : () -> ()
    %77 = vector.broadcast %43 : vector<1x64x64xf32> to vector<2x64x64xf32>
    %78 = arith.subf %77, %76 : vector<2x64x64xf32>
    %cst_29 = arith.constant 5.000000e-01 : f32
    %79 = vector.broadcast %cst_29 : f32 to vector<2x64x64xf32>
    %80 = arith.mulf %79, %78 : vector<2x64x64xf32>
    "tpu.trace_start"() <{level = 10 : i32, message = "bij,bjk->bik"}> : () -> ()
    %cst_30 = arith.constant dense<0.000000e+00> : vector<2x64x64xf32>
    %81 = tpu.matmul %74, %80, %cst_30 {dimension_numbers = #tpu.dot_dimension_numbers<[2], [1], [1], [2], [0, 0, 0, 1, 1, 2], [0], [0]>} : vector<2x64x64xf32>, vector<2x64x64xf32>, vector<2x64x64xf32> -> vector<2x64x64xf32>
    %cst_31 = arith.constant dense<0.000000e+00> : vector<2x64x64xf32>
    %82 = tpu.matmul %80, %75, %cst_31 {dimension_numbers = #tpu.dot_dimension_numbers<[2], [1], [1], [2], [0, 0, 0, 1, 1, 2], [0], [0]>} : vector<2x64x64xf32>, vector<2x64x64xf32>, vector<2x64x64xf32> -> vector<2x64x64xf32>
    %cst_32 = arith.constant dense<0.000000e+00> : vector<2x64x64xf32>
    %83 = tpu.matmul %82, %81, %cst_32 {dimension_numbers = #tpu.dot_dimension_numbers<[2], [1], [1], [2], [0, 0, 0, 1, 1, 2], [0], [0]>} : vector<2x64x64xf32>, vector<2x64x64xf32>, vector<2x64x64xf32> -> vector<2x64x64xf32>
    "tpu.trace_stop"() : () -> ()
    %84 = vector.broadcast %43 : vector<1x64x64xf32> to vector<2x64x64xf32>
    %85 = arith.subf %84, %83 : vector<2x64x64xf32>
    "tpu.trace_start"() <{level = 10 : i32, message = "bij,bjk->bik"}> : () -> ()
    %cst_33 = arith.constant dense<0.000000e+00> : vector<2x64x64xf32>
    %86 = tpu.matmul %81, %85, %cst_33 {dimension_numbers = #tpu.dot_dimension_numbers<[2], [1], [1], [2], [0, 0, 0, 1, 1, 2], [0], [0]>} : vector<2x64x64xf32>, vector<2x64x64xf32>, vector<2x64x64xf32> -> vector<2x64x64xf32>
    "tpu.trace_stop"() : () -> ()
    %cst_34 = arith.constant 5.000000e-01 : f32
    %87 = vector.broadcast %cst_34 : f32 to vector<2x64x64xf32>
    %88 = arith.mulf %87, %86 : vector<2x64x64xf32>
    %89 = math.sqrt %52 : vector<2x1x1xf32>
    %90 = vector.broadcast %89 : vector<2x1x1xf32> to vector<2x64x64xf32>
    %91 = arith.mulf %88, %90 : vector<2x64x64xf32>
    %92 = vector.extract_strided_slice %91 {offsets = [0, 0, 0], sizes = [2, 1, 64], strides = [1, 1, 1]} : vector<2x64x64xf32> to vector<2x1x64xf32>
    %93 = vector.shape_cast %92 : vector<2x1x64xf32> to vector<2x64xf32>
    %94 = vector.extract_strided_slice %91 {offsets = [0, 1, 0], sizes = [2, 1, 64], strides = [1, 1, 1]} : vector<2x64x64xf32> to vector<2x1x64xf32>
    %95 = vector.shape_cast %94 : vector<2x1x64xf32> to vector<2x64xf32>
    %96 = tpu.concatenate %93, %95 in 1 : vector<2x64xf32>, vector<2x64xf32> -> vector<2x128xf32>
    %c0_35 = arith.constant 0 : index
    %c0_36 = arith.constant 0 : index
    %97 = vector.load %arg8[%c0_35, %c0_36] : memref<2x4096xf32, #tpu.memory_space<vmem>>, vector<2x128xf32>
    tpu.vector_store %arg8[%c0_35, %c0_36], %96 {strides = array<i32>} : memref<2x4096xf32, #tpu.memory_space<vmem>>, vector<2x128xf32>,
    %98 = vector.extract_strided_slice %91 {offsets = [0, 2, 0], sizes = [2, 1, 64], strides = [1, 1, 1]} : vector<2x64x64xf32> to vector<2x1x64xf32>
    %99 = vector.shape_cast %98 : vector<2x1x64xf32> to vector<2x64xf32>
    %100 = vector.extract_strided_slice %91 {offsets = [0, 3, 0], sizes = [2, 1, 64], strides = [1, 1, 1]} : vector<2x64x64xf32> to vector<2x1x64xf32>
    %101 = vector.shape_cast %100 : vector<2x1x64xf32> to vector<2x64xf32>
    %102 = tpu.concatenate %99, %101 in 1 : vector<2x64xf32>, vector<2x64xf32> -> vector<2x128xf32>
    %c0_37 = arith.constant 0 : index
    %c128 = arith.constant 128 : index
    %103 = vector.load %arg8[%c0_37, %c128] : memref<2x4096xf32, #tpu.memory_space<vmem>>, vector<2x128xf32>
    tpu.vector_store %arg8[%c0_37, %c128], %102 {strides = array<i32>} : memref<2x4096xf32, #tpu.memory_space<vmem>>, vector<2x128xf32>,
    %104 = vector.extract_strided_slice %91 {offsets = [0, 4, 0], sizes = [2, 1, 64], strides = [1, 1, 1]} : vector<2x64x64xf32> to vector<2x1x64xf32>
    %105 = vector.shape_cast %104 : vector<2x1x64xf32> to vector<2x64xf32>
    %106 = vector.extract_strided_slice %91 {offsets = [0, 5, 0], sizes = [2, 1, 64], strides = [1, 1, 1]} : vector<2x64x64xf32> to vector<2x1x64xf32>
    %107 = vector.shape_cast %106 : vector<2x1x64xf32> to vector<2x64xf32>
    %108 = tpu.concatenate %105, %107 in 1 : vector<2x64xf32>, vector<2x64xf32> -> vector<2x128xf32>
    %c0_38 = arith.constant 0 : index
    %c256 = arith.constant 256 : index
    %109 = vector.load %arg8[%c0_38, %c256] : memref<2x4096xf32, #tpu.memory_space<vmem>>, vector<2x128xf32>
    tpu.vector_store %arg8[%c0_38, %c256], %108 {strides = array<i32>} : memref<2x4096xf32, #tpu.memory_space<vmem>>, vector<2x128xf32>,
    %110 = vector.extract_strided_slice %91 {offsets = [0, 6, 0], sizes = [2, 1, 64], strides = [1, 1, 1]} : vector<2x64x64xf32> to vector<2x1x64xf32>
    %111 = vector.shape_cast %110 : vector<2x1x64xf32> to vector<2x64xf32>
    %112 = vector.extract_strided_slice %91 {offsets = [0, 7, 0], sizes = [2, 1, 64], strides = [1, 1, 1]} : vector<2x64x64xf32> to vector<2x1x64xf32>
    %113 = vector.shape_cast %112 : vector<2x1x64xf32> to vector<2x64xf32>
    %114 = tpu.concatenate %111, %113 in 1 : vector<2x64xf32>, vector<2x64xf32> -> vector<2x128xf32>
    %c0_39 = arith.constant 0 : index
    %c384 = arith.constant 384 : index
    %115 = vector.load %arg8[%c0_39, %c384] : memref<2x4096xf32, #tpu.memory_space<vmem>>, vector<2x128xf32>
    tpu.vector_store %arg8[%c0_39, %c384], %114 {strides = array<i32>} : memref<2x4096xf32, #tpu.memory_space<vmem>>, vector<2x128xf32>,
    %116 = vector.extract_strided_slice %91 {offsets = [0, 8, 0], sizes = [2, 1, 64], strides = [1, 1, 1]} : vector<2x64x64xf32> to vector<2x1x64xf32>
    %117 = vector.shape_cast %116 : vector<2x1x64xf32> to vector<2x64xf32>
    %118 = vector.extract_strided_slice %91 {offsets = [0, 9, 0], sizes = [2, 1, 64], strides = [1, 1, 1]} : vector<2x64x64xf32> to vector<2x1x64xf32>
    %119 = vector.shape_cast %118 : vector<2x1x64xf32> to vector<2x64xf32>
    %120 = tpu.concatenate %117, %119 in 1 : vector<2x64xf32>, vector<2x64xf32> -> vector<2x128xf32>
    %c0_40 = arith.constant 0 : index
    %c512 = arith.constant 512 : index
    %121 = vector.load %arg8[%c0_40, %c512] : memref<2x4096xf32, #tpu.memory_space<vmem>>, vector<2x128xf32>
    tpu.vector_store %arg8[%c0_40, %c512], %120 {strides = array<i32>} : memref<2x4096xf32, #tpu.memory_space<vmem>>, vector<2x128xf32>,
    %122 = vector.extract_strided_slice %91 {offsets = [0, 10, 0], sizes = [2, 1, 64], strides = [1, 1, 1]} : vector<2x64x64xf32> to vector<2x1x64xf32>
    %123 = vector.shape_cast %122 : vector<2x1x64xf32> to vector<2x64xf32>
    %124 = vector.extract_strided_slice %91 {offsets = [0, 11, 0], sizes = [2, 1, 64], strides = [1, 1, 1]} : vector<2x64x64xf32> to vector<2x1x64xf32>
    %125 = vector.shape_cast %124 : vector<2x1x64xf32> to vector<2x64xf32>
    %126 = tpu.concatenate %123, %125 in 1 : vector<2x64xf32>, vector<2x64xf32> -> vector<2x128xf32>
    %c0_41 = arith.constant 0 : index
    %c640 = arith.constant 640 : index
    %127 = vector.load %arg8[%c0_41, %c640] : memref<2x4096xf32, #tpu.memory_space<vmem>>, vector<2x128xf32>
    tpu.vector_store %arg8[%c0_41, %c640], %126 {strides = array<i32>} : memref<2x4096xf32, #tpu.memory_space<vmem>>, vector<2x128xf32>,
    %128 = vector.extract_strided_slice %91 {offsets = [0, 12, 0], sizes = [2, 1, 64], strides = [1, 1, 1]} : vector<2x64x64xf32> to vector<2x1x64xf32>
    %129 = vector.shape_cast %128 : vector<2x1x64xf32> to vector<2x64xf32>
    %130 = vector.extract_strided_slice %91 {offsets = [0, 13, 0], sizes = [2, 1, 64], strides = [1, 1, 1]} : vector<2x64x64xf32> to vector<2x1x64xf32>
    %131 = vector.shape_cast %130 : vector<2x1x64xf32> to vector<2x64xf32>
    %132 = tpu.concatenate %129, %131 in 1 : vector<2x64xf32>, vector<2x64xf32> -> vector<2x128xf32>
    %c0_42 = arith.constant 0 : index
    %c768 = arith.constant 768 : index
    %133 = vector.load %arg8[%c0_42, %c768] : memref<2x4096xf32, #tpu.memory_space<vmem>>, vector<2x128xf32>
    tpu.vector_store %arg8[%c0_42, %c768], %132 {strides = array<i32>} : memref<2x4096xf32, #tpu.memory_space<vmem>>, vector<2x128xf32>,
    %134 = vector.extract_strided_slice %91 {offsets = [0, 14, 0], sizes = [2, 1, 64], strides = [1, 1, 1]} : vector<2x64x64xf32> to vector<2x1x64xf32>
    %135 = vector.shape_cast %134 : vector<2x1x64xf32> to vector<2x64xf32>
    %136 = vector.extract_strided_slice %91 {offsets = [0, 15, 0], sizes = [2, 1, 64], strides = [1, 1, 1]} : vector<2x64x64xf32> to vector<2x1x64xf32>
    %137 = vector.shape_cast %136 : vector<2x1x64xf32> to vector<2x64xf32>
    %138 = tpu.concatenate %135, %137 in 1 : vector<2x64xf32>, vector<2x64xf32> -> vector<2x128xf32>
    %c0_43 = arith.constant 0 : index
    %c896 = arith.constant 896 : index
    %139 = vector.load %arg8[%c0_43, %c896] : memref<2x4096xf32, #tpu.memory_space<vmem>>, vector<2x128xf32>
    tpu.vector_store %arg8[%c0_43, %c896], %138 {strides = array<i32>} : memref<2x4096xf32, #tpu.memory_space<vmem>>, vector<2x128xf32>,
    %140 = vector.extract_strided_slice %91 {offsets = [0, 16, 0], sizes = [2, 1, 64], strides = [1, 1, 1]} : vector<2x64x64xf32> to vector<2x1x64xf32>
    %141 = vector.shape_cast %140 : vector<2x1x64xf32> to vector<2x64xf32>
    %142 = vector.extract_strided_slice %91 {offsets = [0, 17, 0], sizes = [2, 1, 64], strides = [1, 1, 1]} : vector<2x64x64xf32> to vector<2x1x64xf32>
    %143 = vector.shape_cast %142 : vector<2x1x64xf32> to vector<2x64xf32>
    %144 = tpu.concatenate %141, %143 in 1 : vector<2x64xf32>, vector<2x64xf32> -> vector<2x128xf32>
    %c0_44 = arith.constant 0 : index
    %c1024 = arith.constant 1024 : index
    %145 = vector.load %arg8[%c0_44, %c1024] : memref<2x4096xf32, #tpu.memory_space<vmem>>, vector<2x128xf32>
    tpu.vector_store %arg8[%c0_44, %c1024], %144 {strides = array<i32>} : memref<2x4096xf32, #tpu.memory_space<vmem>>, vector<2x128xf32>,
    %146 = vector.extract_strided_slice %91 {offsets = [0, 18, 0], sizes = [2, 1, 64], strides = [1, 1, 1]} : vector<2x64x64xf32> to vector<2x1x64xf32>
    %147 = vector.shape_cast %146 : vector<2x1x64xf32> to vector<2x64xf32>
    %148 = vector.extract_strided_slice %91 {offsets = [0, 19, 0], sizes = [2, 1, 64], strides = [1, 1, 1]} : vector<2x64x64xf32> to vector<2x1x64xf32>
    %149 = vector.shape_cast %148 : vector<2x1x64xf32> to vector<2x64xf32>
    %150 = tpu.concatenate %147, %149 in 1 : vector<2x64xf32>, vector<2x64xf32> -> vector<2x128xf32>
    %c0_45 = arith.constant 0 : index
    %c1152 = arith.constant 1152 : index
    %151 = vector.load %arg8[%c0_45, %c1152] : memref<2x4096xf32, #tpu.memory_space<vmem>>, vector<2x128xf32>
    tpu.vector_store %arg8[%c0_45, %c1152], %150 {strides = array<i32>} : memref<2x4096xf32, #tpu.memory_space<vmem>>, vector<2x128xf32>,
    %152 = vector.extract_strided_slice %91 {offsets = [0, 20, 0], sizes = [2, 1, 64], strides = [1, 1, 1]} : vector<2x64x64xf32> to vector<2x1x64xf32>
    %153 = vector.shape_cast %152 : vector<2x1x64xf32> to vector<2x64xf32>
    %154 = vector.extract_strided_slice %91 {offsets = [0, 21, 0], sizes = [2, 1, 64], strides = [1, 1, 1]} : vector<2x64x64xf32> to vector<2x1x64xf32>
    %155 = vector.shape_cast %154 : vector<2x1x64xf32> to vector<2x64xf32>
    %156 = tpu.concatenate %153, %155 in 1 : vector<2x64xf32>, vector<2x64xf32> -> vector<2x128xf32>
    %c0_46 = arith.constant 0 : index
    %c1280 = arith.constant 1280 : index
    %157 = vector.load %arg8[%c0_46, %c1280] : memref<2x4096xf32, #tpu.memory_space<vmem>>, vector<2x128xf32>
    tpu.vector_store %arg8[%c0_46, %c1280], %156 {strides = array<i32>} : memref<2x4096xf32, #tpu.memory_space<vmem>>, vector<2x128xf32>,
    %158 = vector.extract_strided_slice %91 {offsets = [0, 22, 0], sizes = [2, 1, 64], strides = [1, 1, 1]} : vector<2x64x64xf32> to vector<2x1x64xf32>
    %159 = vector.shape_cast %158 : vector<2x1x64xf32> to vector<2x64xf32>
    %160 = vector.extract_strided_slice %91 {offsets = [0, 23, 0], sizes = [2, 1, 64], strides = [1, 1, 1]} : vector<2x64x64xf32> to vector<2x1x64xf32>
    %161 = vector.shape_cast %160 : vector<2x1x64xf32> to vector<2x64xf32>
    %162 = tpu.concatenate %159, %161 in 1 : vector<2x64xf32>, vector<2x64xf32> -> vector<2x128xf32>
    %c0_47 = arith.constant 0 : index
    %c1408 = arith.constant 1408 : index
    %163 = vector.load %arg8[%c0_47, %c1408] : memref<2x4096xf32, #tpu.memory_space<vmem>>, vector<2x128xf32>
    tpu.vector_store %arg8[%c0_47, %c1408], %162 {strides = array<i32>} : memref<2x4096xf32, #tpu.memory_space<vmem>>, vector<2x128xf32>,
    %164 = vector.extract_strided_slice %91 {offsets = [0, 24, 0], sizes = [2, 1, 64], strides = [1, 1, 1]} : vector<2x64x64xf32> to vector<2x1x64xf32>
    %165 = vector.shape_cast %164 : vector<2x1x64xf32> to vector<2x64xf32>
    %166 = vector.extract_strided_slice %91 {offsets = [0, 25, 0], sizes = [2, 1, 64], strides = [1, 1, 1]} : vector<2x64x64xf32> to vector<2x1x64xf32>
    %167 = vector.shape_cast %166 : vector<2x1x64xf32> to vector<2x64xf32>
    %168 = tpu.concatenate %165, %167 in 1 : vector<2x64xf32>, vector<2x64xf32> -> vector<2x128xf32>
    %c0_48 = arith.constant 0 : index
    %c1536 = arith.constant 1536 : index
    %169 = vector.load %arg8[%c0_48, %c1536] : memref<2x4096xf32, #tpu.memory_space<vmem>>, vector<2x128xf32>
    tpu.vector_store %arg8[%c0_48, %c1536], %168 {strides = array<i32>} : memref<2x4096xf32, #tpu.memory_space<vmem>>, vector<2x128xf32>,
    %170 = vector.extract_strided_slice %91 {offsets = [0, 26, 0], sizes = [2, 1, 64], strides = [1, 1, 1]} : vector<2x64x64xf32> to vector<2x1x64xf32>
    %171 = vector.shape_cast %170 : vector<2x1x64xf32> to vector<2x64xf32>
    %172 = vector.extract_strided_slice %91 {offsets = [0, 27, 0], sizes = [2, 1, 64], strides = [1, 1, 1]} : vector<2x64x64xf32> to vector<2x1x64xf32>
    %173 = vector.shape_cast %172 : vector<2x1x64xf32> to vector<2x64xf32>
    %174 = tpu.concatenate %171, %173 in 1 : vector<2x64xf32>, vector<2x64xf32> -> vector<2x128xf32>
    %c0_49 = arith.constant 0 : index
    %c1664 = arith.constant 1664 : index
    %175 = vector.load %arg8[%c0_49, %c1664] : memref<2x4096xf32, #tpu.memory_space<vmem>>, vector<2x128xf32>
    tpu.vector_store %arg8[%c0_49, %c1664], %174 {strides = array<i32>} : memref<2x4096xf32, #tpu.memory_space<vmem>>, vector<2x128xf32>,
    %176 = vector.extract_strided_slice %91 {offsets = [0, 28, 0], sizes = [2, 1, 64], strides = [1, 1, 1]} : vector<2x64x64xf32> to vector<2x1x64xf32>
    %177 = vector.shape_cast %176 : vector<2x1x64xf32> to vector<2x64xf32>
    %178 = vector.extract_strided_slice %91 {offsets = [0, 29, 0], sizes = [2, 1, 64], strides = [1, 1, 1]} : vector<2x64x64xf32> to vector<2x1x64xf32>
    %179 = vector.shape_cast %178 : vector<2x1x64xf32> to vector<2x64xf32>
    %180 = tpu.concatenate %177, %179 in 1 : vector<2x64xf32>, vector<2x64xf32> -> vector<2x128xf32>
    %c0_50 = arith.constant 0 : index
    %c1792 = arith.constant 1792 : index
    %181 = vector.load %arg8[%c0_50, %c1792] : memref<2x4096xf32, #tpu.memory_space<vmem>>, vector<2x128xf32>
    tpu.vector_store %arg8[%c0_50, %c1792], %180 {strides = array<i32>} : memref<2x4096xf32, #tpu.memory_space<vmem>>, vector<2x128xf32>,
    %182 = vector.extract_strided_slice %91 {offsets = [0, 30, 0], sizes = [2, 1, 64], strides = [1, 1, 1]} : vector<2x64x64xf32> to vector<2x1x64xf32>
    %183 = vector.shape_cast %182 : vector<2x1x64xf32> to vector<2x64xf32>
    %184 = vector.extract_strided_slice %91 {offsets = [0, 31, 0], sizes = [2, 1, 64], strides = [1, 1, 1]} : vector<2x64x64xf32> to vector<2x1x64xf32>
    %185 = vector.shape_cast %184 : vector<2x1x64xf32> to vector<2x64xf32>
    %186 = tpu.concatenate %183, %185 in 1 : vector<2x64xf32>, vector<2x64xf32> -> vector<2x128xf32>
    %c0_51 = arith.constant 0 : index
    %c1920 = arith.constant 1920 : index
    %187 = vector.load %arg8[%c0_51, %c1920] : memref<2x4096xf32, #tpu.memory_space<vmem>>, vector<2x128xf32>
    tpu.vector_store %arg8[%c0_51, %c1920], %186 {strides = array<i32>} : memref<2x4096xf32, #tpu.memory_space<vmem>>, vector<2x128xf32>,
    %188 = vector.extract_strided_slice %91 {offsets = [0, 32, 0], sizes = [2, 1, 64], strides = [1, 1, 1]} : vector<2x64x64xf32> to vector<2x1x64xf32>
    %189 = vector.shape_cast %188 : vector<2x1x64xf32> to vector<2x64xf32>
    %190 = vector.extract_strided_slice %91 {offsets = [0, 33, 0], sizes = [2, 1, 64], strides = [1, 1, 1]} : vector<2x64x64xf32> to vector<2x1x64xf32>
    %191 = vector.shape_cast %190 : vector<2x1x64xf32> to vector<2x64xf32>
    %192 = tpu.concatenate %189, %191 in 1 : vector<2x64xf32>, vector<2x64xf32> -> vector<2x128xf32>
    %c0_52 = arith.constant 0 : index
    %c2048 = arith.constant 2048 : index
    %193 = vector.load %arg8[%c0_52, %c2048] : memref<2x4096xf32, #tpu.memory_space<vmem>>, vector<2x128xf32>
    tpu.vector_store %arg8[%c0_52, %c2048], %192 {strides = array<i32>} : memref<2x4096xf32, #tpu.memory_space<vmem>>, vector<2x128xf32>,
    %194 = vector.extract_strided_slice %91 {offsets = [0, 34, 0], sizes = [2, 1, 64], strides = [1, 1, 1]} : vector<2x64x64xf32> to vector<2x1x64xf32>
    %195 = vector.shape_cast %194 : vector<2x1x64xf32> to vector<2x64xf32>
    %196 = vector.extract_strided_slice %91 {offsets = [0, 35, 0], sizes = [2, 1, 64], strides = [1, 1, 1]} : vector<2x64x64xf32> to vector<2x1x64xf32>
    %197 = vector.shape_cast %196 : vector<2x1x64xf32> to vector<2x64xf32>
    %198 = tpu.concatenate %195, %197 in 1 : vector<2x64xf32>, vector<2x64xf32> -> vector<2x128xf32>
    %c0_53 = arith.constant 0 : index
    %c2176 = arith.constant 2176 : index
    %199 = vector.load %arg8[%c0_53, %c2176] : memref<2x4096xf32, #tpu.memory_space<vmem>>, vector<2x128xf32>
    tpu.vector_store %arg8[%c0_53, %c2176], %198 {strides = array<i32>} : memref<2x4096xf32, #tpu.memory_space<vmem>>, vector<2x128xf32>,
    %200 = vector.extract_strided_slice %91 {offsets = [0, 36, 0], sizes = [2, 1, 64], strides = [1, 1, 1]} : vector<2x64x64xf32> to vector<2x1x64xf32>
    %201 = vector.shape_cast %200 : vector<2x1x64xf32> to vector<2x64xf32>
    %202 = vector.extract_strided_slice %91 {offsets = [0, 37, 0], sizes = [2, 1, 64], strides = [1, 1, 1]} : vector<2x64x64xf32> to vector<2x1x64xf32>
    %203 = vector.shape_cast %202 : vector<2x1x64xf32> to vector<2x64xf32>
    %204 = tpu.concatenate %201, %203 in 1 : vector<2x64xf32>, vector<2x64xf32> -> vector<2x128xf32>
    %c0_54 = arith.constant 0 : index
    %c2304 = arith.constant 2304 : index
    %205 = vector.load %arg8[%c0_54, %c2304] : memref<2x4096xf32, #tpu.memory_space<vmem>>, vector<2x128xf32>
    tpu.vector_store %arg8[%c0_54, %c2304], %204 {strides = array<i32>} : memref<2x4096xf32, #tpu.memory_space<vmem>>, vector<2x128xf32>,
    %206 = vector.extract_strided_slice %91 {offsets = [0, 38, 0], sizes = [2, 1, 64], strides = [1, 1, 1]} : vector<2x64x64xf32> to vector<2x1x64xf32>
    %207 = vector.shape_cast %206 : vector<2x1x64xf32> to vector<2x64xf32>
    %208 = vector.extract_strided_slice %91 {offsets = [0, 39, 0], sizes = [2, 1, 64], strides = [1, 1, 1]} : vector<2x64x64xf32> to vector<2x1x64xf32>
    %209 = vector.shape_cast %208 : vector<2x1x64xf32> to vector<2x64xf32>
    %210 = tpu.concatenate %207, %209 in 1 : vector<2x64xf32>, vector<2x64xf32> -> vector<2x128xf32>
    %c0_55 = arith.constant 0 : index
    %c2432 = arith.constant 2432 : index
    %211 = vector.load %arg8[%c0_55, %c2432] : memref<2x4096xf32, #tpu.memory_space<vmem>>, vector<2x128xf32>
    tpu.vector_store %arg8[%c0_55, %c2432], %210 {strides = array<i32>} : memref<2x4096xf32, #tpu.memory_space<vmem>>, vector<2x128xf32>,
    %212 = vector.extract_strided_slice %91 {offsets = [0, 40, 0], sizes = [2, 1, 64], strides = [1, 1, 1]} : vector<2x64x64xf32> to vector<2x1x64xf32>
    %213 = vector.shape_cast %212 : vector<2x1x64xf32> to vector<2x64xf32>
    %214 = vector.extract_strided_slice %91 {offsets = [0, 41, 0], sizes = [2, 1, 64], strides = [1, 1, 1]} : vector<2x64x64xf32> to vector<2x1x64xf32>
    %215 = vector.shape_cast %214 : vector<2x1x64xf32> to vector<2x64xf32>
    %216 = tpu.concatenate %213, %215 in 1 : vector<2x64xf32>, vector<2x64xf32> -> vector<2x128xf32>
    %c0_56 = arith.constant 0 : index
    %c2560 = arith.constant 2560 : index
    %217 = vector.load %arg8[%c0_56, %c2560] : memref<2x4096xf32, #tpu.memory_space<vmem>>, vector<2x128xf32>
    tpu.vector_store %arg8[%c0_56, %c2560], %216 {strides = array<i32>} : memref<2x4096xf32, #tpu.memory_space<vmem>>, vector<2x128xf32>,
    %218 = vector.extract_strided_slice %91 {offsets = [0, 42, 0], sizes = [2, 1, 64], strides = [1, 1, 1]} : vector<2x64x64xf32> to vector<2x1x64xf32>
    %219 = vector.shape_cast %218 : vector<2x1x64xf32> to vector<2x64xf32>
    %220 = vector.extract_strided_slice %91 {offsets = [0, 43, 0], sizes = [2, 1, 64], strides = [1, 1, 1]} : vector<2x64x64xf32> to vector<2x1x64xf32>
    %221 = vector.shape_cast %220 : vector<2x1x64xf32> to vector<2x64xf32>
    %222 = tpu.concatenate %219, %221 in 1 : vector<2x64xf32>, vector<2x64xf32> -> vector<2x128xf32>
    %c0_57 = arith.constant 0 : index
    %c2688 = arith.constant 2688 : index
    %223 = vector.load %arg8[%c0_57, %c2688] : memref<2x4096xf32, #tpu.memory_space<vmem>>, vector<2x128xf32>
    tpu.vector_store %arg8[%c0_57, %c2688], %222 {strides = array<i32>} : memref<2x4096xf32, #tpu.memory_space<vmem>>, vector<2x128xf32>,
    %224 = vector.extract_strided_slice %91 {offsets = [0, 44, 0], sizes = [2, 1, 64], strides = [1, 1, 1]} : vector<2x64x64xf32> to vector<2x1x64xf32>
    %225 = vector.shape_cast %224 : vector<2x1x64xf32> to vector<2x64xf32>
    %226 = vector.extract_strided_slice %91 {offsets = [0, 45, 0], sizes = [2, 1, 64], strides = [1, 1, 1]} : vector<2x64x64xf32> to vector<2x1x64xf32>
    %227 = vector.shape_cast %226 : vector<2x1x64xf32> to vector<2x64xf32>
    %228 = tpu.concatenate %225, %227 in 1 : vector<2x64xf32>, vector<2x64xf32> -> vector<2x128xf32>
    %c0_58 = arith.constant 0 : index
    %c2816 = arith.constant 2816 : index
    %229 = vector.load %arg8[%c0_58, %c2816] : memref<2x4096xf32, #tpu.memory_space<vmem>>, vector<2x128xf32>
    tpu.vector_store %arg8[%c0_58, %c2816], %228 {strides = array<i32>} : memref<2x4096xf32, #tpu.memory_space<vmem>>, vector<2x128xf32>,
    %230 = vector.extract_strided_slice %91 {offsets = [0, 46, 0], sizes = [2, 1, 64], strides = [1, 1, 1]} : vector<2x64x64xf32> to vector<2x1x64xf32>
    %231 = vector.shape_cast %230 : vector<2x1x64xf32> to vector<2x64xf32>
    %232 = vector.extract_strided_slice %91 {offsets = [0, 47, 0], sizes = [2, 1, 64], strides = [1, 1, 1]} : vector<2x64x64xf32> to vector<2x1x64xf32>
    %233 = vector.shape_cast %232 : vector<2x1x64xf32> to vector<2x64xf32>
    %234 = tpu.concatenate %231, %233 in 1 : vector<2x64xf32>, vector<2x64xf32> -> vector<2x128xf32>
    %c0_59 = arith.constant 0 : index
    %c2944 = arith.constant 2944 : index
    %235 = vector.load %arg8[%c0_59, %c2944] : memref<2x4096xf32, #tpu.memory_space<vmem>>, vector<2x128xf32>
    tpu.vector_store %arg8[%c0_59, %c2944], %234 {strides = array<i32>} : memref<2x4096xf32, #tpu.memory_space<vmem>>, vector<2x128xf32>,
    %236 = vector.extract_strided_slice %91 {offsets = [0, 48, 0], sizes = [2, 1, 64], strides = [1, 1, 1]} : vector<2x64x64xf32> to vector<2x1x64xf32>
    %237 = vector.shape_cast %236 : vector<2x1x64xf32> to vector<2x64xf32>
    %238 = vector.extract_strided_slice %91 {offsets = [0, 49, 0], sizes = [2, 1, 64], strides = [1, 1, 1]} : vector<2x64x64xf32> to vector<2x1x64xf32>
    %239 = vector.shape_cast %238 : vector<2x1x64xf32> to vector<2x64xf32>
    %240 = tpu.concatenate %237, %239 in 1 : vector<2x64xf32>, vector<2x64xf32> -> vector<2x128xf32>
    %c0_60 = arith.constant 0 : index
    %c3072 = arith.constant 3072 : index
    %241 = vector.load %arg8[%c0_60, %c3072] : memref<2x4096xf32, #tpu.memory_space<vmem>>, vector<2x128xf32>
    tpu.vector_store %arg8[%c0_60, %c3072], %240 {strides = array<i32>} : memref<2x4096xf32, #tpu.memory_space<vmem>>, vector<2x128xf32>,
    %242 = vector.extract_strided_slice %91 {offsets = [0, 50, 0], sizes = [2, 1, 64], strides = [1, 1, 1]} : vector<2x64x64xf32> to vector<2x1x64xf32>
    %243 = vector.shape_cast %242 : vector<2x1x64xf32> to vector<2x64xf32>
    %244 = vector.extract_strided_slice %91 {offsets = [0, 51, 0], sizes = [2, 1, 64], strides = [1, 1, 1]} : vector<2x64x64xf32> to vector<2x1x64xf32>
    %245 = vector.shape_cast %244 : vector<2x1x64xf32> to vector<2x64xf32>
    %246 = tpu.concatenate %243, %245 in 1 : vector<2x64xf32>, vector<2x64xf32> -> vector<2x128xf32>
    %c0_61 = arith.constant 0 : index
    %c3200 = arith.constant 3200 : index
    %247 = vector.load %arg8[%c0_61, %c3200] : memref<2x4096xf32, #tpu.memory_space<vmem>>, vector<2x128xf32>
    tpu.vector_store %arg8[%c0_61, %c3200], %246 {strides = array<i32>} : memref<2x4096xf32, #tpu.memory_space<vmem>>, vector<2x128xf32>,
    %248 = vector.extract_strided_slice %91 {offsets = [0, 52, 0], sizes = [2, 1, 64], strides = [1, 1, 1]} : vector<2x64x64xf32> to vector<2x1x64xf32>
    %249 = vector.shape_cast %248 : vector<2x1x64xf32> to vector<2x64xf32>
    %250 = vector.extract_strided_slice %91 {offsets = [0, 53, 0], sizes = [2, 1, 64], strides = [1, 1, 1]} : vector<2x64x64xf32> to vector<2x1x64xf32>
    %251 = vector.shape_cast %250 : vector<2x1x64xf32> to vector<2x64xf32>
    %252 = tpu.concatenate %249, %251 in 1 : vector<2x64xf32>, vector<2x64xf32> -> vector<2x128xf32>
    %c0_62 = arith.constant 0 : index
    %c3328 = arith.constant 3328 : index
    %253 = vector.load %arg8[%c0_62, %c3328] : memref<2x4096xf32, #tpu.memory_space<vmem>>, vector<2x128xf32>
    tpu.vector_store %arg8[%c0_62, %c3328], %252 {strides = array<i32>} : memref<2x4096xf32, #tpu.memory_space<vmem>>, vector<2x128xf32>,
    %254 = vector.extract_strided_slice %91 {offsets = [0, 54, 0], sizes = [2, 1, 64], strides = [1, 1, 1]} : vector<2x64x64xf32> to vector<2x1x64xf32>
    %255 = vector.shape_cast %254 : vector<2x1x64xf32> to vector<2x64xf32>
    %256 = vector.extract_strided_slice %91 {offsets = [0, 55, 0], sizes = [2, 1, 64], strides = [1, 1, 1]} : vector<2x64x64xf32> to vector<2x1x64xf32>
    %257 = vector.shape_cast %256 : vector<2x1x64xf32> to vector<2x64xf32>
    %258 = tpu.concatenate %255, %257 in 1 : vector<2x64xf32>, vector<2x64xf32> -> vector<2x128xf32>
    %c0_63 = arith.constant 0 : index
    %c3456 = arith.constant 3456 : index
    %259 = vector.load %arg8[%c0_63, %c3456] : memref<2x4096xf32, #tpu.memory_space<vmem>>, vector<2x128xf32>
    tpu.vector_store %arg8[%c0_63, %c3456], %258 {strides = array<i32>} : memref<2x4096xf32, #tpu.memory_space<vmem>>, vector<2x128xf32>,
    %260 = vector.extract_strided_slice %91 {offsets = [0, 56, 0], sizes = [2, 1, 64], strides = [1, 1, 1]} : vector<2x64x64xf32> to vector<2x1x64xf32>
    %261 = vector.shape_cast %260 : vector<2x1x64xf32> to vector<2x64xf32>
    %262 = vector.extract_strided_slice %91 {offsets = [0, 57, 0], sizes = [2, 1, 64], strides = [1, 1, 1]} : vector<2x64x64xf32> to vector<2x1x64xf32>
    %263 = vector.shape_cast %262 : vector<2x1x64xf32> to vector<2x64xf32>
    %264 = tpu.concatenate %261, %263 in 1 : vector<2x64xf32>, vector<2x64xf32> -> vector<2x128xf32>
    %c0_64 = arith.constant 0 : index
    %c3584 = arith.constant 3584 : index
    %265 = vector.load %arg8[%c0_64, %c3584] : memref<2x4096xf32, #tpu.memory_space<vmem>>, vector<2x128xf32>
    tpu.vector_store %arg8[%c0_64, %c3584], %264 {strides = array<i32>} : memref<2x4096xf32, #tpu.memory_space<vmem>>, vector<2x128xf32>,
    %266 = vector.extract_strided_slice %91 {offsets = [0, 58, 0], sizes = [2, 1, 64], strides = [1, 1, 1]} : vector<2x64x64xf32> to vector<2x1x64xf32>
    %267 = vector.shape_cast %266 : vector<2x1x64xf32> to vector<2x64xf32>
    %268 = vector.extract_strided_slice %91 {offsets = [0, 59, 0], sizes = [2, 1, 64], strides = [1, 1, 1]} : vector<2x64x64xf32> to vector<2x1x64xf32>
    %269 = vector.shape_cast %268 : vector<2x1x64xf32> to vector<2x64xf32>
    %270 = tpu.concatenate %267, %269 in 1 : vector<2x64xf32>, vector<2x64xf32> -> vector<2x128xf32>
    %c0_65 = arith.constant 0 : index
    %c3712 = arith.constant 3712 : index
    %271 = vector.load %arg8[%c0_65, %c3712] : memref<2x4096xf32, #tpu.memory_space<vmem>>, vector<2x128xf32>
    tpu.vector_store %arg8[%c0_65, %c3712], %270 {strides = array<i32>} : memref<2x4096xf32, #tpu.memory_space<vmem>>, vector<2x128xf32>,
    %272 = vector.extract_strided_slice %91 {offsets = [0, 60, 0], sizes = [2, 1, 64], strides = [1, 1, 1]} : vector<2x64x64xf32> to vector<2x1x64xf32>
    %273 = vector.shape_cast %272 : vector<2x1x64xf32> to vector<2x64xf32>
    %274 = vector.extract_strided_slice %91 {offsets = [0, 61, 0], sizes = [2, 1, 64], strides = [1, 1, 1]} : vector<2x64x64xf32> to vector<2x1x64xf32>
    %275 = vector.shape_cast %274 : vector<2x1x64xf32> to vector<2x64xf32>
    %276 = tpu.concatenate %273, %275 in 1 : vector<2x64xf32>, vector<2x64xf32> -> vector<2x128xf32>
    %c0_66 = arith.constant 0 : index
    %c3840 = arith.constant 3840 : index
    %277 = vector.load %arg8[%c0_66, %c3840] : memref<2x4096xf32, #tpu.memory_space<vmem>>, vector<2x128xf32>
    tpu.vector_store %arg8[%c0_66, %c3840], %276 {strides = array<i32>} : memref<2x4096xf32, #tpu.memory_space<vmem>>, vector<2x128xf32>,
    %278 = vector.extract_strided_slice %91 {offsets = [0, 62, 0], sizes = [2, 1, 64], strides = [1, 1, 1]} : vector<2x64x64xf32> to vector<2x1x64xf32>
    %279 = vector.shape_cast %278 : vector<2x1x64xf32> to vector<2x64xf32>
    %280 = vector.extract_strided_slice %91 {offsets = [0, 63, 0], sizes = [2, 1, 64], strides = [1, 1, 1]} : vector<2x64x64xf32> to vector<2x1x64xf32>
    %281 = vector.shape_cast %280 : vector<2x1x64xf32> to vector<2x64xf32>
    %282 = tpu.concatenate %279, %281 in 1 : vector<2x64xf32>, vector<2x64xf32> -> vector<2x128xf32>
    %c0_67 = arith.constant 0 : index
    %c3968 = arith.constant 3968 : index
    %283 = vector.load %arg8[%c0_67, %c3968] : memref<2x4096xf32, #tpu.memory_space<vmem>>, vector<2x128xf32>
    tpu.vector_store %arg8[%c0_67, %c3968], %282 {strides = array<i32>} : memref<2x4096xf32, #tpu.memory_space<vmem>>, vector<2x128xf32>,
    %c0_68 = arith.constant 0 : index
    %c0_69 = arith.constant 0 : index
    %284 = vector.load %arg5[%c0_68, %c0_69] : memref<16x4096xf32, #tpu.memory_space<vmem>>, vector<16x4096xf32>
    %c0_70 = arith.constant 0 : index
    %c0_71 = arith.constant 0 : index
    %285 = vector.load %arg8[%c0_70, %c0_71] : memref<2x4096xf32, #tpu.memory_space<vmem>>, vector<2x4096xf32>
    %cst_72 = arith.constant dense<0.000000e+00> : vector<16x2xf32>
    %286 = tpu.matmul %284, %285, %cst_72 {dimension_numbers = #tpu.dot_dimension_numbers<[1], [1], [0], [0], [0, 0, 1, 0], [], []>} : vector<16x4096xf32>, vector<2x4096xf32>, vector<16x2xf32> -> vector<16x2xf32>
    %c0_73 = arith.constant 0 : index
    %c0_74 = arith.constant 0 : index
    %287 = vector.load %arg6[%c0_73, %c0_74] : memref<16x1xf32, #tpu.memory_space<vmem>>, vector<16x1xf32>
    %288 = vector.broadcast %287 : vector<16x1xf32> to vector<16x2xf32>
    %289 = arith.addf %286, %288 : vector<16x2xf32>
    %cst_75 = arith.constant 0.000000e+00 : f32
    %290 = vector.broadcast %cst_75 : f32 to vector<16x2xf32>
    %291 = arith.subf %290, %289 : vector<16x2xf32>
    %292 = math.exp %291 : vector<16x2xf32>
    %cst_76 = arith.constant 1.000000e+00 : f32
    %293 = vector.broadcast %cst_76 : f32 to vector<16x2xf32>
    %294 = arith.addf %293, %292 : vector<16x2xf32>
    %295 = tpu.reciprocal %294 {approx = true} : vector<16x2xf32> -> vector<16x2xf32>
    %296 = vector.extract_strided_slice %0 {offsets = [0, 0, 0], sizes = [1, 16, 128], strides = [1, 1, 1]} : vector<2x16x128xf32> to vector<1x16x128xf32>
    %297 = vector.shape_cast %296 : vector<1x16x128xf32> to vector<16x128xf32>
    %298 = vector.extract_strided_slice %295 {offsets = [0, 0], sizes = [16, 1], strides = [1, 1]} : vector<16x2xf32> to vector<16x1xf32>
    %299 = vector.broadcast %298 : vector<16x1xf32> to vector<16x128xf32>
    %300 = arith.mulf %297, %299 : vector<16x128xf32>
    %c0_77 = arith.constant 0 : index
    %c0_78 = arith.constant 0 : index
    %c0_79 = arith.constant 0 : index
    %301 = vector.load %arg7[%c0_77, %c0_78, %c0_79] : memref<2x16x128xf32, #tpu.memory_space<vmem>>, vector<1x16x128xf32>
    %302 = vector.shape_cast %301 : vector<1x16x128xf32> to vector<16x128xf32>
    %303 = vector.shape_cast %300 : vector<16x128xf32> to vector<1x16x128xf32>
    tpu.vector_store %arg7[%c0_77, %c0_78, %c0_79], %303 {strides = array<i32>} : memref<2x16x128xf32, #tpu.memory_space<vmem>>, vector<1x16x128xf32>,
    %304 = vector.extract_strided_slice %0 {offsets = [1, 0, 0], sizes = [1, 16, 128], strides = [1, 1, 1]} : vector<2x16x128xf32> to vector<1x16x128xf32>
    %305 = vector.shape_cast %304 : vector<1x16x128xf32> to vector<16x128xf32>
    %306 = vector.extract_strided_slice %295 {offsets = [0, 1], sizes = [16, 1], strides = [1, 1]} : vector<16x2xf32> to vector<16x1xf32>
    %307 = vector.broadcast %306 : vector<16x1xf32> to vector<16x128xf32>
    %308 = arith.mulf %305, %307 : vector<16x128xf32>
    %c1 = arith.constant 1 : index
    %c0_80 = arith.constant 0 : index
    %c0_81 = arith.constant 0 : index
    %309 = vector.load %arg7[%c1, %c0_80, %c0_81] : memref<2x16x128xf32, #tpu.memory_space<vmem>>, vector<1x16x128xf32>
    %310 = vector.shape_cast %309 : vector<1x16x128xf32> to vector<16x128xf32>
    %311 = vector.shape_cast %308 : vector<16x128xf32> to vector<1x16x128xf32>
    tpu.vector_store %arg7[%c1, %c0_80, %c0_81], %311 {strides = array<i32>} : memref<2x16x128xf32, #tpu.memory_space<vmem>>, vector<1x16x128xf32>,
    return
  }
  func.func @transform_0(%arg0: i32) -> (i32, i32, i32) {
    %c0_i32 = arith.constant 0 : i32
    %c0_i32_0 = arith.constant 0 : i32
    %c0_i32_1 = arith.constant 0 : i32
    return %arg0, %c0_i32, %c0_i32_0 : i32, i32, i32
  }
  func.func @transform_1(%arg0: i32) -> (i32, i32) {
    %c0_i32 = arith.constant 0 : i32
    %c0_i32_0 = arith.constant 0 : i32
    %c0_i32_1 = arith.constant 0 : i32
    return %c0_i32, %c0_i32_0 : i32, i32
  }
  func.func @transform_2(%arg0: i32) -> (i32, i32) {
    %c0_i32 = arith.constant 0 : i32
    %c0_i32_0 = arith.constant 0 : i32
    %c0_i32_1 = arith.constant 0 : i32
    return %c0_i32, %c0_i32_0 : i32, i32
  }
  func.func @transform_3(%arg0: i32) -> (i32, i32) {
    %c0_i32 = arith.constant 0 : i32
    %c0_i32_0 = arith.constant 0 : i32
    %c0_i32_1 = arith.constant 0 : i32
    return %c0_i32, %c0_i32_0 : i32, i32
  }
  func.func @transform_4(%arg0: i32) -> (i32, i32) {
    %c0_i32 = arith.constant 0 : i32
    %c0_i32_0 = arith.constant 0 : i32
    %c0_i32_1 = arith.constant 0 : i32
    return %c0_i32, %c0_i32_0 : i32, i32
  }
  func.func @transform_5(%arg0: i32) -> (i32, i32) {
    %c0_i32 = arith.constant 0 : i32
    %c0_i32_0 = arith.constant 0 : i32
    %c0_i32_1 = arith.constant 0 : i32
    return %c0_i32, %c0_i32_0 : i32, i32
  }
  func.func @transform_6(%arg0: i32) -> (i32, i32, i32) {
    %c0_i32 = arith.constant 0 : i32
    %c0_i32_0 = arith.constant 0 : i32
    %c0_i32_1 = arith.constant 0 : i32
    return %arg0, %c0_i32, %c0_i32_0 : i32, i32, i32
  }
}

</mosaic_0001>

<bundles_post_ra>
// kernel: tpu_custom_call.1
= control target key start
LH: loop header
LB: loop body
LE: loop exit
PB: predicated region body
PF: predicated region fallthrough
CT: control target
= control target key end

     0   :  { %11 = vsyncpa [#allocation4], 0  ;;  %s10023_s0 = inlined_call_operand.vmem [shape: f32[4,16,128], index: 0, kind: input, shape index: {}]   ;;  %s10024_s1 = inlined_call_operand.vmem [shape: f32[64,1], index: 1, kind: input, shape index: {}]   ;;  %s10025_s2 = inlined_call_operand.vmem [shape: f32[64,1], index: 2, kind: input, shape index: {}]   ;;  %s10026_s3 = inlined_call_operand.vmem [shape: f32[64,16], index: 3, kind: input, shape index: {}]   ;;  %s10027_s4 = inlined_call_operand.hbm [shape: f32[16,4096], index: 4, kind: input, shape index: {}]   ;;  %s10028_s5 = inlined_call_operand.vmem [shape: f32[16,1], index: 5, kind: input, shape index: {}]   ;;  %s10029_s6 = inlined_call_operand.hbm [shape: f32[4,16,128], index: 6, kind: output, shape index: {}]  }
   0x1   :  { %12 = vsyncpa [#allocation5], 0 }
   0x2   :  { %14 = vsyncpa [#allocation5 + $0x1], 0  ;;  %s7991_s21 = smov 0   ;;  %s7993_s22 = smov 0  }
   0x3   :  { %s7995_s23 = smov 0   ;;  %s7997_s24 = smov 0  }
   0x4 LB: > { %s8012_s25 = sadd.s32 4294967295, %s7943_s24   ;;  %s6390_s26 = sadd.s32 4294967294, %s7943_s24   ;;  %s7943_s24 = sphi %s7997_s24, %s10037_s24   ;;  %s7939_s23 = sphi %s7995_s23, %s10036_s23   ;;  %s7935_s22 = sphi %s7993_s22, %s10035_s22   ;;  %s7931_s21 = sphi %s7991_s21, %s10034_s21  }
   0x5   : > { %s8016_s27 = sadd.s32 1, %s7943_s24   ;;  %s158_s28 = sadd.s32 1, %s7939_s23 }
   0x6   : > { %s155_s29 = ssub.s32 %s7943_s24, %s8016_s27  ;;  %p168_p0 = scmp.ne.s32.totalorder %s7939_s23, %s7935_s22 }
   0x7   : > { %p156_p1 = scmp.eq.s32.totalorder %s155_s29, 0  ;;  %p169_p2 = scmp.eq.s32.totalorder %s8012_s25, 1 }
   0x8   : > { %p174_p3 = scmp.ne.s32.totalorder %s7935_s22, %s7931_s21  ;;  %p175_p4 = scmp.eq.s32.totalorder %s6390_s26, 1 }
   0x9   : > { %s8027_s30 = scalar_select %p156_p1, %s7939_s23, %s158_s28  }
   0xa   : > { %p8029_p5 = por %p169_p2, %p168_p0  ;;  %p8033_p6 = por %p175_p4, %p174_p3 }
   0xb   : > { %p6391_p7 = scmp.ge.s32.totalorder %s7943_s24, 1  ;;  %p182_p8 = scmp.lt.s32.totalorder %s7943_s24, 3 }
   0xc   : > { %s10031_s8 = scalar_select %p8033_p6, 1, 0 }
   0xd   : > { %p7776_p9 = scmp.eq.s32.totalorder %s8012_s25, 0  ;;  %p8040_p10 = pnand %p6391_p7, %p182_p8 }
   0xe   : > { %s7945_s10 = smov [#allocation3]  }
   0xf   : > { %s203_s11 = sshll.u32 %s7945_s10, 4  ;;  %p7768_p11 = pneg %p8040_p10  ;;  %s204_s11 = int_to_ptr.vmem [resolvable:$true] %s203_s11 }
  0x10   : > { %s7864_s12 = scalar_lea.vmem %s204_s11, 8192  ;;  %p7872_p3 = scmp.lt.s32.totalorder %s204_s11, %s204_s11 }
  0x11   : > { %p7769_p12 = pnand %p7776_p9, %p7768_p11  ;;  %p7865_p0 = scmp.ne.s32.totalorder %s204_s11, %s7864_s12 }
  0x12   : > { %p7873_p4 = scmp.lt.s32.totalorder %s7864_s12, %s7864_s12 }
  0x13   : > { %p7855_p13 = pneg %p7769_p12 }
  0x14   : > { %p7874_p6 = por %p7873_p4, %p7872_p3 }
  0x15   : > { %p7867_p1 = pnand %p7865_p0, %p7855_p13 }
  0x17   : > { %p7868_p2 = pneg %p7867_p1 }
  0x19   : > { %p7875_p7 = pnand %p7874_p6, %p7868_p2 }
  0x1b   : > { %7878 = shalt.err (!%p7875_p7)
}
  0x1c   : > { %s7946_s13 = smov 4096   ;;  %s7947_s14 = smov 256  }
  0x1d   : > { %7771 = dma.hbm_to_vmem [thread:$0]  (!%p7769_p12), %s10027_s4, 8192, %s204_s11, [#allocation4], %s7946_s13, %s7946_s13, %s7947_s14  }
  0x1e   : > { %232 = sbr.rel (%p8040_p10) target bundleno = 3410 (0xd52), region = 44 }
  0x23   : > { %7922 = dma.done.wait (%p7776_p9), [#allocation4], 8192  }
  0x24   : > { %7924 = vsyncadd (%p7776_p9), [#allocation4], 4294959104  ;;  %s6397_s17 = sshll.u32 %s8012_s25, 1  ;;  %v7948_v0 = vmov 0   ;;  %v276_v6 = vld [vmem:[%s10026_s3] sm:$0xff]  ;;  %v277_v7 = vld [vmem:[%s10026_s3 + $0x8] sm:$0xff]  ;;  %v577_v44 = vlaneseq }
  0x25   : > { %p264_p8 = scmp.lt.s32.totalorder %s6397_s17, 3  ;;  %7821 = vset.pattern.permute.xlu0 %v7948_v0  ;;  %7822 = vset.pattern.permute.xlu1 %v7948_v0  ;;  %v284_v9 = vpack.c.bf16 %v277_v7, %v276_v6  ;;  %vm290_vm0 = vcmask 130048   ;;  %v278_v10 = vld [vmem:[%s10026_s3 + $0x10] sm:$0xff]  ;;  %v279_v11 = vld [vmem:[%s10026_s3 + $0x18] sm:$0xff]  ;;  %v280_v12 = vld [vmem:[%s10026_s3 + $0x20] sm:$0xff]  ;;  %v7949_v61 = vmov 0.0  }
  0x26   : > { %v285_v13 = vpack.c.bf16 %v279_v11, %v278_v10  ;;  %v281_v14 = vld [vmem:[%s10026_s3 + $0x28] sm:$0xff]  ;;  %v433_v16 = vld [vmem:[%s10024_s1] sm:$0xff]  ;;  %v435_v17 = vld [vmem:[%s10024_s1 + $0x10] sm:$0xff]  ;;  %v8152_v46 = vand.u32 127, %v577_v44  ;;  %vm881_vm3 = vcmask 523264   ;;  %vm4315_vm15 = vcmask 1047559  }
  0x27   : > { %s10039_s17 = smov (!%p264_p8, %s6397_s17), 3  ;;  %v286_v15 = vpack.c.bf16 %v281_v14, %v280_v12  ;;  %7040 = vmatprep.mubr.msk.bf16.mxu0 %vm290_vm0, %v284_v9  ;;  %7050 = vmatprep.mubr.msk.bf16.mxu1 %vm290_vm0, %v284_v9  ;;  %v434_v18 = vld [vmem:[%s10024_s1 + $0x8] sm:$0xff]  ;;  %v282_v19 = vld [vmem:[%s10026_s3 + $0x30] sm:$0xff]  ;;  %v283_v20 = vld [vmem:[%s10026_s3 + $0x38] sm:$0xff]  ;;  %s7950_s13 = smov 64  }
  0x28   : > { %s6625_s18 = sshll.u32 %s10039_s17, 4  ;;  %443 = vperm.xlu0 %7821, %v433_v16   ;;  %453 = vperm.xlu1 %7822, %v435_v17   ;;  %v436_v21 = vld [vmem:[%s10024_s1 + $0x18] sm:$0xff]  ;;  %v287_v22 = vpack.c.bf16 %v283_v20, %v282_v19  ;;  %v497_v23 = vld [vmem:[%s10025_s2] sm:$0xff]  ;;  %v498_v24 = vld [vmem:[%s10025_s2 + $0x8] sm:$0xff]  ;;  %vm579_vm1 = vcmp.lt.s32.totalorder %v8152_v46, 64  ;;  %s6627_s29 = sshll.u32 %s8012_s25, 9 }
  0x29   : > { %s8061_s26 = scalar_lea.vmem %s10023_s0, %s6625_s18  ;;  %v499_v25 = vld [vmem:[%s10025_s2 + $0x10] sm:$0xff]  ;;  %v500_v26 = vld [vmem:[%s10025_s2 + $0x18] sm:$0xff]  ;;  %v437_v27 = vld [vmem:[%s10024_s1 + $0x20] sm:$0xff]  ;;  %v8156_v62 = vsel %vm579_vm1, 1.0, %v7949_v61  ;;  %vm4296_vm1 = vcmask 1045509   ;;  %s260_s18 = sand.u32 1, %s7935_s22  }
  0x2a   : > { %v272_v1 = vld [vmem:[%s8061_s26] sm:$0xff]  ;;  %v273_v2 = vld [vmem:[%s8061_s26 + $0x8] sm:$0xff]  ;;  %v274_v3 = vld [vmem:[%s8061_s26 + $0x10] sm:$0xff]  ;;  %s6396_s19 = sshll.u32 %s260_s18, 5  ;;  %s9981_s11 = scalar_lea.hbm %s10029_s6, %s6627_s29 }
  0x2b   : > { %v288_v4 = vpack.c.bf16 %v273_v2, %v272_v1  ;;  %v275_v5 = vld [vmem:[%s8061_s26 + $0x18] sm:$0xff]  ;;  %v438_v28 = vld [vmem:[%s10024_s1 + $0x28] sm:$0xff]  ;;  %v439_v29 = vld [vmem:[%s10024_s1 + $0x30] sm:$0xff]  ;;  %s262_s20 = scalar_lea.vmem [#allocation6], %s6396_s19  ;;  %s9983_s12 = scalar_lea.sflag [#allocation5], %s260_s18 }
  0x2c   : > { %v289_v8 = vpack.c.bf16 %v275_v5, %v274_v3  ;;  %448 = vperm.xlu0 %7821, %v434_v18   ;;  %458 = vperm.xlu1 %7822, %v436_v21   ;;  %v440_v30 = vld [vmem:[%s10024_s1 + $0x38] sm:$0xff]  ;;  %v501_v31 = vld [vmem:[%s10025_s2 + $0x20] sm:$0xff]  ;;  %v502_v32 = vld [vmem:[%s10025_s2 + $0x28] sm:$0xff]  ;;  %s6316_s28 = sshll.u32 %s262_s20, 4  ;;  %s7953_s25 = smov [#allocation6]   ;;  %s9975_s28 = int_to_ptr.vmem [resolvable:$true] %s6316_s28 }
  0x2d   : > { %7038 = vmatprep.subr.bf16.mxu0 %v288_v4  ;;  %v503_v33 = vld [vmem:[%s10025_s2 + $0x30] sm:$0xff]  ;;  %v504_v34 = vld [vmem:[%s10025_s2 + $0x38] sm:$0xff]  ;;  %s7883_s14 = sshll.u32 %s7953_s25, 4  ;;  %s7884_s14 = int_to_ptr.vmem [resolvable:$false] %s7883_s14 }
  0x2e   : > { %7048 = vmatprep.subr.bf16.mxu1 %v289_v8  ;;  %7039 = vmatpush3.bf16.msra.mxu0 %v288_v4  ;;  %s7885_s15 = scalar_lea.vmem %s7884_s14, 1024  ;;  %p7886_p11 = scmp.lt.s32.totalorder %s9975_s28, %s7884_s14 }
  0x2f   : > { %7049 = vmatpush3.bf16.msra.mxu1 %v289_v8 }
  0x30   : > { %507 = vperm.xlu0 %7821, %v497_v23   ;;  %512 = vperm.xlu1 %7822, %v498_v24  }
  0x31   : > { %7041 = vmatmul.mubr.msk.bf16.vlgmr.msra.gmra.mxu0 %vm290_vm0, %v285_v13 }
  0x32   : > { %7051 = vmatmul.mubr.msk.bf16.vlgmr.msra.gmra.mxu1 %vm290_vm0, %v285_v13  ;;  %7044 = vmatprep.mubr.msk.bf16.mxu0 %vm290_vm0, %v286_v15 }
  0x33   : > { %7054 = vmatprep.mubr.msk.bf16.mxu1 %vm290_vm0, %v286_v15 }
  0x34   : > { %517 = vperm.xlu0 %7821, %v499_v25   ;;  %522 = vperm.xlu1 %7822, %v500_v26  }
  0x38   : > { %463 = vperm.xlu0 %7821, %v437_v27   ;;  %468 = vperm.xlu1 %7822, %v438_v28  }
  0x39   : > { %7045 = vmatmul.mubr.msk.bf16.gmra.mxu0 %vm290_vm0, %v287_v22 }
  0x3a   : > { %7055 = vmatmul.mubr.msk.bf16.gmra.mxu1 %vm290_vm0, %v287_v22  ;;  %vm4277_vm0 = vcmask 1043459  }
  0x3c   : > { %473 = vperm.xlu0 %7821, %v439_v29   ;;  %478 = vperm.xlu1 %7822, %v440_v30  }
  0x40   : > { %527 = vperm.xlu0 %7821, %v501_v31   ;;  %532 = vperm.xlu1 %7822, %v502_v32  }
  0x44   : > { %537 = vperm.xlu0 %7821, %v503_v33   ;;  %542 = vperm.xlu1 %7822, %v504_v34  }
  0xa3   : > { %v444_v35 = vpop.permute.xlu0 %443  ;;  %v454_v36 = vpop.permute.xlu1 %453 }
  0xa7   : > { %v449_v37 = vpop.permute.xlu0 %448  ;;  %v459_v38 = vpop.permute.xlu1 %458 }
  0xab   : > { %v508_v39 = vpop.permute.xlu0 %507  ;;  %v8147_v40 = vpop.permute.xlu1 %512 }
  0xaf   : > { %v518_v41 = vpop.permute.xlu0 %517  ;;  %v523_v42 = vpop.permute.xlu1 %522 }
  0xb3   : > { %v464_v43 = vpop.permute.xlu0 %463  ;;  %v8149_v45 = vpop.permute.xlu1 %468 }
  0xb7   : > { %v474_v47 = vpop.permute.xlu0 %473  ;;  %v479_v51 = vpop.permute.xlu1 %478 }
  0xbb   : > { %v528_v57 = vpop.permute.xlu0 %527  ;;  %v533_v12 = vpop.permute.xlu1 %532 }
  0xbf   : > { %v538_v19 = vpop.permute.xlu0 %537 }
  0xf1   : > { %v7042_v48 = vpop.f32.mrf.mxu0 }
  0xf2   : > { %v483_v49 = vmul.f32 %v7042_v48, %v454_v36  ;;  %v7052_v50 = vpop.f32.mrf.mxu1 }
  0xf3   : > { %v491_v52 = vmul.f32 %v7052_v50, %v454_v36  ;;  %v337_v53 = vpop.f32.mrf.mxu0 }
  0xf4   : > { %v547_v54 = vadd.f32 %v518_v41, %v483_v49  ;;  %v481_v55 = vmul.f32 %v444_v35, %v337_v53  ;;  %v402_v56 = vpop.f32.mrf.mxu1 }
  0xf5   : > { %v555_v58 = vadd.f32 %v518_v41, %v491_v52  ;;  %v489_v59 = vmul.f32 %v444_v35, %v402_v56  ;;  %v7043_v60 = vpop.f32.mrf.mxu0 }
  0xf6   : > { %v563_v63 = vmax.f32 %v547_v54, 0.0  ;;  %v545_v0 = vadd.f32 %v508_v39, %v481_v55  ;;  %v484_v1 = vmul.f32 %v7043_v60, %v459_v38  ;;  %v7053_v2 = vpop.f32.mrf.mxu1 }
  0xf7   : > { %v571_v3 = vmax.f32 %v555_v58, 0.0  ;;  %v553_v4 = vadd.f32 %v508_v39, %v489_v59  ;;  %v492_v5 = vmul.f32 %v7053_v2, %v459_v38  ;;  %v340_v6 = vpop.f32.mrf.mxu0 }
  0xf8   : > { %v561_v7 = vmax.f32 %v545_v0, 0.0  ;;  %v548_v8 = vadd.f32 %v523_v42, %v484_v1  ;;  %v482_v9 = vmul.f32 %v449_v37, %v340_v6  ;;  %v405_v10 = vpop.f32.mrf.mxu1  ;;  %v8159_v11 = vmul.f32 %v8156_v62, %v563_v63 }
  0xf9   : > { %v569_v13 = vmax.f32 %v553_v4, 0.0  ;;  %v7046_v14 = vpop.f32.mrf.mxu0  ;;  %v8162_v15 = vmul.f32 %v8156_v62, %v571_v3  ;;  %v556_v20 = vadd.f32 %v523_v42, %v492_v5  ;;  %v490_v21 = vmul.f32 %v449_v37, %v405_v10  ;;  %v543_v37 = vpop.permute.xlu1 %542 }
  0xfa   : > { %v546_v16 = vadd.f32 %v8147_v40, %v482_v9  ;;  %v487_v17 = vmul.f32 %v7046_v14, %v474_v47  ;;  %v7056_v18 = vpop.f32.mrf.mxu1  ;;  %602 = vadd.xlane.f32.xlu0 %v8159_v11  ;;  %v564_v24 = vmax.f32 %v548_v8, 0.0  ;;  %v8168_v28 = vmul.f32 %v8156_v62, %v561_v7 }
  0xfb   : > { %v495_v22 = vmul.f32 %v7056_v18, %v474_v47  ;;  %618 = vadd.xlane.f32.xlu1 %v8162_v15  ;;  %v353_v23 = vpop.f32.mrf.mxu0  ;;  %v8171_v33 = vmul.f32 %v8156_v62, %v569_v13  ;;  %v572_v38 = vmax.f32 %v556_v20, 0.0  ;;  %v554_v39 = vadd.f32 %v8147_v40, %v490_v21 }
  0xfc   : > { %v551_v25 = vadd.f32 %v538_v19, %v487_v17  ;;  %v485_v26 = vmul.f32 %v464_v43, %v353_v23  ;;  %v418_v27 = vpop.f32.mrf.mxu1  ;;  %v562_v29 = vmax.f32 %v546_v16, 0.0  ;;  %v8178_v52 = vmul.f32 %v8156_v62, %v564_v24 }
  0xfd   : > { %v559_v30 = vadd.f32 %v538_v19, %v495_v22  ;;  %v493_v31 = vmul.f32 %v464_v43, %v418_v27  ;;  %v7047_v32 = vpop.f32.mrf.mxu0  ;;  %v570_v58 = vmax.f32 %v554_v39, 0.0 }
  0xfe   : > { %v549_v34 = vadd.f32 %v528_v57, %v485_v26  ;;  %v488_v35 = vmul.f32 %v7047_v32, %v479_v51  ;;  %v7057_v36 = vpop.f32.mrf.mxu1  ;;  %598 = vadd.xlane.f32.xlu0 %v8168_v28  ;;  %v567_v48 = vmax.f32 %v551_v25, 0.0  ;;  %v8182_v56 = vmul.f32 %v8156_v62, %v562_v29 }
  0xff   : > { %v557_v41 = vadd.f32 %v528_v57, %v493_v31  ;;  %v496_v42 = vmul.f32 %v7057_v36, %v479_v51  ;;  %614 = vadd.xlane.f32.xlu1 %v8171_v33  ;;  %v356_v47 = vpop.f32.mrf.mxu0  ;;  %v575_v53 = vmax.f32 %v559_v30, 0.0  ;;  %v8220_v13 = vmul.f32 %v8156_v62, %v570_v58 }
 0x100   : > { %v552_v43 = vadd.f32 %v543_v37, %v488_v35  ;;  %v486_v49 = vmul.f32 %v8149_v45, %v356_v47  ;;  %v421_v50 = vpop.f32.mrf.mxu1  ;;  %v565_v40 = vmax.f32 %v549_v34, 0.0  ;;  %v8193_v2 = vmul.f32 %v8156_v62, %v567_v48 }
 0x101   : > { %v560_v54 = vadd.f32 %v543_v37, %v496_v42  ;;  %v494_v55 = vmul.f32 %v8149_v45, %v421_v50  ;;  %v573_v59 = vmax.f32 %v557_v41, 0.0  ;;  %v8190_v45 = vmul.f32 %v8156_v62, %v572_v38 }
 0x102   : > { %v568_v51 = vmax.f32 %v552_v43, 0.0  ;;  %v550_v57 = vadd.f32 %v533_v12, %v486_v49  ;;  %604 = vadd.xlane.f32.xlu0 %v8178_v52  ;;  %v8196_v3 = vmul.f32 %v8156_v62, %v575_v53  ;;  %v8208_v8 = vmul.f32 %v8156_v62, %v565_v40 }
 0x103   : > { %v576_v60 = vmax.f32 %v560_v54, 0.0  ;;  %v558_v63 = vadd.f32 %v533_v12, %v494_v55  ;;  %600 = vadd.xlane.f32.xlu1 %v8182_v56  ;;  %v8211_v9 = vmul.f32 %v8156_v62, %v573_v59  ;;  %v687_v17 = vpack.c.bf16 %v8178_v52, %v8159_v11 }
 0x104   : > { %v8187_v0 = vmul.f32 %v8156_v62, %v568_v51  ;;  %v566_v1 = vmax.f32 %v550_v57, 0.0  ;;  %v690_v18 = vpack.c.bf16 %v8220_v13, %v8171_v33  ;;  %v686_v19 = vpack.c.bf16 %v8182_v56, %v8168_v28 }
 0x105   : > { %v8199_v4 = vmul.f32 %v8156_v62, %v576_v60  ;;  %v574_v5 = vmax.f32 %v558_v63, 0.0 }
 0x106   : > { %v8202_v6 = vmul.f32 %v8156_v62, %v566_v1  ;;  %620 = vadd.xlane.f32.xlu0 %v8190_v45  ;;  %v689_v7 = vpack.c.bf16 %v8187_v0, %v8193_v2 }
 0x107   : > { %v8214_v10 = vmul.f32 %v8156_v62, %v574_v5  ;;  %610 = vadd.xlane.f32.xlu1 %v8193_v2  ;;  %v693_v12 = vpack.c.bf16 %v8199_v4, %v8196_v3  ;;  %v691_v62 = vpack.c.bf16 %v8190_v45, %v8162_v15 }
 0x108   : > { %7058 = vmatprep.subr.bf16.mxu0 %v689_v7  ;;  %v688_v14 = vpack.c.bf16 %v8202_v6, %v8208_v8 }
 0x109   : > { %7074 = vmatprep.subr.bf16.mxu1 %v693_v12  ;;  %7059 = vmatpush3.bf16.xpose.msra.mxu0 %v689_v7  ;;  %v692_v16 = vpack.c.bf16 %v8214_v10, %v8211_v9 }
 0x10a   : > { %7075 = vmatpush3.bf16.xpose.msra.mxu1 %v693_v12  ;;  %616 = vadd.xlane.f32.xlu0 %v8220_v13 }
 0x10b   : > { %7076 = vmatprep.subr.bf16.mxu1 %v692_v16  ;;  %606 = vadd.xlane.f32.xlu1 %v8208_v8 }
 0x10c   : > { %7060 = vmatprep.subr.bf16.mxu0 %v688_v14 }
 0x10e   : > { %612 = vadd.xlane.f32.xlu0 %v8187_v0 }
 0x10f   : > { %622 = vadd.xlane.f32.xlu1 %v8211_v9 }
 0x111   : > { %7061 = vmatpush3.bf16.xpose.msra.mxu0 %v688_v14 }
 0x112   : > { %7077 = vmatpush3.bf16.xpose.msra.mxu1 %v692_v16  ;;  %608 = vadd.xlane.f32.xlu0 %v8202_v6 }
 0x113   : > { %7078 = vmatprep.subr.bf16.mxu1 %v691_v62  ;;  %626 = vadd.xlane.f32.xlu1 %v8196_v3 }
 0x114   : > { %7062 = vmatprep.subr.bf16.mxu0 %v687_v17 }
 0x116   : > { %624 = vadd.xlane.f32.xlu0 %v8214_v10 }
 0x119   : > { %7063 = vmatpush3.bf16.xpose.msra.mxu0 %v687_v17 }
 0x11a   : > { %7079 = vmatpush3.bf16.xpose.msra.mxu1 %v691_v62  ;;  %628 = vadd.xlane.f32.xlu0 %v8199_v4 }
 0x11b   : > { %7080 = vmatprep.subr.bf16.mxu1 %v690_v18  ;;  %7064 = vmatprep.subr.bf16.mxu0 %v686_v19 }
 0x121   : > { %7065 = vmatpush3.bf16.xpose.msra.mxu0 %v686_v19 }
 0x122   : > { %7081 = vmatpush3.bf16.xpose.msra.mxu1 %v690_v18 }
 0x183   : > { %v603_v20 = vpop.xlane.xlu0 %602 }
 0x184   : > { %v619_v21 = vpop.xlane.xlu1 %618  ;;  %v632_v23 = vmul.f32 0.015625, %v603_v20 }
 0x185   : > { %v640_v47 = vmul.f32 0.015625, %v619_v21 }
 0x186   : > { %v648_v27 = vsub.f32 %v8159_v11, %v632_v23 }
 0x187   : > { %v599_v22 = vpop.xlane.xlu0 %598  ;;  %v656_v55 = vsub.f32 %v8162_v15, %v640_v47 }
 0x188   : > { %v615_v24 = vpop.xlane.xlu1 %614  ;;  %v630_v25 = vmul.f32 0.015625, %v599_v22  ;;  %v664_v37 = vmul.f32 0.015625, %v648_v27 }
 0x189   : > { %v638_v38 = vmul.f32 0.015625, %v615_v24  ;;  %v672_v1 = vmul.f32 0.015625, %v656_v55 }
 0x18a   : > { %v646_v31 = vsub.f32 %v8168_v28, %v630_v25 }
 0x18b   : > { %v605_v26 = vpop.xlane.xlu0 %604  ;;  %v654_v28 = vsub.f32 %v8171_v33, %v638_v38 }
 0x18c   : > { %v633_v29 = vmul.f32 0.015625, %v605_v26  ;;  %v601_v30 = vpop.xlane.xlu1 %600  ;;  %v662_v48 = vmul.f32 0.015625, %v646_v31 }
 0x18d   : > { %v631_v32 = vmul.f32 0.015625, %v601_v30  ;;  %v670_v58 = vmul.f32 0.015625, %v654_v28 }
 0x18e   : > { %v649_v34 = vsub.f32 %v8178_v52, %v633_v29 }
 0x18f   : > { %v647_v35 = vsub.f32 %v8182_v56, %v631_v32  ;;  %v621_v36 = vpop.xlane.xlu0 %620 }
 0x190   : > { %v665_v39 = vmul.f32 0.015625, %v649_v34  ;;  %v641_v41 = vmul.f32 0.015625, %v621_v36  ;;  %v611_v42 = vpop.xlane.xlu1 %610 }
 0x191   : > { %v663_v43 = vmul.f32 0.015625, %v647_v35 }
 0x192   : > { %v679_v49 = vpack.c.bf16 %v665_v39, %v664_v37  ;;  %v657_v11 = vsub.f32 %v8190_v45, %v641_v41  ;;  %v636_v45 = vmul.f32 0.015625, %v611_v42 }
 0x193   : > { %v617_v50 = vpop.xlane.xlu0 %616  ;;  %v678_v53 = vpack.c.bf16 %v663_v43, %v662_v48 }
 0x194   : > { %v639_v54 = vmul.f32 0.015625, %v617_v50  ;;  %v607_v52 = vpop.xlane.xlu1 %606  ;;  %v673_v40 = vmul.f32 0.015625, %v657_v11 }
 0x195   : > { %7066 = vmatprep.mubr.bf16.mxu0 %v678_v53  ;;  %v634_v51 = vmul.f32 0.015625, %v607_v52 }
 0x196   : > { %v655_v56 = vsub.f32 %v8220_v13, %v639_v54  ;;  %7067 = vmatmul.mubr.bf16.vlgmr.msra.gmra.mxu0 %v679_v49  ;;  %v683_v7 = vpack.c.bf16 %v673_v40, %v672_v1  ;;  %v652_v13 = vsub.f32 %v8193_v2, %v636_v45 }
 0x197   : > { %v613_v57 = vpop.xlane.xlu0 %612  ;;  %v650_v33 = vsub.f32 %v8208_v8, %v634_v51 }
 0x198   : > { %v671_v59 = vmul.f32 0.015625, %v655_v56  ;;  %v623_v60 = vpop.xlane.xlu1 %622  ;;  %v637_v63 = vmul.f32 0.015625, %v613_v57  ;;  %v668_v24 = vmul.f32 0.015625, %v652_v13 }
 0x199   : > { %v642_v14 = vmul.f32 0.015625, %v623_v60  ;;  %v666_v18 = vmul.f32 0.015625, %v650_v33 }
 0x19a   : > { %v682_v5 = vpack.c.bf16 %v671_v59, %v670_v58  ;;  %v653_v12 = vsub.f32 %v8187_v0, %v637_v63 }
 0x19b   : > { %v609_v15 = vpop.xlane.xlu0 %608  ;;  %v658_v21 = vsub.f32 %v8211_v9, %v642_v14 }
 0x19c   : > { %v635_v16 = vmul.f32 0.015625, %v609_v15  ;;  %7082 = vmatprep.mubr.bf16.mxu1 %v682_v5  ;;  %v627_v62 = vpop.xlane.xlu1 %626  ;;  %v669_v19 = vmul.f32 0.015625, %v653_v12 }
 0x19d   : > { %7083 = vmatmul.mubr.bf16.vlgmr.msra.gmra.mxu1 %v683_v7  ;;  %v644_v22 = vmul.f32 0.015625, %v627_v62  ;;  %v674_v29 = vmul.f32 0.015625, %v658_v21 }
 0x19e   : > { %v651_v17 = vsub.f32 %v8202_v6, %v635_v16  ;;  %v681_v27 = vpack.c.bf16 %v669_v19, %v668_v24 }
 0x19f   : > { %v625_v20 = vpop.xlane.xlu0 %624  ;;  %v660_v2 = vsub.f32 %v8196_v3, %v644_v22 }
 0x1a0   : > { %v667_v23 = vmul.f32 0.015625, %v651_v17  ;;  %v643_v8 = vmul.f32 0.015625, %v625_v20 }
 0x1a1   : > { %v676_v9 = vmul.f32 0.015625, %v660_v2 }
 0x1a2   : > { %v659_v0 = vsub.f32 %v8214_v10, %v643_v8  ;;  %v680_v25 = vpack.c.bf16 %v667_v23, %v666_v18  ;;  %v8259_v10 = vshrl.u32 %v577_v44, 7 }
 0x1a3   : > { %v629_v26 = vpop.xlane.xlu0 %628 }
 0x1a4   : > { %v675_v30 = vmul.f32 0.015625, %v659_v0  ;;  %v645_v31 = vmul.f32 0.015625, %v629_v26  ;;  %7070 = vmatprep.mubr.bf16.mxu0 %v680_v25  ;;  %v827_v36 = vadd.s32 16, %v8259_v10  ;;  %v828_v38 = vadd.s32 24, %v8259_v10 }
 0x1a5   : > { %7071 = vmatmul.mubr.bf16.gmra.mxu0 %v681_v27  ;;  %vm833_vm4 = vcmp.eq.s32.totalorder %v8259_v10, %v8152_v46  ;;  %v826_v41 = vadd.s32 8, %v8259_v10  ;;  %v831_v54 = vadd.s32 48, %v8259_v10  ;;  %v829_v59 = vadd.s32 32, %v8259_v10 }
 0x1a6   : > { %v661_v6 = vsub.f32 %v8199_v4, %v645_v31  ;;  %v684_v32 = vpack.c.bf16 %v675_v30, %v674_v29  ;;  %vm835_vm2 = vcmp.eq.s32.totalorder %v827_v36, %v8152_v46  ;;  %vm836_vm5 = vcmp.eq.s32.totalorder %v828_v38, %v8152_v46 }
 0x1a7   : > { %v8264_v3 = vsel %vm835_vm2, 1.0, %v7949_v61  ;;  %v8281_v47 = vsel %vm833_vm4, 1.0, %v7949_v61  ;;  %v8288_v49 = vsel %vm836_vm5, 1.0, %v7949_v61  ;;  %vm834_vm6 = vcmp.eq.s32.totalorder %v826_v41, %v8152_v46 }
 0x1a8   : > { %v677_v34 = vmul.f32 0.015625, %v661_v6  ;;  %7086 = vmatprep.mubr.bf16.mxu1 %v684_v32  ;;  %v8307_v51 = vsel %vm834_vm6, 1.0, %v7949_v61  ;;  %vm839_vm7 = vcmp.eq.s32.totalorder %v831_v54, %v8152_v46  ;;  %vm837_vm8 = vcmp.eq.s32.totalorder %v829_v59, %v8152_v46 }
 0x1a9   : > { %v8322_v5 = vsel %vm839_vm7, 1.0, %v7949_v61  ;;  %v830_v15 = vadd.s32 40, %v8259_v10  ;;  %v8337_v62 = vsel %vm837_vm8, 1.0, %v7949_v61  ;;  %v832_v17 = vadd.s32 56, %v8259_v10 }
 0x1aa   : > { %v685_v35 = vpack.c.bf16 %v677_v34, %v676_v9  ;;  %vm4267_vm2 = vcmask 1041409  }
 0x1ab   : > { %vm838_vm9 = vcmp.eq.s32.totalorder %v830_v15, %v8152_v46  ;;  %vm840_vm10 = vcmp.eq.s32.totalorder %v832_v17, %v8152_v46 }
 0x1ac   : > { %7087 = vmatmul.mubr.bf16.gmra.mxu1 %v685_v35  ;;  %v8354_v24 = vsel %vm838_vm9, 1.0, %v7949_v61  ;;  %v6416_v2 = vsel %vm840_vm10, 1.0, %v7949_v61 }
 0x256   : > { %v8266_v37 = vpop.f32.mrf.mxu0 }
 0x257   : > { %v867_v4 = vmul.f32 %v8266_v37, %v8264_v3 }
 0x258   : > { %v8274_v44 = vpop.f32.mrf.mxu0 }
 0x259   : > { %v888_v39 = vsel %vm881_vm3, %v867_v4, 0.0  ;;  %v865_v28 = vmul.f32 %v8281_v47, %v8274_v44 }
 0x25a   : > { %889 = vadd.xlane.f32.xlu1 %v888_v39  ;;  %v8285_v43 = vpop.f32.mrf.mxu0 }
 0x25b   : > { %v868_v55 = vmul.f32 %v8285_v43, %v8288_v49  ;;  %v882_v58 = vsel %vm881_vm3, %v865_v28, 0.0 }
 0x25c   : > { %v8304_v40 = vpop.f32.mrf.mxu0 }
 0x25d   : > { %v8278_v42 = vpop.f32.mrf.mxu1  ;;  %v891_v1 = vsel %vm881_vm3, %v868_v55, 0.0  ;;  %v866_v45 = vmul.f32 %v8307_v51, %v8304_v40 }
 0x25e   : > { %v875_v48 = vmul.f32 %v8278_v42, %v8264_v3 }
 0x25f   : > { %v8290_v11 = vpop.f32.mrf.mxu1  ;;  %v885_v16 = vsel %vm881_vm3, %v866_v45, 0.0 }
 0x260   : > { %v912_v50 = vsel %vm881_vm3, %v875_v48, 0.0  ;;  %v873_v53 = vmul.f32 %v8281_v47, %v8290_v11 }
 0x261   : > { %v8299_v52 = vpop.f32.mrf.mxu1  ;;  %913 = vadd.xlane.f32.xlu1 %v912_v50 }
 0x262   : > { %v906_v56 = vsel %vm881_vm3, %v873_v53, 0.0  ;;  %v876_v57 = vmul.f32 %v8299_v52, %v8288_v49 }
 0x263   : > { %907 = vadd.xlane.f32.xlu0 %v906_v56  ;;  %v8314_v60 = vpop.f32.mrf.mxu1 }
 0x264   : > { %v915_v33 = vsel %vm881_vm3, %v876_v57, 0.0  ;;  %v874_v12 = vmul.f32 %v8307_v51, %v8314_v60 }
 0x265   : > { %883 = vadd.xlane.f32.xlu1 %v882_v58  ;;  %v8316_v63 = vpop.f32.mrf.mxu0 }
 0x266   : > { %v871_v14 = vmul.f32 %v8316_v63, %v8322_v5  ;;  %v909_v19 = vsel %vm881_vm3, %v874_v12, 0.0 }
 0x267   : > { %892 = vadd.xlane.f32.xlu0 %v891_v1  ;;  %v8324_v7 = vpop.f32.mrf.mxu0 }
 0x268   : > { %v900_v21 = vsel %vm881_vm3, %v871_v14, 0.0  ;;  %v869_v22 = vmul.f32 %v8337_v62, %v8324_v7 }
 0x269   : > { %916 = vadd.xlane.f32.xlu1 %v915_v33  ;;  %v8334_v13 = vpop.f32.mrf.mxu0 }
 0x26a   : > { %v894_v27 = vsel %vm881_vm3, %v869_v22, 0.0  ;;  %v872_v6 = vmul.f32 %v8334_v13, %v6416_v2 }
 0x26b   : > { %886 = vadd.xlane.f32.xlu0 %v885_v16  ;;  %v8349_v23 = vpop.f32.mrf.mxu0 }
 0x26c   : > { %v8340_v18 = vpop.f32.mrf.mxu1  ;;  %v870_v29 = vmul.f32 %v8354_v24, %v8349_v23  ;;  %v903_v61 = vsel %vm881_vm3, %v872_v6, 0.0 }
 0x26d   : > { %910 = vadd.xlane.f32.xlu1 %v909_v19  ;;  %v879_v46 = vmul.f32 %v8340_v18, %v8322_v5 }
 0x26e   : > { %v8344_v20 = vpop.f32.mrf.mxu1  ;;  %v897_v32 = vsel %vm881_vm3, %v870_v29, 0.0 }
 0x26f   : > { %901 = vadd.xlane.f32.xlu0 %v900_v21  ;;  %v877_v8 = vmul.f32 %v8337_v62, %v8344_v20  ;;  %v924_v9 = vsel %vm881_vm3, %v879_v46, 0.0 }
 0x270   : > { %v8357_v0 = vpop.f32.mrf.mxu1 }
 0x271   : > { %v918_v25 = vsel %vm881_vm3, %v877_v8, 0.0  ;;  %v880_v34 = vmul.f32 %v8357_v0, %v6416_v2 }
 0x272   : > { %v8360_v26 = vpop.f32.mrf.mxu1  ;;  %919 = vadd.xlane.f32.xlu1 %v918_v25 }
 0x273   : > { %895 = vadd.xlane.f32.xlu0 %v894_v27  ;;  %v878_v30 = vmul.f32 %v8354_v24, %v8360_v26  ;;  %v927_v35 = vsel %vm881_vm3, %v880_v34, 0.0 }
 0x275   : > { %v921_v31 = vsel %vm881_vm3, %v878_v30, 0.0 }
 0x276   : > { %922 = vadd.xlane.f32.xlu1 %v921_v31 }
 0x277   : > { %898 = vadd.xlane.f32.xlu0 %v897_v32 }
 0x27a   : > { %925 = vadd.xlane.f32.xlu1 %v924_v9 }
 0x27b   : > { %904 = vadd.xlane.f32.xlu0 %v903_v61 }
 0x27f   : > { %928 = vadd.xlane.f32.xlu0 %v927_v35 }
 0x2e3   : > { %v890_v36 = vpop.xlane.xlu1 %889 }
 0x2ea   : > { %v914_v4 = vpop.xlane.xlu1 %913 }
 0x2ec   : > { %v908_v38 = vpop.xlane.xlu0 %907 }
 0x2ee   : > { %v884_v39 = vpop.xlane.xlu1 %883 }
 0x2f0   : > { %v893_v41 = vpop.xlane.xlu0 %892 }
 0x2f2   : > { %v917_v48 = vpop.xlane.xlu1 %916 }
 0x2f4   : > { %v887_v50 = vpop.xlane.xlu0 %886 }
 0x2f5   : > { %v930_v53 = vadd.f32 %v887_v50, %v884_v39  ;;  %v8386_v50 = vmul.f32 3.0, %v6416_v2  ;;  %v8416_v2 = vmul.f32 3.0, %v8288_v49 }
 0x2f6   : > { %v911_v28 = vpop.xlane.xlu1 %910 }
 0x2f7   : > { %v943_v54 = vadd.f32 %v911_v28, %v908_v38  ;;  %v931_v56 = vadd.f32 %v930_v53, %v890_v36  ;;  %v8389_v28 = vmul.f32 3.0, %v8354_v24 }
 0x2f8   : > { %v902_v55 = vpop.xlane.xlu0 %901 }
 0x2f9   : > { %v944_v57 = vadd.f32 %v943_v54, %v914_v4  ;;  %v932_v45 = vadd.f32 %v931_v56, %v893_v41 }
 0x2fb   : > { %v920_v58 = vpop.xlane.xlu1 %919  ;;  %v945_v1 = vadd.f32 %v944_v57, %v917_v48  ;;  %v8384_v48 = vmul.f32 3.0, %v8322_v5  ;;  %v8404_v5 = vmul.f32 3.0, %v8337_v62 }
 0x2fc   : > { %v896_v59 = vpop.xlane.xlu0 %895 }
 0x2fd   : > { %v933_v33 = vadd.f32 %v932_v45, %v896_v59  ;;  %v946_v14 = vadd.f32 %v945_v1, %v920_v58  ;;  %v8429_v1 = vmul.f32 3.0, %v8264_v3 }
 0x2ff   : > { %v923_v12 = vpop.xlane.xlu1 %922 }
 0x300   : > { %v899_v15 = vpop.xlane.xlu0 %898  ;;  %v947_v22 = vadd.f32 %v946_v14, %v923_v12  ;;  %v8459_v12 = vmul.f32 3.0, %v8307_v51  ;;  %v8474_v51 = vmul.f32 3.0, %v8281_v47 }
 0x301   : > { %v934_v16 = vadd.f32 %v933_v33, %v899_v15 }
 0x303   : > { %v935_v17 = vadd.f32 %v934_v16, %v902_v55  ;;  %v926_v19 = vpop.xlane.xlu1 %925 }
 0x304   : > { %v905_v21 = vpop.xlane.xlu0 %904  ;;  %v948_v25 = vadd.f32 %v947_v22, %v926_v19 }
 0x305   : > { %v936_v8 = vadd.f32 %v935_v17, %v905_v21 }
 0x307   : > { %v937_v27 = vrot.slane %v936_v8, 4 }
 0x308   : > { %v929_v29 = vpop.xlane.xlu0 %928 }
 0x309   : > { %v938_v30 = vadd.f32 %v937_v27, %v936_v8  ;;  %v949_v46 = vadd.f32 %v948_v25, %v929_v29 }
 0x30b   : > { %v939_v31 = vrot.slane %v938_v30, 2  ;;  %v950_v6 = vrot.slane %v949_v46, 4 }
 0x30d   : > { %v940_v32 = vadd.f32 %v939_v31, %v938_v30  ;;  %v951_v9 = vadd.f32 %v950_v6, %v949_v46 }
 0x30f   : > { %v941_v34 = vrot.slane %v940_v32, 1  ;;  %v952_v61 = vrot.slane %v951_v9, 2 }
 0x311   : > { %v942_v35 = vadd.f32 %v941_v34, %v940_v32  ;;  %v953_v36 = vadd.f32 %v952_v61, %v951_v9 }
 0x313   : > { %v8377_v4 = vmax.f32 %v942_v35, 1e-12  ;;  %v954_v38 = vrot.slane %v953_v36, 1 }
 0x315   : > { %7833 = vrcp.f32 %v8377_v4  ;;  %v955_v39 = vadd.f32 %v954_v38, %v953_v36  ;;  %vm4236_vm11 = vcmp.eq.f32.partialorder %v8377_v4, inf  ;;  %vm4238_vm12 = vcmp.eq.f32.partialorder %v8377_v4, 0.0 }
 0x317   : > { %v8380_v41 = vmax.f32 %v955_v39, 1e-12 }
 0x319   : > { %7835 = vrcp.f32 %v8380_v41  ;;  %vm4243_vm13 = vcmp.eq.f32.partialorder %v8380_v41, inf  ;;  %vm4245_vm14 = vcmp.eq.f32.partialorder %v8380_v41, 0.0 }
 0x31a   : > { %7837 = vrsqrt.f32 %v8377_v4 }
 0x31b   : > { %7839 = vrsqrt.f32 %v8380_v41 }
 0x322   : > { %v7834_v53 = vpop.eup %7833 }
 0x323   : > { %v8392_v54 = vmul.f32 %v7834_v53, %v8274_v44  ;;  %v8395_v55 = vmul.f32 %v7834_v53, %v8334_v13  ;;  %v8398_v56 = vmul.f32 %v7834_v53, %v8316_v63  ;;  %v8401_v57 = vmul.f32 %v7834_v53, %v8349_v23 }
 0x324   : > { %v8413_v13 = vmul.f32 %v7834_v53, %v8324_v7  ;;  %v8426_v59 = vmul.f32 %v7834_v53, %v8285_v43  ;;  %v8448_v3 = vmul.f32 %v7834_v53, %v8266_v37  ;;  %v963_v15 = vmul.f32 %v7834_v53, %v8304_v40 }
 0x325   : > { %7106 = vmatprep.mubr.msk.f32.mxu0 %vm881_vm3, %v8392_v54  ;;  %v985_v24 = vsub.f32 %v8386_v50, %v8395_v55  ;;  %v984_v44 = vsub.f32 %v8384_v48, %v8398_v56  ;;  %v983_v58 = vsub.f32 %v8389_v28, %v8401_v57 }
 0x326   : > { %v7836_v63 = vpop.eup %7835  ;;  %v982_v43 = vsub.f32 %v8404_v5, %v8413_v13  ;;  %v981_v37 = vsub.f32 %v8416_v2, %v8426_v59  ;;  %v980_v19 = vsub.f32 %v8429_v1, %v8448_v3  ;;  %v979_v22 = vsub.f32 %v8459_v12, %v963_v15 }
 0x327   : > { %v8418_v23 = vmul.f32 0.5, %v985_v24  ;;  %v8421_v62 = vmul.f32 %v7836_v63, %v8290_v11  ;;  %v8432_v7 = vmul.f32 %v7836_v63, %v8357_v0  ;;  %v8435_v49 = vmul.f32 %v7836_v63, %v8340_v18 }
 0x328   : > { %v8440_v11 = vmul.f32 0.5, %v984_v44  ;;  %v8445_v45 = vmul.f32 %v7836_v63, %v8360_v26  ;;  %v8456_v33 = vmul.f32 %v7836_v63, %v8344_v20  ;;  %v8462_v26 = vmul.f32 0.5, %v983_v58 }
 0x329   : > { %7090 = vmatprep.subr.mxu0 %v8418_v23  ;;  %7134 = vmatprep.mubr.msk.f32.mxu1 %vm881_vm3, %v8421_v62  ;;  %v993_v18 = vsub.f32 %v8386_v50, %v8432_v7  ;;  %v992_v0 = vsub.f32 %v8384_v48, %v8435_v49  ;;  %v973_v16 = vmul.f32 %v7836_v63, %v8299_v52  ;;  %v8477_v17 = vmul.f32 0.5, %v982_v43 }
 0x32a   : > { %7091 = vmatpush3.msra.mxu0 %v8418_v23  ;;  %v991_v20 = vsub.f32 %v8389_v28, %v8445_v45  ;;  %v990_v21 = vsub.f32 %v8404_v5, %v8456_v33  ;;  %v972_v52 = vmul.f32 %v7836_v63, %v8278_v42  ;;  %v8490_v47 = vmul.f32 0.5, %v981_v37 }
 0x32b   : > { %7092 = vmatprep.subr.mxu0 %v8440_v11  ;;  %v8468_v14 = vmul.f32 0.5, %v993_v18  ;;  %v8483_v40 = vmul.f32 0.5, %v992_v0  ;;  %v989_v25 = vsub.f32 %v8416_v2, %v973_v16  ;;  %v971_v27 = vmul.f32 %v7836_v63, %v8314_v60 }
 0x32c   : > { %7093 = vmatpush3.msra.mxu0 %v8440_v11  ;;  %v8495_v8 = vmul.f32 0.5, %v991_v20  ;;  %v978_v42 = vsub.f32 %v8474_v51, %v8392_v54  ;;  %v8503_v29 = vmul.f32 0.5, %v980_v19  ;;  %v8507_v30 = vmul.f32 0.5, %v990_v21 }
 0x32d   : > { %7094 = vmatprep.subr.mxu0 %v8462_v26  ;;  %7118 = vmatprep.subr.mxu1 %v8468_v14  ;;  %v988_v46 = vsub.f32 %v8429_v1, %v972_v52  ;;  %v8512_v60 = vmul.f32 0.5, %v979_v22  ;;  %v8516_v31 = vmul.f32 0.5, %v989_v25  ;;  %v987_v6 = vsub.f32 %v8459_v12, %v971_v27 }
 0x32e   : > { %7095 = vmatpush3.msra.mxu0 %v8462_v26  ;;  %7119 = vmatpush3.msra.mxu1 %v8468_v14  ;;  %v8519_v32 = vmul.f32 0.5, %v978_v42  ;;  %v986_v9 = vsub.f32 %v8474_v51, %v8421_v62 }
 0x32f   : > { %7096 = vmatprep.subr.mxu0 %v8477_v17  ;;  %7120 = vmatprep.subr.mxu1 %v8483_v40  ;;  %v8527_v34 = vmul.f32 0.5, %v988_v46  ;;  %v8533_v61 = vmul.f32 0.5, %v987_v6 }
 0x330   : > { %7097 = vmatpush3.msra.mxu0 %v8477_v17  ;;  %7121 = vmatpush3.msra.mxu1 %v8483_v40  ;;  %v8537_v35 = vmul.f32 0.5, %v986_v9 }
 0x331   : > { %7098 = vmatprep.subr.mxu0 %v8490_v47  ;;  %7122 = vmatprep.subr.mxu1 %v8495_v8 }
 0x332   : > { %7099 = vmatpush3.msra.mxu0 %v8490_v47  ;;  %7123 = vmatpush3.msra.mxu1 %v8495_v8 }
 0x333   : > { %7100 = vmatprep.subr.mxu0 %v8503_v29  ;;  %7124 = vmatprep.subr.mxu1 %v8507_v30 }
 0x334   : > { %7101 = vmatpush3.msra.mxu0 %v8503_v29  ;;  %7125 = vmatpush3.msra.mxu1 %v8507_v30 }
 0x335   : > { %7102 = vmatprep.subr.mxu0 %v8512_v60  ;;  %7126 = vmatprep.subr.mxu1 %v8516_v31 }
 0x336   : > { %7103 = vmatpush3.msra.mxu0 %v8512_v60  ;;  %7127 = vmatpush3.msra.mxu1 %v8516_v31 }
 0x337   : > { %7104 = vmatprep.subr.mxu0 %v8519_v32  ;;  %7128 = vmatprep.subr.mxu1 %v8527_v34 }
 0x338   : > { %7105 = vmatpush3.msra.mxu0 %v8519_v32  ;;  %7129 = vmatpush3.msra.mxu1 %v8527_v34 }
 0x339   : > { %7107 = vmatmul.mubr.msk.f32.vlgmr.msra.gmra.mxu0 %vm881_vm3, %v963_v15  ;;  %7130 = vmatprep.subr.mxu1 %v8533_v61 }
 0x33a   : > { %7109 = vmatprep.mubr.msk.f32.mxu0 %vm881_vm3, %v8448_v3  ;;  %7131 = vmatpush3.msra.mxu1 %v8533_v61 }
 0x33b   : > { %7132 = vmatprep.subr.mxu1 %v8537_v35 }
 0x33c   : > { %7133 = vmatpush3.msra.mxu1 %v8537_v35 }
 0x33d   : > { %7110 = vmatmul.mubr.msk.f32.gmra.mxu0 %vm881_vm3, %v8426_v59  ;;  %7135 = vmatmul.mubr.msk.f32.vlgmr.msra.gmra.mxu1 %vm881_vm3, %v971_v27 }
 0x33e   : > { %7112 = vmatprep.mubr.msk.f32.mxu0 %vm881_vm3, %v8413_v13  ;;  %7137 = vmatprep.mubr.msk.f32.mxu1 %vm881_vm3, %v972_v52 }
 0x341   : > { %7113 = vmatmul.mubr.msk.f32.gmra.mxu0 %vm881_vm3, %v8401_v57  ;;  %7138 = vmatmul.mubr.msk.f32.gmra.mxu1 %vm881_vm3, %v973_v16 }
 0x342   : > { %7115 = vmatprep.mubr.msk.f32.mxu0 %vm881_vm3, %v8398_v56  ;;  %7140 = vmatprep.mubr.msk.f32.mxu1 %vm881_vm3, %v8456_v33 }
 0x345   : > { %7116 = vmatmul.mubr.msk.f32.gmra.mxu0 %vm881_vm3, %v8395_v55  ;;  %7141 = vmatmul.mubr.msk.f32.gmra.mxu1 %vm881_vm3, %v8445_v45 }
 0x346   : > { %7162 = vmatprep.mubr.msk.f32.mxu0 %vm881_vm3, %v8519_v32  ;;  %7143 = vmatprep.mubr.msk.f32.mxu1 %vm881_vm3, %v8435_v49 }
 0x349   : > { %7144 = vmatmul.mubr.msk.f32.gmra.mxu1 %vm881_vm3, %v8432_v7 }
 0x34a   : > { %7190 = vmatprep.mubr.msk.f32.mxu1 %vm881_vm3, %v8537_v35 }
 0x3f9   : > { %v8570_v36 = vpop.f32.mrf.mxu0 }
 0x3fb   : > { %v1100_v38 = vpop.f32.mrf.mxu0 }
 0x3fd   : > { %v8572_v39 = vpop.f32.mrf.mxu0  ;;  %v8574_v53 = vpop.f32.mrf.mxu1 }
 0x3ff   : > { %v8576_v54 = vpop.f32.mrf.mxu0  ;;  %v1229_v55 = vpop.f32.mrf.mxu1 }
 0x401   : > { %v8578_v56 = vpop.f32.mrf.mxu0  ;;  %v8580_v57 = vpop.f32.mrf.mxu1 }
 0x403   : > { %v8582_v24 = vpop.f32.mrf.mxu0  ;;  %v8584_v44 = vpop.f32.mrf.mxu1 }
 0x405   : > { %v8586_v13 = vpop.f32.mrf.mxu0  ;;  %v8588_v63 = vpop.f32.mrf.mxu1 }
 0x406   : > { %7146 = vmatprep.subr.mxu0 %v8586_v13 }
 0x407   : > { %v8591_v62 = vpop.f32.mrf.mxu0  ;;  %7147 = vmatpush3.msra.mxu0 %v8586_v13  ;;  %v8594_v58 = vpop.f32.mrf.mxu1 }
 0x408   : > { %7148 = vmatprep.subr.mxu0 %v8591_v62 }
 0x409   : > { %7149 = vmatpush3.msra.mxu0 %v8591_v62  ;;  %v8598_v59 = vpop.f32.mrf.mxu1 }
 0x40a   : > { %7150 = vmatprep.subr.mxu0 %v8578_v56  ;;  %7174 = vmatprep.subr.mxu1 %v8598_v59 }
 0x40b   : > { %7151 = vmatpush3.msra.mxu0 %v8578_v56  ;;  %v8603_v7 = vpop.f32.mrf.mxu1  ;;  %7175 = vmatpush3.msra.mxu1 %v8598_v59 }
 0x40c   : > { %7152 = vmatprep.subr.mxu0 %v8582_v24  ;;  %7176 = vmatprep.subr.mxu1 %v8603_v7 }
 0x40d   : > { %7153 = vmatpush3.msra.mxu0 %v8582_v24  ;;  %7177 = vmatpush3.msra.mxu1 %v8603_v7 }
 0x40e   : > { %7154 = vmatprep.subr.mxu0 %v8572_v39  ;;  %7178 = vmatprep.subr.mxu1 %v8588_v63 }
 0x40f   : > { %7155 = vmatpush3.msra.mxu0 %v8572_v39  ;;  %7179 = vmatpush3.msra.mxu1 %v8588_v63 }
 0x410   : > { %7156 = vmatprep.subr.mxu0 %v8576_v54  ;;  %7180 = vmatprep.subr.mxu1 %v8594_v58 }
 0x411   : > { %7157 = vmatpush3.msra.mxu0 %v8576_v54  ;;  %7181 = vmatpush3.msra.mxu1 %v8594_v58 }
 0x412   : > { %7158 = vmatprep.subr.mxu0 %v8570_v36  ;;  %7182 = vmatprep.subr.mxu1 %v8580_v57 }
 0x413   : > { %7159 = vmatpush3.msra.mxu0 %v8570_v36  ;;  %7183 = vmatpush3.msra.mxu1 %v8580_v57 }
 0x414   : > { %7160 = vmatprep.subr.mxu0 %v1100_v38  ;;  %7184 = vmatprep.subr.mxu1 %v8584_v44 }
 0x415   : > { %7161 = vmatpush3.msra.mxu0 %v1100_v38  ;;  %7185 = vmatpush3.msra.mxu1 %v8584_v44 }
 0x416   : > { %7163 = vmatmul.mubr.msk.f32.vlgmr.msra.gmra.mxu0 %vm881_vm3, %v8512_v60  ;;  %7186 = vmatprep.subr.mxu1 %v8574_v53 }
 0x417   : > { %7165 = vmatprep.mubr.msk.f32.mxu0 %vm881_vm3, %v8503_v29  ;;  %7187 = vmatpush3.msra.mxu1 %v8574_v53 }
 0x418   : > { %7188 = vmatprep.subr.mxu1 %v1229_v55 }
 0x419   : > { %7189 = vmatpush3.msra.mxu1 %v1229_v55 }
 0x41a   : > { %7166 = vmatmul.mubr.msk.f32.gmra.mxu0 %vm881_vm3, %v8490_v47  ;;  %7191 = vmatmul.mubr.msk.f32.vlgmr.msra.gmra.mxu1 %vm881_vm3, %v8533_v61 }
 0x41b   : > { %7168 = vmatprep.mubr.msk.f32.mxu0 %vm881_vm3, %v8477_v17  ;;  %7193 = vmatprep.mubr.msk.f32.mxu1 %vm881_vm3, %v8527_v34 }
 0x41e   : > { %7169 = vmatmul.mubr.msk.f32.gmra.mxu0 %vm881_vm3, %v8462_v26  ;;  %7194 = vmatmul.mubr.msk.f32.gmra.mxu1 %vm881_vm3, %v8516_v31 }
 0x41f   : > { %7171 = vmatprep.mubr.msk.f32.mxu0 %vm881_vm3, %v8440_v11  ;;  %7196 = vmatprep.mubr.msk.f32.mxu1 %vm881_vm3, %v8507_v30 }
 0x422   : > { %7172 = vmatmul.mubr.msk.f32.gmra.mxu0 %vm881_vm3, %v8418_v23  ;;  %7197 = vmatmul.mubr.msk.f32.gmra.mxu1 %vm881_vm3, %v8495_v8 }
 0x423   : > { %7218 = vmatprep.mubr.msk.f32.mxu0 %vm881_vm3, %v1100_v38  ;;  %7199 = vmatprep.mubr.msk.f32.mxu1 %vm881_vm3, %v8483_v40 }
 0x426   : > { %7200 = vmatmul.mubr.msk.f32.gmra.mxu1 %vm881_vm3, %v8468_v14 }
 0x427   : > { %7246 = vmatprep.mubr.msk.f32.mxu1 %vm881_vm3, %v1229_v55 }
 0x4d6   : > { %v7164_v49 = vpop.f32.mrf.mxu0 }
 0x4d8   : > { %v1358_v43 = vpop.f32.mrf.mxu0 }
 0x4da   : > { %v7167_v45 = vpop.f32.mrf.mxu0  ;;  %v8656_v3 = vpop.f32.mrf.mxu1 }
 0x4db   : > { %v1529_v55 = vsub.f32 %v8416_v2, %v7167_v45 }
 0x4dc   : > { %v1368_v18 = vpop.f32.mrf.mxu0  ;;  %v8658_v0 = vpop.f32.mrf.mxu1 }
 0x4de   : > { %v7170_v33 = vpop.f32.mrf.mxu0  ;;  %v7195_v37 = vpop.f32.mrf.mxu1 }
 0x4df   : > { %v1531_v22 = vsub.f32 %v8389_v28, %v7170_v33 }
 0x4e0   : > { %v1378_v15 = vpop.f32.mrf.mxu0  ;;  %v1497_v20 = vpop.f32.mrf.mxu1 }
 0x4e1   : > { %v1530_v46 = vsub.f32 %v8404_v5, %v1378_v15 }
 0x4e2   : > { %v7173_v16 = vpop.f32.mrf.mxu0  ;;  %v7198_v21 = vpop.f32.mrf.mxu1 }
 0x4e3   : > { %v1533_v19 = vsub.f32 %v8386_v50, %v7173_v16  ;;  %v8672_v16 = vmul.f32 0.5, %v1531_v22 }
 0x4e4   : > { %v1388_v52 = vpop.f32.mrf.mxu0  ;;  %v1507_v42 = vpop.f32.mrf.mxu1 }
 0x4e5   : > { %v8662_v25 = vmul.f32 0.5, %v1533_v19  ;;  %v1532_v27 = vsub.f32 %v8384_v48, %v1388_v52  ;;  %v1539_v19 = vsub.f32 %v8389_v28, %v7198_v21  ;;  %v1538_v45 = vsub.f32 %v8404_v5, %v1507_v42 }
 0x4e6   : > { %v7201_v9 = vpop.f32.mrf.mxu1  ;;  %v1527_v21 = vsub.f32 %v8459_v12, %v7164_v49  ;;  %v1526_v42 = vsub.f32 %v8474_v51, %v1358_v43  ;;  %v1536_v49 = vsub.f32 %v8429_v1, %v1497_v20  ;;  %v1535_v43 = vsub.f32 %v8459_v12, %v8656_v3 }
 0x4e7   : > { %v8666_v6 = vmul.f32 0.5, %v1532_v27  ;;  %7202 = vmatprep.subr.mxu0 %v8662_v25  ;;  %v1541_v38 = vsub.f32 %v8386_v50, %v7201_v9  ;;  %v1528_v27 = vsub.f32 %v8429_v1, %v1368_v18  ;;  %v8681_v9 = vmul.f32 0.5, %v1530_v46 }
 0x4e8   : > { %7203 = vmatpush3.msra.mxu0 %v8662_v25  ;;  %v1517_v33 = vpop.f32.mrf.mxu1  ;;  %v1537_v18 = vsub.f32 %v8416_v2, %v7195_v37  ;;  %v8695_v46 = vmul.f32 0.5, %v1539_v19  ;;  %v8709_v37 = vmul.f32 0.5, %v1527_v21  ;;  %v1542_v20 = vmul.f32 0.5, %v1526_v42 }
 0x4e9   : > { %7204 = vmatprep.subr.mxu0 %v8666_v6  ;;  %v8676_v52 = vmul.f32 0.5, %v1541_v38  ;;  %v1540_v15 = vsub.f32 %v8384_v48, %v1517_v33  ;;  %v8690_v38 = vmul.f32 0.5, %v1529_v55  ;;  %v8700_v33 = vmul.f32 0.5, %v1528_v27 }
 0x4ea   : > { %7205 = vmatpush3.msra.mxu0 %v8666_v6  ;;  %v8705_v55 = vmul.f32 0.5, %v1538_v45  ;;  %v8715_v19 = vmul.f32 0.5, %v1537_v18  ;;  %v8723_v27 = vmul.f32 0.5, %v1536_v49  ;;  %v1551_v3 = vmul.f32 0.5, %v1535_v43 }
 0x4eb   : > { %7206 = vmatprep.subr.mxu0 %v8672_v16  ;;  %v8685_v22 = vmul.f32 0.5, %v1540_v15  ;;  %7230 = vmatprep.subr.mxu1 %v8676_v52  ;;  %v1534_v15 = vsub.f32 %v8474_v51, %v8658_v0 }
 0x4ec   : > { %7207 = vmatpush3.msra.mxu0 %v8672_v16  ;;  %7231 = vmatpush3.msra.mxu1 %v8676_v52 }
 0x4ed   : > { %7208 = vmatprep.subr.mxu0 %v8681_v9  ;;  %7232 = vmatprep.subr.mxu1 %v8685_v22  ;;  %v1550_v45 = vmul.f32 0.5, %v1534_v15 }
 0x4ee   : > { %7209 = vmatpush3.msra.mxu0 %v8681_v9  ;;  %7233 = vmatpush3.msra.mxu1 %v8685_v22 }
 0x4ef   : > { %7210 = vmatprep.subr.mxu0 %v8690_v38  ;;  %7234 = vmatprep.subr.mxu1 %v8695_v46 }
 0x4f0   : > { %7211 = vmatpush3.msra.mxu0 %v8690_v38  ;;  %7235 = vmatpush3.msra.mxu1 %v8695_v46 }
 0x4f1   : > { %7212 = vmatprep.subr.mxu0 %v8700_v33  ;;  %7236 = vmatprep.subr.mxu1 %v8705_v55 }
 0x4f2   : > { %7213 = vmatpush3.msra.mxu0 %v8700_v33  ;;  %7237 = vmatpush3.msra.mxu1 %v8705_v55 }
 0x4f3   : > { %7214 = vmatprep.subr.mxu0 %v8709_v37  ;;  %7238 = vmatprep.subr.mxu1 %v8715_v19 }
 0x4f4   : > { %7215 = vmatpush3.msra.mxu0 %v8709_v37  ;;  %7239 = vmatpush3.msra.mxu1 %v8715_v19 }
 0x4f5   : > { %7216 = vmatprep.subr.mxu0 %v1542_v20  ;;  %7240 = vmatprep.subr.mxu1 %v8723_v27 }
 0x4f6   : > { %7217 = vmatpush3.msra.mxu0 %v1542_v20  ;;  %7241 = vmatpush3.msra.mxu1 %v8723_v27 }
 0x4f7   : > { %7219 = vmatmul.mubr.msk.f32.vlgmr.msra.gmra.mxu0 %vm881_vm3, %v8570_v36  ;;  %7242 = vmatprep.subr.mxu1 %v1551_v3 }
 0x4f8   : > { %7258 = vmatprep.subr.mxu0 %v8418_v23  ;;  %7221 = vmatprep.mubr.msk.f32.mxu0 %vm881_vm3, %v8576_v54 }
 0x4f9   : > { %7243 = vmatpush3.msra.mxu1 %v1551_v3  ;;  %7259 = vmatpush3.msra.mxu0 %v8418_v23 }
 0x4fa   : > { %7244 = vmatprep.subr.mxu1 %v1550_v45  ;;  %7260 = vmatprep.subr.mxu0 %v8440_v11 }
 0x4fb   : > { %7245 = vmatpush3.msra.mxu1 %v1550_v45  ;;  %7261 = vmatpush3.msra.mxu0 %v8440_v11 }
 0x4fc   : > { %7247 = vmatmul.mubr.msk.f32.vlgmr.msra.gmra.mxu1 %vm881_vm3, %v8574_v53  ;;  %7222 = vmatmul.mubr.msk.f32.gmra.mxu0 %vm881_vm3, %v8572_v39 }
 0x4fd   : > { %7262 = vmatprep.subr.mxu0 %v8462_v26  ;;  %7286 = vmatprep.subr.mxu1 %v8468_v14 }
 0x4fe   : > { %7224 = vmatprep.mubr.msk.f32.mxu0 %vm881_vm3, %v8582_v24  ;;  %7249 = vmatprep.mubr.msk.f32.mxu1 %vm881_vm3, %v8584_v44 }
 0x4ff   : > { %7263 = vmatpush3.msra.mxu0 %v8462_v26  ;;  %7287 = vmatpush3.msra.mxu1 %v8468_v14 }
 0x500   : > { %7264 = vmatprep.subr.mxu0 %v8477_v17  ;;  %7288 = vmatprep.subr.mxu1 %v8483_v40 }
 0x501   : > { %7265 = vmatpush3.msra.mxu0 %v8477_v17  ;;  %7289 = vmatpush3.msra.mxu1 %v8483_v40 }
 0x502   : > { %7225 = vmatmul.mubr.msk.f32.gmra.mxu0 %vm881_vm3, %v8578_v56  ;;  %7250 = vmatmul.mubr.msk.f32.gmra.mxu1 %vm881_vm3, %v8580_v57 }
 0x503   : > { %7266 = vmatprep.subr.mxu0 %v8490_v47  ;;  %7290 = vmatprep.subr.mxu1 %v8495_v8 }
 0x504   : > { %7227 = vmatprep.mubr.msk.f32.mxu0 %vm881_vm3, %v8591_v62  ;;  %7252 = vmatprep.mubr.msk.f32.mxu1 %vm881_vm3, %v8594_v58 }
 0x505   : > { %7267 = vmatpush3.msra.mxu0 %v8490_v47  ;;  %7291 = vmatpush3.msra.mxu1 %v8495_v8 }
 0x506   : > { %7268 = vmatprep.subr.mxu0 %v8503_v29  ;;  %7292 = vmatprep.subr.mxu1 %v8507_v30 }
 0x507   : > { %7269 = vmatpush3.msra.mxu0 %v8503_v29  ;;  %7293 = vmatpush3.msra.mxu1 %v8507_v30 }
 0x508   : > { %7228 = vmatmul.mubr.msk.f32.gmra.mxu0 %vm881_vm3, %v8586_v13  ;;  %7253 = vmatmul.mubr.msk.f32.gmra.mxu1 %vm881_vm3, %v8588_v63 }
 0x509   : > { %7270 = vmatprep.subr.mxu0 %v8512_v60  ;;  %7294 = vmatprep.subr.mxu1 %v8516_v31 }
 0x50a   : > { %7255 = vmatprep.mubr.msk.f32.mxu1 %vm881_vm3, %v8603_v7  ;;  %7271 = vmatpush3.msra.mxu0 %v8512_v60 }
 0x50b   : > { %7274 = vmatprep.mubr.msk.f32.mxu0 %vm881_vm3, %v1542_v20  ;;  %7295 = vmatpush3.msra.mxu1 %v8516_v31 }
 0x50c   : > { %7272 = vmatprep.subr.mxu0 %v8519_v32  ;;  %7296 = vmatprep.subr.mxu1 %v8527_v34 }
 0x50d   : > { %7273 = vmatpush3.msra.mxu0 %v8519_v32  ;;  %7297 = vmatpush3.msra.mxu1 %v8527_v34 }
 0x50e   : > { %7275 = vmatmul.mubr.msk.f32.vlgmr.msra.gmra.mxu0 %vm881_vm3, %v8709_v37  ;;  %7256 = vmatmul.mubr.msk.f32.gmra.mxu1 %vm881_vm3, %v8598_v59 }
 0x50f   : > { %7298 = vmatprep.subr.mxu1 %v8533_v61  ;;  %7277 = vmatprep.mubr.msk.f32.mxu0 %vm881_vm3, %v8700_v33 }
 0x510   : > { %7299 = vmatpush3.msra.mxu1 %v8533_v61  ;;  %7302 = vmatprep.mubr.msk.f32.mxu1 %vm881_vm3, %v1550_v45 }
 0x511   : > { %7300 = vmatprep.subr.mxu1 %v8537_v35 }
 0x512   : > { %7301 = vmatpush3.msra.mxu1 %v8537_v35  ;;  %7278 = vmatmul.mubr.msk.f32.gmra.mxu0 %vm881_vm3, %v8690_v38 }
 0x513   : > { %7303 = vmatmul.mubr.msk.f32.vlgmr.msra.gmra.mxu1 %vm881_vm3, %v1551_v3  ;;  %7280 = vmatprep.mubr.msk.f32.mxu0 %vm881_vm3, %v8681_v9 }
 0x514   : > { %7305 = vmatprep.mubr.msk.f32.mxu1 %vm881_vm3, %v8723_v27 }
 0x516   : > { %7281 = vmatmul.mubr.msk.f32.gmra.mxu0 %vm881_vm3, %v8672_v16 }
 0x517   : > { %7306 = vmatmul.mubr.msk.f32.gmra.mxu1 %vm881_vm3, %v8715_v19  ;;  %7283 = vmatprep.mubr.msk.f32.mxu0 %vm881_vm3, %v8666_v6 }
 0x518   : > { %7308 = vmatprep.mubr.msk.f32.mxu1 %vm881_vm3, %v8705_v55 }
 0x51a   : > { %7284 = vmatmul.mubr.msk.f32.gmra.mxu0 %vm881_vm3, %v8662_v25 }
 0x51b   : > { %7309 = vmatmul.mubr.msk.f32.gmra.mxu1 %vm881_vm3, %v8695_v46 }
 0x51c   : > { %7311 = vmatprep.mubr.msk.f32.mxu1 %vm881_vm3, %v8685_v22 }
 0x51f   : > { %7312 = vmatmul.mubr.msk.f32.gmra.mxu1 %vm881_vm3, %v8676_v52 }
 0x5b7   : > { %v8819_v23 = vpop.f32.mrf.mxu0 }
 0x5b9   : > { %v8821_v11 = vpop.f32.mrf.mxu0 }
 0x5bc   : > { %v8823_v26 = vpop.f32.mrf.mxu1  ;;  %v8825_v14 = vpop.f32.mrf.mxu0 }
 0x5be   : > { %v8827_v17 = vpop.f32.mrf.mxu0  ;;  %v8829_v40 = vpop.f32.mrf.mxu1 }
 0x5c2   : > { %v8831_v47 = vpop.f32.mrf.mxu0  ;;  %v8833_v8 = vpop.f32.mrf.mxu1 }
 0x5c4   : > { %v8835_v29 = vpop.f32.mrf.mxu0  ;;  %v8837_v30 = vpop.f32.mrf.mxu1 }
 0x5c8   : > { %v8839_v60 = vpop.f32.mrf.mxu0  ;;  %v8841_v31 = vpop.f32.mrf.mxu1 }
 0x5c9   : > { %7314 = vmatprep.subr.mxu0 %v8839_v60 }
 0x5ca   : > { %v8844_v32 = vpop.f32.mrf.mxu0  ;;  %7315 = vmatpush3.msra.mxu0 %v8839_v60  ;;  %v8847_v34 = vpop.f32.mrf.mxu1 }
 0x5cb   : > { %7316 = vmatprep.subr.mxu0 %v8844_v32 }
 0x5cc   : > { %7317 = vmatpush3.msra.mxu0 %v8844_v32 }
 0x5cd   : > { %7318 = vmatprep.subr.mxu0 %v8831_v47 }
 0x5ce   : > { %v8852_v61 = vpop.f32.mrf.mxu0  ;;  %7319 = vmatpush3.msra.mxu0 %v8831_v47  ;;  %v8855_v35 = vpop.f32.mrf.mxu1 }
 0x5cf   : > { %7320 = vmatprep.subr.mxu0 %v8835_v29  ;;  %7342 = vmatprep.subr.mxu1 %v8855_v35 }
 0x5d0   : > { %v8859_v36 = vpop.f32.mrf.mxu0  ;;  %7321 = vmatpush3.msra.mxu0 %v8835_v29  ;;  %v8862_v39 = vpop.f32.mrf.mxu1  ;;  %7343 = vmatpush3.msra.mxu1 %v8855_v35 }
 0x5d1   : > { %7330 = vmatprep.mubr.msk.f32.mxu0 %vm881_vm3, %v8859_v36  ;;  %7344 = vmatprep.subr.mxu1 %v8862_v39 }
 0x5d2   : > { %v8868_v53 = vpop.f32.mrf.mxu0  ;;  %7322 = vmatprep.subr.mxu0 %v8825_v14  ;;  %7345 = vmatpush3.msra.mxu1 %v8862_v39 }
 0x5d3   : > { %v8871_v54 = vpop.f32.mrf.mxu1  ;;  %7323 = vmatpush3.msra.mxu0 %v8825_v14  ;;  %7346 = vmatprep.subr.mxu1 %v8841_v31 }
 0x5d4   : > { %v8876_v56 = vpop.f32.mrf.mxu0  ;;  %7324 = vmatprep.subr.mxu0 %v8827_v17  ;;  %7347 = vmatpush3.msra.mxu1 %v8841_v31 }
 0x5d5   : > { %v8879_v57 = vpop.f32.mrf.mxu1  ;;  %7325 = vmatpush3.msra.mxu0 %v8827_v17  ;;  %7348 = vmatprep.subr.mxu1 %v8847_v34 }
 0x5d6   : > { %7358 = vmatprep.mubr.msk.f32.mxu1 %vm881_vm3, %v8879_v57  ;;  %v8886_v24 = vpop.f32.mrf.mxu0  ;;  %7349 = vmatpush3.msra.mxu1 %v8847_v34 }
 0x5d7   : > { %v8888_v44 = vpop.f32.mrf.mxu1  ;;  %7326 = vmatprep.subr.mxu0 %v8819_v23  ;;  %7350 = vmatprep.subr.mxu1 %v8833_v8 }
 0x5d8   : > { %7327 = vmatpush3.msra.mxu0 %v8819_v23  ;;  %7351 = vmatpush3.msra.mxu1 %v8833_v8  ;;  %v8900_v63 = vpop.f32.mrf.mxu0 }
 0x5d9   : > { %v8894_v13 = vpop.f32.mrf.mxu1  ;;  %7328 = vmatprep.subr.mxu0 %v8821_v11  ;;  %7352 = vmatprep.subr.mxu1 %v8837_v30 }
 0x5da   : > { %7329 = vmatpush3.msra.mxu0 %v8821_v11  ;;  %7353 = vmatpush3.msra.mxu1 %v8837_v30  ;;  %v8912_v58 = vpop.f32.mrf.mxu0 }
 0x5db   : > { %7331 = vmatmul.mubr.msk.f32.vlgmr.msra.gmra.mxu0 %vm881_vm3, %v8852_v61  ;;  %v8905_v62 = vpop.f32.mrf.mxu1  ;;  %7354 = vmatprep.subr.mxu1 %v8823_v26 }
 0x5dc   : > { %7333 = vmatprep.mubr.msk.f32.mxu0 %vm881_vm3, %v8876_v56  ;;  %7355 = vmatpush3.msra.mxu1 %v8823_v26  ;;  %v8925_v7 = vpop.f32.mrf.mxu0 }
 0x5dd   : > { %7356 = vmatprep.subr.mxu1 %v8829_v40  ;;  %v8917_v59 = vpop.f32.mrf.mxu1 }
 0x5de   : > { %7357 = vmatpush3.msra.mxu1 %v8829_v40 }
 0x5df   : > { %7334 = vmatmul.mubr.msk.f32.gmra.mxu0 %vm881_vm3, %v8868_v53  ;;  %7359 = vmatmul.mubr.msk.f32.vlgmr.msra.gmra.mxu1 %vm881_vm3, %v8871_v54  ;;  %v8929_v0 = vpop.f32.mrf.mxu1 }
 0x5e0   : > { %7336 = vmatprep.mubr.msk.f32.mxu0 %vm881_vm3, %v8900_v63  ;;  %7361 = vmatprep.mubr.msk.f32.mxu1 %vm881_vm3, %v8894_v13 }
 0x5e1   : > { %v8939_v25 = vpop.f32.mrf.mxu1 }
 0x5e3   : > { %7337 = vmatmul.mubr.msk.f32.gmra.mxu0 %vm881_vm3, %v8886_v24  ;;  %7362 = vmatmul.mubr.msk.f32.gmra.mxu1 %vm881_vm3, %v8888_v44 }
 0x5e4   : > { %7339 = vmatprep.mubr.msk.f32.mxu0 %vm881_vm3, %v8925_v7  ;;  %7364 = vmatprep.mubr.msk.f32.mxu1 %vm881_vm3, %v8917_v59 }
 0x5e7   : > { %7340 = vmatmul.mubr.msk.f32.gmra.mxu0 %vm881_vm3, %v8912_v58  ;;  %7365 = vmatmul.mubr.msk.f32.gmra.mxu1 %vm881_vm3, %v8905_v62 }
 0x5e8   : > { %7386 = vmatprep.mubr.msk.f32.mxu0 %vm881_vm3, %v8821_v11  ;;  %7367 = vmatprep.mubr.msk.f32.mxu1 %vm881_vm3, %v8939_v25 }
 0x5eb   : > { %7368 = vmatmul.mubr.msk.f32.gmra.mxu1 %vm881_vm3, %v8929_v0 }
 0x5ec   : > { %7414 = vmatprep.mubr.msk.f32.mxu1 %vm881_vm3, %v8829_v40 }
 0x69b   : > { %v7332_v6 = vpop.f32.mrf.mxu0 }
 0x69d   : > { %v2164_v16 = vpop.f32.mrf.mxu0 }
 0x69f   : > { %v7335_v52 = vpop.f32.mrf.mxu0  ;;  %v8951_v9 = vpop.f32.mrf.mxu1 }
 0x6a0   : > { %v2335_v40 = vsub.f32 %v8416_v2, %v7335_v52 }
 0x6a1   : > { %v2174_v22 = vpop.f32.mrf.mxu0  ;;  %v8953_v21 = vpop.f32.mrf.mxu1 }
 0x6a3   : > { %v7338_v38 = vpop.f32.mrf.mxu0  ;;  %v7363_v18 = vpop.f32.mrf.mxu1 }
 0x6a4   : > { %v2337_v43 = vsub.f32 %v8389_v28, %v7338_v38 }
 0x6a5   : > { %v2184_v46 = vpop.f32.mrf.mxu0  ;;  %v2303_v42 = vpop.f32.mrf.mxu1 }
 0x6a6   : > { %v2336_v27 = vsub.f32 %v8404_v5, %v2184_v46 }
 0x6a7   : > { %v7341_v33 = vpop.f32.mrf.mxu0  ;;  %v7366_v55 = vpop.f32.mrf.mxu1 }
 0x6a8   : > { %v2339_v49 = vsub.f32 %v8386_v50, %v7341_v33  ;;  %v8967_v33 = vmul.f32 0.5, %v2337_v43 }
 0x6a9   : > { %v2194_v37 = vpop.f32.mrf.mxu0  ;;  %v2313_v15 = vpop.f32.mrf.mxu1 }
 0x6aa   : > { %v8957_v19 = vmul.f32 0.5, %v2339_v49  ;;  %v2338_v20 = vsub.f32 %v8384_v48, %v2194_v37  ;;  %v2345_v49 = vsub.f32 %v8389_v28, %v7366_v55  ;;  %v2344_v52 = vsub.f32 %v8404_v5, %v2313_v15 }
 0x6ab   : > { %v7369_v45 = vpop.f32.mrf.mxu1  ;;  %v2333_v55 = vsub.f32 %v8459_v12, %v7332_v6  ;;  %v2332_v15 = vsub.f32 %v8474_v51, %v2164_v16  ;;  %v2342_v6 = vsub.f32 %v8429_v1, %v2303_v42  ;;  %v2341_v16 = vsub.f32 %v8459_v12, %v8951_v9 }
 0x6ac   : > { %v8961_v3 = vmul.f32 0.5, %v2338_v20  ;;  %7370 = vmatprep.subr.mxu0 %v8957_v19  ;;  %v2347_v11 = vsub.f32 %v8386_v50, %v7369_v45  ;;  %v2334_v20 = vsub.f32 %v8429_v1, %v2174_v22  ;;  %v8976_v45 = vmul.f32 0.5, %v2336_v27 }
 0x6ad   : > { %7371 = vmatpush3.msra.mxu0 %v8957_v19  ;;  %v2323_v38 = vpop.f32.mrf.mxu1  ;;  %v2343_v22 = vsub.f32 %v8416_v2, %v7363_v18  ;;  %v8990_v27 = vmul.f32 0.5, %v2345_v49  ;;  %v9004_v18 = vmul.f32 0.5, %v2333_v55  ;;  %v2348_v42 = vmul.f32 0.5, %v2332_v15 }
 0x6ae   : > { %7372 = vmatprep.subr.mxu0 %v8961_v3  ;;  %v8971_v37 = vmul.f32 0.5, %v2347_v11  ;;  %v2346_v46 = vsub.f32 %v8384_v48, %v2323_v38  ;;  %v8985_v11 = vmul.f32 0.5, %v2335_v40  ;;  %v8995_v38 = vmul.f32 0.5, %v2334_v20 }
 0x6af   : > { %7373 = vmatpush3.msra.mxu0 %v8961_v3  ;;  %v9000_v40 = vmul.f32 0.5, %v2344_v52  ;;  %v9010_v49 = vmul.f32 0.5, %v2343_v22  ;;  %v9018_v20 = vmul.f32 0.5, %v2342_v6  ;;  %v2357_v9 = vmul.f32 0.5, %v2341_v16 }
 0x6b0   : > { %7374 = vmatprep.subr.mxu0 %v8967_v33  ;;  %v8980_v43 = vmul.f32 0.5, %v2346_v46  ;;  %7398 = vmatprep.subr.mxu1 %v8971_v37  ;;  %v2340_v46 = vsub.f32 %v8474_v51, %v8953_v21 }
 0x6b1   : > { %7375 = vmatpush3.msra.mxu0 %v8967_v33  ;;  %7399 = vmatpush3.msra.mxu1 %v8971_v37 }
 0x6b2   : > { %7376 = vmatprep.subr.mxu0 %v8976_v45  ;;  %7400 = vmatprep.subr.mxu1 %v8980_v43  ;;  %v2356_v52 = vmul.f32 0.5, %v2340_v46 }
 0x6b3   : > { %7377 = vmatpush3.msra.mxu0 %v8976_v45  ;;  %7401 = vmatpush3.msra.mxu1 %v8980_v43 }
 0x6b4   : > { %7378 = vmatprep.subr.mxu0 %v8985_v11  ;;  %7402 = vmatprep.subr.mxu1 %v8990_v27 }
 0x6b5   : > { %7379 = vmatpush3.msra.mxu0 %v8985_v11  ;;  %7403 = vmatpush3.msra.mxu1 %v8990_v27 }
 0x6b6   : > { %7380 = vmatprep.subr.mxu0 %v8995_v38  ;;  %7404 = vmatprep.subr.mxu1 %v9000_v40 }
 0x6b7   : > { %7381 = vmatpush3.msra.mxu0 %v8995_v38  ;;  %7405 = vmatpush3.msra.mxu1 %v9000_v40 }
 0x6b8   : > { %7382 = vmatprep.subr.mxu0 %v9004_v18  ;;  %7406 = vmatprep.subr.mxu1 %v9010_v49 }
 0x6b9   : > { %7383 = vmatpush3.msra.mxu0 %v9004_v18  ;;  %7407 = vmatpush3.msra.mxu1 %v9010_v49 }
 0x6ba   : > { %7384 = vmatprep.subr.mxu0 %v2348_v42  ;;  %7408 = vmatprep.subr.mxu1 %v9018_v20 }
 0x6bb   : > { %7385 = vmatpush3.msra.mxu0 %v2348_v42  ;;  %7409 = vmatpush3.msra.mxu1 %v9018_v20 }
 0x6bc   : > { %7387 = vmatmul.mubr.msk.f32.vlgmr.msra.gmra.mxu0 %vm881_vm3, %v8819_v23  ;;  %7410 = vmatprep.subr.mxu1 %v2357_v9 }
 0x6bd   : > { %7426 = vmatprep.subr.mxu0 %v8912_v58  ;;  %7389 = vmatprep.mubr.msk.f32.mxu0 %vm881_vm3, %v8827_v17 }
 0x6be   : > { %7411 = vmatpush3.msra.mxu1 %v2357_v9  ;;  %7427 = vmatpush3.msra.mxu0 %v8912_v58 }
 0x6bf   : > { %7412 = vmatprep.subr.mxu1 %v2356_v52  ;;  %7428 = vmatprep.subr.mxu0 %v8925_v7 }
 0x6c0   : > { %7413 = vmatpush3.msra.mxu1 %v2356_v52  ;;  %7429 = vmatpush3.msra.mxu0 %v8925_v7 }
 0x6c1   : > { %7415 = vmatmul.mubr.msk.f32.vlgmr.msra.gmra.mxu1 %vm881_vm3, %v8823_v26  ;;  %7390 = vmatmul.mubr.msk.f32.gmra.mxu0 %vm881_vm3, %v8825_v14 }
 0x6c2   : > { %7430 = vmatprep.subr.mxu0 %v8886_v24  ;;  %7454 = vmatprep.subr.mxu1 %v8929_v0 }
 0x6c3   : > { %7392 = vmatprep.mubr.msk.f32.mxu0 %vm881_vm3, %v8835_v29  ;;  %7417 = vmatprep.mubr.msk.f32.mxu1 %vm881_vm3, %v8837_v30 }
 0x6c4   : > { %7431 = vmatpush3.msra.mxu0 %v8886_v24  ;;  %7455 = vmatpush3.msra.mxu1 %v8929_v0 }
 0x6c5   : > { %7432 = vmatprep.subr.mxu0 %v8900_v63  ;;  %7456 = vmatprep.subr.mxu1 %v8939_v25 }
 0x6c6   : > { %7433 = vmatpush3.msra.mxu0 %v8900_v63  ;;  %7457 = vmatpush3.msra.mxu1 %v8939_v25 }
 0x6c7   : > { %7393 = vmatmul.mubr.msk.f32.gmra.mxu0 %vm881_vm3, %v8831_v47  ;;  %7418 = vmatmul.mubr.msk.f32.gmra.mxu1 %vm881_vm3, %v8833_v8 }
 0x6c8   : > { %7434 = vmatprep.subr.mxu0 %v8868_v53  ;;  %7458 = vmatprep.subr.mxu1 %v8905_v62 }
 0x6c9   : > { %7395 = vmatprep.mubr.msk.f32.mxu0 %vm881_vm3, %v8844_v32  ;;  %7420 = vmatprep.mubr.msk.f32.mxu1 %vm881_vm3, %v8847_v34 }
 0x6ca   : > { %7435 = vmatpush3.msra.mxu0 %v8868_v53  ;;  %7459 = vmatpush3.msra.mxu1 %v8905_v62 }
 0x6cb   : > { %7436 = vmatprep.subr.mxu0 %v8876_v56  ;;  %7460 = vmatprep.subr.mxu1 %v8917_v59 }
 0x6cc   : > { %7437 = vmatpush3.msra.mxu0 %v8876_v56  ;;  %7461 = vmatpush3.msra.mxu1 %v8917_v59 }
 0x6cd   : > { %7396 = vmatmul.mubr.msk.f32.gmra.mxu0 %vm881_vm3, %v8839_v60  ;;  %7421 = vmatmul.mubr.msk.f32.gmra.mxu1 %vm881_vm3, %v8841_v31 }
 0x6ce   : > { %7438 = vmatprep.subr.mxu0 %v8852_v61  ;;  %7462 = vmatprep.subr.mxu1 %v8888_v44 }
 0x6cf   : > { %7423 = vmatprep.mubr.msk.f32.mxu1 %vm881_vm3, %v8862_v39  ;;  %7439 = vmatpush3.msra.mxu0 %v8852_v61 }
 0x6d0   : > { %7442 = vmatprep.mubr.msk.f32.mxu0 %vm881_vm3, %v2348_v42  ;;  %7463 = vmatpush3.msra.mxu1 %v8888_v44 }
 0x6d1   : > { %7440 = vmatprep.subr.mxu0 %v8859_v36  ;;  %7464 = vmatprep.subr.mxu1 %v8894_v13 }
 0x6d2   : > { %7441 = vmatpush3.msra.mxu0 %v8859_v36  ;;  %7465 = vmatpush3.msra.mxu1 %v8894_v13 }
 0x6d3   : > { %7443 = vmatmul.mubr.msk.f32.vlgmr.msra.gmra.mxu0 %vm881_vm3, %v9004_v18  ;;  %7424 = vmatmul.mubr.msk.f32.gmra.mxu1 %vm881_vm3, %v8855_v35 }
 0x6d4   : > { %7466 = vmatprep.subr.mxu1 %v8871_v54  ;;  %7445 = vmatprep.mubr.msk.f32.mxu0 %vm881_vm3, %v8995_v38 }
 0x6d5   : > { %7467 = vmatpush3.msra.mxu1 %v8871_v54  ;;  %7470 = vmatprep.mubr.msk.f32.mxu1 %vm881_vm3, %v2356_v52 }
 0x6d6   : > { %7468 = vmatprep.subr.mxu1 %v8879_v57 }
 0x6d7   : > { %7469 = vmatpush3.msra.mxu1 %v8879_v57  ;;  %7446 = vmatmul.mubr.msk.f32.gmra.mxu0 %vm881_vm3, %v8985_v11 }
 0x6d8   : > { %7471 = vmatmul.mubr.msk.f32.vlgmr.msra.gmra.mxu1 %vm881_vm3, %v2357_v9  ;;  %7448 = vmatprep.mubr.msk.f32.mxu0 %vm881_vm3, %v8976_v45 }
 0x6d9   : > { %7473 = vmatprep.mubr.msk.f32.mxu1 %vm881_vm3, %v9018_v20 }
 0x6db   : > { %7449 = vmatmul.mubr.msk.f32.gmra.mxu0 %vm881_vm3, %v8967_v33 }
 0x6dc   : > { %7474 = vmatmul.mubr.msk.f32.gmra.mxu1 %vm881_vm3, %v9010_v49  ;;  %7451 = vmatprep.mubr.msk.f32.mxu0 %vm881_vm3, %v8961_v3 }
 0x6dd   : > { %7476 = vmatprep.mubr.msk.f32.mxu1 %vm881_vm3, %v9000_v40 }
 0x6df   : > { %7452 = vmatmul.mubr.msk.f32.gmra.mxu0 %vm881_vm3, %v8957_v19 }
 0x6e0   : > { %7477 = vmatmul.mubr.msk.f32.gmra.mxu1 %vm881_vm3, %v8990_v27 }
 0x6e1   : > { %7479 = vmatprep.mubr.msk.f32.mxu1 %vm881_vm3, %v8980_v43 }
 0x6e4   : > { %7480 = vmatmul.mubr.msk.f32.gmra.mxu1 %vm881_vm3, %v8971_v37 }
 0x77c   : > { %v9114_v23 = vpop.f32.mrf.mxu0 }
 0x77e   : > { %v9116_v26 = vpop.f32.mrf.mxu0 }
 0x781   : > { %v9118_v14 = vpop.f32.mrf.mxu1  ;;  %v9120_v17 = vpop.f32.mrf.mxu0 }
 0x783   : > { %v9122_v47 = vpop.f32.mrf.mxu0  ;;  %v9124_v8 = vpop.f32.mrf.mxu1 }
 0x787   : > { %v9126_v29 = vpop.f32.mrf.mxu0  ;;  %v9128_v30 = vpop.f32.mrf.mxu1 }
 0x789   : > { %v9130_v60 = vpop.f32.mrf.mxu0  ;;  %v9132_v31 = vpop.f32.mrf.mxu1 }
 0x78d   : > { %v9134_v32 = vpop.f32.mrf.mxu0  ;;  %v9136_v34 = vpop.f32.mrf.mxu1 }
 0x78e   : > { %7482 = vmatprep.subr.mxu0 %v9134_v32 }
 0x78f   : > { %v9139_v61 = vpop.f32.mrf.mxu0  ;;  %7483 = vmatpush3.msra.mxu0 %v9134_v32  ;;  %v9142_v35 = vpop.f32.mrf.mxu1 }
 0x790   : > { %7484 = vmatprep.subr.mxu0 %v9139_v61 }
 0x791   : > { %7485 = vmatpush3.msra.mxu0 %v9139_v61 }
 0x792   : > { %7486 = vmatprep.subr.mxu0 %v9126_v29 }
 0x793   : > { %v9147_v36 = vpop.f32.mrf.mxu0  ;;  %7487 = vmatpush3.msra.mxu0 %v9126_v29  ;;  %v9150_v39 = vpop.f32.mrf.mxu1 }
 0x794   : > { %7488 = vmatprep.subr.mxu0 %v9130_v60  ;;  %7510 = vmatprep.subr.mxu1 %v9150_v39 }
 0x795   : > { %v9154_v53 = vpop.f32.mrf.mxu0  ;;  %7489 = vmatpush3.msra.mxu0 %v9130_v60  ;;  %v9157_v54 = vpop.f32.mrf.mxu1  ;;  %7511 = vmatpush3.msra.mxu1 %v9150_v39 }
 0x796   : > { %7498 = vmatprep.mubr.msk.f32.mxu0 %vm881_vm3, %v9154_v53  ;;  %7512 = vmatprep.subr.mxu1 %v9157_v54 }
 0x797   : > { %v9163_v56 = vpop.f32.mrf.mxu0  ;;  %7490 = vmatprep.subr.mxu0 %v9120_v17  ;;  %7513 = vmatpush3.msra.mxu1 %v9157_v54 }
 0x798   : > { %v9166_v57 = vpop.f32.mrf.mxu1  ;;  %7491 = vmatpush3.msra.mxu0 %v9120_v17  ;;  %7514 = vmatprep.subr.mxu1 %v9136_v34 }
 0x799   : > { %v9171_v24 = vpop.f32.mrf.mxu0  ;;  %7492 = vmatprep.subr.mxu0 %v9122_v47  ;;  %7515 = vmatpush3.msra.mxu1 %v9136_v34 }
 0x79a   : > { %v9174_v44 = vpop.f32.mrf.mxu1  ;;  %7493 = vmatpush3.msra.mxu0 %v9122_v47  ;;  %7516 = vmatprep.subr.mxu1 %v9142_v35 }
 0x79b   : > { %7526 = vmatprep.mubr.msk.f32.mxu1 %vm881_vm3, %v9174_v44  ;;  %v9181_v13 = vpop.f32.mrf.mxu0  ;;  %7517 = vmatpush3.msra.mxu1 %v9142_v35 }
 0x79c   : > { %v9183_v63 = vpop.f32.mrf.mxu1  ;;  %7494 = vmatprep.subr.mxu0 %v9114_v23  ;;  %7518 = vmatprep.subr.mxu1 %v9128_v30 }
 0x79d   : > { %7495 = vmatpush3.msra.mxu0 %v9114_v23  ;;  %7519 = vmatpush3.msra.mxu1 %v9128_v30  ;;  %v9195_v58 = vpop.f32.mrf.mxu0 }
 0x79e   : > { %v9189_v62 = vpop.f32.mrf.mxu1  ;;  %7496 = vmatprep.subr.mxu0 %v9116_v26  ;;  %7520 = vmatprep.subr.mxu1 %v9132_v31 }
 0x79f   : > { %7497 = vmatpush3.msra.mxu0 %v9116_v26  ;;  %7521 = vmatpush3.msra.mxu1 %v9132_v31  ;;  %v9207_v7 = vpop.f32.mrf.mxu0 }
 0x7a0   : > { %7499 = vmatmul.mubr.msk.f32.vlgmr.msra.gmra.mxu0 %vm881_vm3, %v9147_v36  ;;  %v9200_v59 = vpop.f32.mrf.mxu1  ;;  %7522 = vmatprep.subr.mxu1 %v9118_v14 }
 0x7a1   : > { %7501 = vmatprep.mubr.msk.f32.mxu0 %vm881_vm3, %v9171_v24  ;;  %7523 = vmatpush3.msra.mxu1 %v9118_v14  ;;  %v9220_v25 = vpop.f32.mrf.mxu0 }
 0x7a2   : > { %7524 = vmatprep.subr.mxu1 %v9124_v8  ;;  %v9212_v0 = vpop.f32.mrf.mxu1 }
 0x7a3   : > { %7525 = vmatpush3.msra.mxu1 %v9124_v8 }
 0x7a4   : > { %7502 = vmatmul.mubr.msk.f32.gmra.mxu0 %vm881_vm3, %v9163_v56  ;;  %7527 = vmatmul.mubr.msk.f32.vlgmr.msra.gmra.mxu1 %vm881_vm3, %v9166_v57  ;;  %v9224_v21 = vpop.f32.mrf.mxu1 }
 0x7a5   : > { %7504 = vmatprep.mubr.msk.f32.mxu0 %vm881_vm3, %v9195_v58  ;;  %7529 = vmatprep.mubr.msk.f32.mxu1 %vm881_vm3, %v9189_v62 }
 0x7a6   : > { %v9234_v19 = vpop.f32.mrf.mxu1 }
 0x7a8   : > { %7505 = vmatmul.mubr.msk.f32.gmra.mxu0 %vm881_vm3, %v9181_v13  ;;  %7530 = vmatmul.mubr.msk.f32.gmra.mxu1 %vm881_vm3, %v9183_v63 }
 0x7a9   : > { %7507 = vmatprep.mubr.msk.f32.mxu0 %vm881_vm3, %v9220_v25  ;;  %7532 = vmatprep.mubr.msk.f32.mxu1 %vm881_vm3, %v9212_v0 }
 0x7ac   : > { %7508 = vmatmul.mubr.msk.f32.gmra.mxu0 %vm881_vm3, %v9207_v7  ;;  %7533 = vmatmul.mubr.msk.f32.gmra.mxu1 %vm881_vm3, %v9200_v59 }
 0x7ad   : > { %7554 = vmatprep.mubr.msk.f32.mxu0 %vm881_vm3, %v9116_v26  ;;  %7535 = vmatprep.mubr.msk.f32.mxu1 %vm881_vm3, %v9234_v19 }
 0x7b0   : > { %7536 = vmatmul.mubr.msk.f32.gmra.mxu1 %vm881_vm3, %v9224_v21 }
 0x7b1   : > { %7582 = vmatprep.mubr.msk.f32.mxu1 %vm881_vm3, %v9124_v8 }
 0x860   : > { %v7500_v3 = vpop.f32.mrf.mxu0 }
 0x862   : > { %v2970_v33 = vpop.f32.mrf.mxu0 }
 0x864   : > { %v7503_v37 = vpop.f32.mrf.mxu0  ;;  %v9246_v45 = vpop.f32.mrf.mxu1 }
 0x865   : > { %v3141_v8 = vsub.f32 %v8416_v2, %v7503_v37 }
 0x866   : > { %v2980_v43 = vpop.f32.mrf.mxu0  ;;  %v9248_v55 = vpop.f32.mrf.mxu1 }
 0x868   : > { %v7506_v11 = vpop.f32.mrf.mxu0  ;;  %v7531_v22 = vpop.f32.mrf.mxu1 }
 0x869   : > { %v3143_v16 = vsub.f32 %v8389_v28, %v7506_v11 }
 0x86a   : > { %v2990_v27 = vpop.f32.mrf.mxu0  ;;  %v3109_v15 = vpop.f32.mrf.mxu1 }
 0x86b   : > { %v3142_v20 = vsub.f32 %v8404_v5, %v2990_v27 }
 0x86c   : > { %v7509_v38 = vpop.f32.mrf.mxu0  ;;  %v7534_v40 = vpop.f32.mrf.mxu1 }
 0x86d   : > { %v3145_v6 = vsub.f32 %v8386_v50, %v7509_v38  ;;  %v9262_v38 = vmul.f32 0.5, %v3143_v16 }
 0x86e   : > { %v3000_v18 = vpop.f32.mrf.mxu0  ;;  %v3119_v46 = vpop.f32.mrf.mxu1 }
 0x86f   : > { %v9252_v49 = vmul.f32 0.5, %v3145_v6  ;;  %v3144_v42 = vsub.f32 %v8384_v48, %v3000_v18  ;;  %v3151_v6 = vsub.f32 %v8389_v28, %v7534_v40  ;;  %v3150_v37 = vsub.f32 %v8404_v5, %v3119_v46 }
 0x870   : > { %v7537_v52 = vpop.f32.mrf.mxu1  ;;  %v3139_v40 = vsub.f32 %v8459_v12, %v7500_v3  ;;  %v3138_v46 = vsub.f32 %v8474_v51, %v2970_v33  ;;  %v3148_v3 = vsub.f32 %v8429_v1, %v3109_v15  ;;  %v3147_v33 = vsub.f32 %v8459_v12, %v9246_v45 }
 0x871   : > { %v9256_v9 = vmul.f32 0.5, %v3144_v42  ;;  %7538 = vmatprep.subr.mxu0 %v9252_v49  ;;  %v3153_v26 = vsub.f32 %v8386_v50, %v7537_v52  ;;  %v3140_v42 = vsub.f32 %v8429_v1, %v2980_v43  ;;  %v9271_v52 = vmul.f32 0.5, %v3142_v20 }
 0x872   : > { %7539 = vmatpush3.msra.mxu0 %v9252_v49  ;;  %v3129_v11 = vpop.f32.mrf.mxu1  ;;  %v3149_v43 = vsub.f32 %v8416_v2, %v7531_v22  ;;  %v9285_v20 = vmul.f32 0.5, %v3151_v6  ;;  %v9299_v22 = vmul.f32 0.5, %v3139_v40  ;;  %v3154_v15 = vmul.f32 0.5, %v3138_v46 }
 0x873   : > { %7540 = vmatprep.subr.mxu0 %v9256_v9  ;;  %v9266_v18 = vmul.f32 0.5, %v3153_v26  ;;  %v3152_v27 = vsub.f32 %v8384_v48, %v3129_v11  ;;  %v9280_v26 = vmul.f32 0.5, %v3141_v8  ;;  %v9290_v11 = vmul.f32 0.5, %v3140_v42 }
 0x874   : > { %7541 = vmatpush3.msra.mxu0 %v9256_v9  ;;  %v9295_v8 = vmul.f32 0.5, %v3150_v37  ;;  %v9305_v6 = vmul.f32 0.5, %v3149_v43  ;;  %v9313_v42 = vmul.f32 0.5, %v3148_v3  ;;  %v3163_v45 = vmul.f32 0.5, %v3147_v33 }
 0x875   : > { %7542 = vmatprep.subr.mxu0 %v9262_v38  ;;  %v9275_v16 = vmul.f32 0.5, %v3152_v27  ;;  %7566 = vmatprep.subr.mxu1 %v9266_v18  ;;  %v3146_v27 = vsub.f32 %v8474_v51, %v9248_v55 }
 0x876   : > { %7543 = vmatpush3.msra.mxu0 %v9262_v38  ;;  %7567 = vmatpush3.msra.mxu1 %v9266_v18 }
 0x877   : > { %7544 = vmatprep.subr.mxu0 %v9271_v52  ;;  %7568 = vmatprep.subr.mxu1 %v9275_v16  ;;  %v3162_v37 = vmul.f32 0.5, %v3146_v27 }
 0x878   : > { %7545 = vmatpush3.msra.mxu0 %v9271_v52  ;;  %7569 = vmatpush3.msra.mxu1 %v9275_v16 }
 0x879   : > { %7546 = vmatprep.subr.mxu0 %v9280_v26  ;;  %7570 = vmatprep.subr.mxu1 %v9285_v20 }
 0x87a   : > { %7547 = vmatpush3.msra.mxu0 %v9280_v26  ;;  %7571 = vmatpush3.msra.mxu1 %v9285_v20 }
 0x87b   : > { %7548 = vmatprep.subr.mxu0 %v9290_v11  ;;  %7572 = vmatprep.subr.mxu1 %v9295_v8 }
 0x87c   : > { %7549 = vmatpush3.msra.mxu0 %v9290_v11  ;;  %7573 = vmatpush3.msra.mxu1 %v9295_v8 }
 0x87d   : > { %7550 = vmatprep.subr.mxu0 %v9299_v22  ;;  %7574 = vmatprep.subr.mxu1 %v9305_v6 }
 0x87e   : > { %7551 = vmatpush3.msra.mxu0 %v9299_v22  ;;  %7575 = vmatpush3.msra.mxu1 %v9305_v6 }
 0x87f   : > { %7552 = vmatprep.subr.mxu0 %v3154_v15  ;;  %7576 = vmatprep.subr.mxu1 %v9313_v42 }
 0x880   : > { %7553 = vmatpush3.msra.mxu0 %v3154_v15  ;;  %7577 = vmatpush3.msra.mxu1 %v9313_v42 }
 0x881   : > { %7555 = vmatmul.mubr.msk.f32.vlgmr.msra.gmra.mxu0 %vm881_vm3, %v9114_v23  ;;  %7578 = vmatprep.subr.mxu1 %v3163_v45 }
 0x882   : > { %7594 = vmatprep.subr.mxu0 %v9207_v7  ;;  %7557 = vmatprep.mubr.msk.f32.mxu0 %vm881_vm3, %v9122_v47 }
 0x883   : > { %7579 = vmatpush3.msra.mxu1 %v3163_v45  ;;  %7595 = vmatpush3.msra.mxu0 %v9207_v7 }
 0x884   : > { %7580 = vmatprep.subr.mxu1 %v3162_v37  ;;  %7596 = vmatprep.subr.mxu0 %v9220_v25 }
 0x885   : > { %7581 = vmatpush3.msra.mxu1 %v3162_v37  ;;  %7597 = vmatpush3.msra.mxu0 %v9220_v25 }
 0x886   : > { %7583 = vmatmul.mubr.msk.f32.vlgmr.msra.gmra.mxu1 %vm881_vm3, %v9118_v14  ;;  %7558 = vmatmul.mubr.msk.f32.gmra.mxu0 %vm881_vm3, %v9120_v17 }
 0x887   : > { %7598 = vmatprep.subr.mxu0 %v9181_v13  ;;  %7622 = vmatprep.subr.mxu1 %v9224_v21 }
 0x888   : > { %7560 = vmatprep.mubr.msk.f32.mxu0 %vm881_vm3, %v9130_v60  ;;  %7585 = vmatprep.mubr.msk.f32.mxu1 %vm881_vm3, %v9132_v31 }
 0x889   : > { %7599 = vmatpush3.msra.mxu0 %v9181_v13  ;;  %7623 = vmatpush3.msra.mxu1 %v9224_v21 }
 0x88a   : > { %7600 = vmatprep.subr.mxu0 %v9195_v58  ;;  %7624 = vmatprep.subr.mxu1 %v9234_v19 }
 0x88b   : > { %7601 = vmatpush3.msra.mxu0 %v9195_v58  ;;  %7625 = vmatpush3.msra.mxu1 %v9234_v19 }
 0x88c   : > { %7561 = vmatmul.mubr.msk.f32.gmra.mxu0 %vm881_vm3, %v9126_v29  ;;  %7586 = vmatmul.mubr.msk.f32.gmra.mxu1 %vm881_vm3, %v9128_v30 }
 0x88d   : > { %7602 = vmatprep.subr.mxu0 %v9163_v56  ;;  %7626 = vmatprep.subr.mxu1 %v9200_v59 }
 0x88e   : > { %7563 = vmatprep.mubr.msk.f32.mxu0 %vm881_vm3, %v9139_v61  ;;  %7588 = vmatprep.mubr.msk.f32.mxu1 %vm881_vm3, %v9142_v35 }
 0x88f   : > { %7603 = vmatpush3.msra.mxu0 %v9163_v56  ;;  %7627 = vmatpush3.msra.mxu1 %v9200_v59 }
 0x890   : > { %7604 = vmatprep.subr.mxu0 %v9171_v24  ;;  %7628 = vmatprep.subr.mxu1 %v9212_v0 }
 0x891   : > { %7605 = vmatpush3.msra.mxu0 %v9171_v24  ;;  %7629 = vmatpush3.msra.mxu1 %v9212_v0 }
 0x892   : > { %7564 = vmatmul.mubr.msk.f32.gmra.mxu0 %vm881_vm3, %v9134_v32  ;;  %7589 = vmatmul.mubr.msk.f32.gmra.mxu1 %vm881_vm3, %v9136_v34 }
 0x893   : > { %7606 = vmatprep.subr.mxu0 %v9147_v36  ;;  %7630 = vmatprep.subr.mxu1 %v9183_v63 }
 0x894   : > { %7591 = vmatprep.mubr.msk.f32.mxu1 %vm881_vm3, %v9157_v54  ;;  %7607 = vmatpush3.msra.mxu0 %v9147_v36 }
 0x895   : > { %7610 = vmatprep.mubr.msk.f32.mxu0 %vm881_vm3, %v3154_v15  ;;  %7631 = vmatpush3.msra.mxu1 %v9183_v63 }
 0x896   : > { %7608 = vmatprep.subr.mxu0 %v9154_v53  ;;  %7632 = vmatprep.subr.mxu1 %v9189_v62 }
 0x897   : > { %7609 = vmatpush3.msra.mxu0 %v9154_v53  ;;  %7633 = vmatpush3.msra.mxu1 %v9189_v62 }
 0x898   : > { %7611 = vmatmul.mubr.msk.f32.vlgmr.msra.gmra.mxu0 %vm881_vm3, %v9299_v22  ;;  %7592 = vmatmul.mubr.msk.f32.gmra.mxu1 %vm881_vm3, %v9150_v39 }
 0x899   : > { %7634 = vmatprep.subr.mxu1 %v9166_v57  ;;  %7613 = vmatprep.mubr.msk.f32.mxu0 %vm881_vm3, %v9290_v11 }
 0x89a   : > { %7635 = vmatpush3.msra.mxu1 %v9166_v57  ;;  %7638 = vmatprep.mubr.msk.f32.mxu1 %vm881_vm3, %v3162_v37 }
 0x89b   : > { %7636 = vmatprep.subr.mxu1 %v9174_v44 }
 0x89c   : > { %7637 = vmatpush3.msra.mxu1 %v9174_v44  ;;  %7614 = vmatmul.mubr.msk.f32.gmra.mxu0 %vm881_vm3, %v9280_v26 }
 0x89d   : > { %7639 = vmatmul.mubr.msk.f32.vlgmr.msra.gmra.mxu1 %vm881_vm3, %v3163_v45  ;;  %7616 = vmatprep.mubr.msk.f32.mxu0 %vm881_vm3, %v9271_v52 }
 0x89e   : > { %7641 = vmatprep.mubr.msk.f32.mxu1 %vm881_vm3, %v9313_v42 }
 0x8a0   : > { %7617 = vmatmul.mubr.msk.f32.gmra.mxu0 %vm881_vm3, %v9262_v38 }
 0x8a1   : > { %7642 = vmatmul.mubr.msk.f32.gmra.mxu1 %vm881_vm3, %v9305_v6  ;;  %7619 = vmatprep.mubr.msk.f32.mxu0 %vm881_vm3, %v9256_v9 }
 0x8a2   : > { %7644 = vmatprep.mubr.msk.f32.mxu1 %vm881_vm3, %v9295_v8 }
 0x8a4   : > { %7620 = vmatmul.mubr.msk.f32.gmra.mxu0 %vm881_vm3, %v9252_v49 }
 0x8a5   : > { %7645 = vmatmul.mubr.msk.f32.gmra.mxu1 %vm881_vm3, %v9285_v20 }
 0x8a6   : > { %7647 = vmatprep.mubr.msk.f32.mxu1 %vm881_vm3, %v9275_v16 }
 0x8a9   : > { %7648 = vmatmul.mubr.msk.f32.gmra.mxu1 %vm881_vm3, %v9266_v18 }
 0x941   : > { %v9409_v23 = vpop.f32.mrf.mxu0 }
 0x943   : > { %v9411_v14 = vpop.f32.mrf.mxu0 }
 0x946   : > { %v9413_v17 = vpop.f32.mrf.mxu1  ;;  %v9415_v47 = vpop.f32.mrf.mxu0 }
 0x948   : > { %v9417_v29 = vpop.f32.mrf.mxu0  ;;  %v9419_v30 = vpop.f32.mrf.mxu1 }
 0x94c   : > { %v9421_v60 = vpop.f32.mrf.mxu0  ;;  %v9423_v31 = vpop.f32.mrf.mxu1 }
 0x94e   : > { %v9425_v32 = vpop.f32.mrf.mxu0  ;;  %v9427_v34 = vpop.f32.mrf.mxu1 }
 0x952   : > { %v9429_v61 = vpop.f32.mrf.mxu0  ;;  %v9431_v35 = vpop.f32.mrf.mxu1 }
 0x953   : > { %7650 = vmatprep.subr.mxu0 %v9429_v61 }
 0x954   : > { %v9434_v36 = vpop.f32.mrf.mxu0  ;;  %7651 = vmatpush3.msra.mxu0 %v9429_v61  ;;  %v9437_v39 = vpop.f32.mrf.mxu1 }
 0x955   : > { %7652 = vmatprep.subr.mxu0 %v9434_v36 }
 0x956   : > { %7653 = vmatpush3.msra.mxu0 %v9434_v36 }
 0x957   : > { %7654 = vmatprep.subr.mxu0 %v9421_v60 }
 0x958   : > { %v7612_v53 = vpop.f32.mrf.mxu0  ;;  %7655 = vmatpush3.msra.mxu0 %v9421_v60  ;;  %v9443_v54 = vpop.f32.mrf.mxu1 }
 0x959   : > { %7656 = vmatprep.subr.mxu0 %v9425_v32  ;;  %7678 = vmatprep.subr.mxu1 %v9443_v54 }
 0x95a   : > { %v3518_v56 = vpop.f32.mrf.mxu0  ;;  %7657 = vmatpush3.msra.mxu0 %v9425_v32  ;;  %v9448_v57 = vpop.f32.mrf.mxu1  ;;  %7679 = vmatpush3.msra.mxu1 %v9443_v54 }
 0x95b   : > { %7666 = vmatprep.mubr.msk.f32.mxu0 %vm881_vm3, %v3518_v56  ;;  %7680 = vmatprep.subr.mxu1 %v9448_v57 }
 0x95c   : > { %v7615_v24 = vpop.f32.mrf.mxu0  ;;  %7658 = vmatprep.subr.mxu0 %v9415_v47  ;;  %7681 = vmatpush3.msra.mxu1 %v9448_v57 }
 0x95d   : > { %v7640_v44 = vpop.f32.mrf.mxu1  ;;  %7659 = vmatpush3.msra.mxu0 %v9415_v47  ;;  %7682 = vmatprep.subr.mxu1 %v9431_v35 }
 0x95e   : > { %v3528_v13 = vpop.f32.mrf.mxu0  ;;  %7660 = vmatprep.subr.mxu0 %v9417_v29  ;;  %7683 = vmatpush3.msra.mxu1 %v9431_v35 }
 0x95f   : > { %v3647_v63 = vpop.f32.mrf.mxu1  ;;  %7661 = vmatpush3.msra.mxu0 %v9417_v29  ;;  %7684 = vmatprep.subr.mxu1 %v9437_v39 }
 0x960   : > { %7694 = vmatprep.mubr.msk.f32.mxu1 %vm881_vm3, %v3647_v63  ;;  %v7618_v62 = vpop.f32.mrf.mxu0  ;;  %7685 = vmatpush3.msra.mxu1 %v9437_v39 }
 0x961   : > { %v7643_v58 = vpop.f32.mrf.mxu1  ;;  %7662 = vmatprep.subr.mxu0 %v9409_v23  ;;  %7686 = vmatprep.subr.mxu1 %v9423_v31 }
 0x962   : > { %7663 = vmatpush3.msra.mxu0 %v9409_v23  ;;  %7687 = vmatpush3.msra.mxu1 %v9423_v31  ;;  %v3538_v7 = vpop.f32.mrf.mxu0 }
 0x963   : > { %v3657_v59 = vpop.f32.mrf.mxu1  ;;  %7664 = vmatprep.subr.mxu0 %v9411_v14  ;;  %7688 = vmatprep.subr.mxu1 %v9427_v34 }
 0x964   : > { %7665 = vmatpush3.msra.mxu0 %v9411_v14  ;;  %7689 = vmatpush3.msra.mxu1 %v9427_v34  ;;  %v7621_v25 = vpop.f32.mrf.mxu0 }
 0x965   : > { %7667 = vmatmul.mubr.msk.f32.vlgmr.msra.gmra.mxu0 %vm881_vm3, %v7612_v53  ;;  %v7646_v0 = vpop.f32.mrf.mxu1  ;;  %7690 = vmatprep.subr.mxu1 %v9413_v17 }
 0x966   : > { %7669 = vmatprep.mubr.msk.f32.mxu0 %vm881_vm3, %v3528_v13  ;;  %7691 = vmatpush3.msra.mxu1 %v9413_v17  ;;  %v3548_v19 = vpop.f32.mrf.mxu0 }
 0x967   : > { %7692 = vmatprep.subr.mxu1 %v9419_v30  ;;  %v3667_v21 = vpop.f32.mrf.mxu1 }
 0x968   : > { %7693 = vmatpush3.msra.mxu1 %v9419_v30 }
 0x969   : > { %7670 = vmatmul.mubr.msk.f32.gmra.mxu0 %vm881_vm3, %v7615_v24  ;;  %7695 = vmatmul.mubr.msk.f32.vlgmr.msra.gmra.mxu1 %vm881_vm3, %v7640_v44  ;;  %v7649_v55 = vpop.f32.mrf.mxu1 }
 0x96a   : > { %7672 = vmatprep.mubr.msk.f32.mxu0 %vm881_vm3, %v3538_v7  ;;  %7697 = vmatprep.mubr.msk.f32.mxu1 %vm881_vm3, %v3657_v59 }
 0x96b   : > { %v3677_v49 = vpop.f32.mrf.mxu1 }
 0x96d   : > { %7673 = vmatmul.mubr.msk.f32.gmra.mxu0 %vm881_vm3, %v7618_v62  ;;  %7698 = vmatmul.mubr.msk.f32.gmra.mxu1 %vm881_vm3, %v7643_v58 }
 0x96e   : > { %7675 = vmatprep.mubr.msk.f32.mxu0 %vm881_vm3, %v3548_v19  ;;  %7700 = vmatprep.mubr.msk.f32.mxu1 %vm881_vm3, %v3667_v21 }
 0x971   : > { %7676 = vmatmul.mubr.msk.f32.gmra.mxu0 %vm881_vm3, %v7621_v25  ;;  %7701 = vmatmul.mubr.msk.f32.gmra.mxu1 %vm881_vm3, %v7646_v0 }
 0x972   : > { %7722 = vmatprep.mubr.msk.f32.mxu0 %vm881_vm3, %v9411_v14  ;;  %7703 = vmatprep.mubr.msk.f32.mxu1 %vm881_vm3, %v3677_v49 }
 0x975   : > { %7704 = vmatmul.mubr.msk.f32.gmra.mxu1 %vm881_vm3, %v7649_v55 }
 0x976   : > { %7750 = vmatprep.mubr.msk.f32.mxu1 %vm881_vm3, %v9419_v30 }
 0xa25   : > { %v7668_v9 = vpop.f32.mrf.mxu0 }
 0xa27   : > { %v3776_v38 = vpop.f32.mrf.mxu0 }
 0xa29   : > { %v7671_v18 = vpop.f32.mrf.mxu0  ;;  %v7696_v52 = vpop.f32.mrf.mxu1 }
 0xa2a   : > { %v3947_v30 = vsub.f32 %v8416_v2, %v7671_v18 }
 0xa2b   : > { %v3786_v16 = vpop.f32.mrf.mxu0  ;;  %v3905_v40 = vpop.f32.mrf.mxu1 }
 0xa2c   : > { %v3946_v56 = vsub.f32 %v8429_v1, %v3786_v16 }
 0xa2d   : > { %v7674_v26 = vpop.f32.mrf.mxu0  ;;  %v7699_v43 = vpop.f32.mrf.mxu1 }
 0xa2e   : > { %v3949_v15 = vsub.f32 %v8389_v28, %v7674_v26  ;;  %v3955_v24 = vsub.f32 %v8416_v2, %v7699_v43  ;;  %v3952_v2 = vsub.f32 %v8474_v51, %v3905_v40 }
 0xa2f   : > { %v3796_v20 = vpop.f32.mrf.mxu0  ;;  %v3915_v46 = vpop.f32.mrf.mxu1 }
 0xa30   : > { %v3948_v45 = vsub.f32 %v8404_v5, %v3796_v20  ;;  %v3954_v44 = vsub.f32 %v8429_v1, %v3915_v46  ;;  %v7838_v1 = vpop.eup %7837 }
 0xa31   : > { %v7677_v11 = vpop.f32.mrf.mxu0  ;;  %v7702_v8 = vpop.f32.mrf.mxu1 }
 0xa32   : > { %v3951_v3 = vsub.f32 %v8386_v50, %v7677_v11  ;;  %v3957_v53 = vsub.f32 %v8389_v28, %v7702_v8  ;;  %v3944_v28 = vsub.f32 %v8474_v51, %v3776_v38  ;;  %v4235_v51 = vmul.f32 %v7838_v1, %v8377_v4 }
 0xa33   : > { %v3806_v22 = vpop.f32.mrf.mxu0  ;;  %v3925_v6 = vpop.f32.mrf.mxu1 }
 0xa34   : > { %v3950_v33 = vsub.f32 %v8384_v48, %v3806_v22  ;;  %7706 = vmatprep.subr.mxu0 %v3951_v3 }
 0xa35   : > { %7707 = vmatpush3.msra.mxu0 %v3951_v3  ;;  %v7705_v27 = vpop.f32.mrf.mxu1 }
 0xa36   : > { %7708 = vmatprep.subr.mxu0 %v3950_v33  ;;  %v3959_v42 = vsub.f32 %v8386_v50, %v7705_v27  ;;  %v3956_v50 = vsub.f32 %v8404_v5, %v3925_v6  ;;  %v3953_v5 = vsub.f32 %v8459_v12, %v7696_v52 }
 0xa37   : > { %7709 = vmatpush3.msra.mxu0 %v3950_v33  ;;  %v3935_v37 = vpop.f32.mrf.mxu1 }
 0xa38   : > { %7710 = vmatprep.subr.mxu0 %v3949_v15  ;;  %v3958_v14 = vsub.f32 %v8384_v48, %v3935_v37  ;;  %7734 = vmatprep.subr.mxu1 %v3959_v42  ;;  %v3945_v48 = vsub.f32 %v8459_v12, %v7668_v9  ;;  %v7840_v12 = vpop.eup %7839 }
 0xa39   : > { %7711 = vmatpush3.msra.mxu0 %v3949_v15  ;;  %7735 = vmatpush3.msra.mxu1 %v3959_v42 }
 0xa3a   : > { %7712 = vmatprep.subr.mxu0 %v3948_v45  ;;  %7736 = vmatprep.subr.mxu1 %v3958_v14 }
 0xa3b   : > { %7713 = vmatpush3.msra.mxu0 %v3948_v45  ;;  %7737 = vmatpush3.msra.mxu1 %v3958_v14 }
 0xa3c   : > { %7714 = vmatprep.subr.mxu0 %v3947_v30  ;;  %7738 = vmatprep.subr.mxu1 %v3957_v53 }
 0xa3d   : > { %7715 = vmatpush3.msra.mxu0 %v3947_v30  ;;  %7739 = vmatpush3.msra.mxu1 %v3957_v53 }
 0xa3e   : > { %7716 = vmatprep.subr.mxu0 %v3946_v56  ;;  %7740 = vmatprep.subr.mxu1 %v3956_v50 }
 0xa3f   : > { %7717 = vmatpush3.msra.mxu0 %v3946_v56  ;;  %7741 = vmatpush3.msra.mxu1 %v3956_v50 }
 0xa40   : > { %7718 = vmatprep.subr.mxu0 %v3945_v48  ;;  %7742 = vmatprep.subr.mxu1 %v3955_v24 }
 0xa41   : > { %7719 = vmatpush3.msra.mxu0 %v3945_v48  ;;  %7743 = vmatpush3.msra.mxu1 %v3955_v24 }
 0xa42   : > { %7720 = vmatprep.subr.mxu0 %v3944_v28  ;;  %7744 = vmatprep.subr.mxu1 %v3954_v44 }
 0xa43   : > { %7721 = vmatpush3.msra.mxu0 %v3944_v28  ;;  %7745 = vmatpush3.msra.mxu1 %v3954_v44 }
 0xa44   : > { %7723 = vmatmul.mubr.msk.f32.vlgmr.msra.gmra.mxu0 %vm881_vm3, %v9409_v23  ;;  %7746 = vmatprep.subr.mxu1 %v3953_v5  ;;  %v4242_v23 = vmul.f32 %v7840_v12, %v8380_v41 }
 0xa45   : > { %7725 = vmatprep.mubr.msk.f32.mxu0 %vm881_vm3, %v9417_v29  ;;  %7747 = vmatpush3.msra.mxu1 %v3953_v5 }
 0xa46   : > { %7748 = vmatprep.subr.mxu1 %v3952_v2 }
 0xa47   : > { %7749 = vmatpush3.msra.mxu1 %v3952_v2 }
 0xa48   : > { %7726 = vmatmul.mubr.msk.f32.gmra.mxu0 %vm881_vm3, %v9415_v47  ;;  %7751 = vmatmul.mubr.msk.f32.vlgmr.msra.gmra.mxu1 %vm881_vm3, %v9413_v17  ;;  %v4237_v47 = vsel %vm4236_vm11, %v8377_v4, %v4235_v51 }
 0xa49   : > { %7728 = vmatprep.mubr.msk.f32.mxu0 %vm881_vm3, %v9425_v32  ;;  %7753 = vmatprep.mubr.msk.f32.mxu1 %vm881_vm3, %v9427_v34 }
 0xa4c   : > { %7729 = vmatmul.mubr.msk.f32.gmra.mxu0 %vm881_vm3, %v9421_v60  ;;  %7754 = vmatmul.mubr.msk.f32.gmra.mxu1 %vm881_vm3, %v9423_v31  ;;  %v4239_v60 = vand.u32 2147483648, %v8377_v4 }
 0xa4d   : > { %7731 = vmatprep.mubr.msk.f32.mxu0 %vm881_vm3, %v9434_v36  ;;  %7756 = vmatprep.mubr.msk.f32.mxu1 %vm881_vm3, %v9437_v39  ;;  %v4246_v39 = vand.u32 2147483648, %v8380_v41 }
 0xa4e   : > { %v9546_v32 = vsel %vm4238_vm12, %v4239_v60, %v4237_v47 }
 0xa50   : > { %7732 = vmatmul.mubr.msk.f32.gmra.mxu0 %vm881_vm3, %v9429_v61  ;;  %7757 = vmatmul.mubr.msk.f32.gmra.mxu1 %vm881_vm3, %v9431_v35  ;;  %v4244_v61 = vsel %vm4243_vm13, %v8380_v41, %v4242_v23 }
 0xa51   : > { %7759 = vmatprep.mubr.msk.f32.mxu1 %vm881_vm3, %v9448_v57  ;;  %v9557_v63 = vsel %vm4245_vm14, %v4246_v39, %v4244_v61 }
 0xa54   : > { %7760 = vmatmul.mubr.msk.f32.gmra.mxu1 %vm881_vm3, %v9443_v54 }
 0xb04   : > { %v7724_v17 = vpop.f32.mrf.mxu0 }
 0xb05   : > { %v4219_v29 = vmul.f32 0.5, %v7724_v17 }
 0xb06   : > { %v4050_v31 = vpop.f32.mrf.mxu0 }
 0xb07   : > { %v4218_v34 = vmul.f32 0.5, %v4050_v31  ;;  %v9550_v35 = vmul.f32 %v9546_v32, %v4219_v29 }
 0xb08   : > { %v7727_v36 = vpop.f32.mrf.mxu0  ;;  %v7752_v13 = vpop.f32.mrf.mxu1 }
 0xb09   : > { %v9554_v54 = vmul.f32 %v9546_v32, %v4218_v34  ;;  %v4221_v57 = vmul.f32 0.5, %v7727_v36  ;;  %v4227_v4 = vmul.f32 0.5, %v7752_v13  ;;  %v4340_v19 = vrot.slane %v9550_v35, 1 }
 0xb0a   : > { %v4060_v62 = vpop.f32.mrf.mxu0  ;;  %v4179_v7 = vpop.f32.mrf.mxu1 }
 0xb0b   : > { %v9560_v58 = vmul.f32 %v9546_v32, %v4221_v57  ;;  %v4220_v59 = vmul.f32 0.5, %v4060_v62  ;;  %v4257_v0 = vmul.f32 %v9557_v63, %v4227_v4  ;;  %v4226_v25 = vmul.f32 0.5, %v4179_v7 }
 0xb0c   : > { %v7730_v21 = vpop.f32.mrf.mxu0  ;;  %v7755_v49 = vpop.f32.mrf.mxu1  ;;  %v4270_v9 = vrot.slane %v9554_v54, 1 }
 0xb0d   : > { %v9565_v41 = vmul.f32 %v9546_v32, %v4220_v59  ;;  %v4223_v55 = vmul.f32 0.5, %v7730_v21  ;;  %v4474_v38 = vrot.slane %v9560_v58, 1  ;;  %v4256_v18 = vmul.f32 %v9557_v63, %v4226_v25 }
 0xb0e   : > { %v4229_v52 = vmul.f32 0.5, %v7755_v49  ;;  %v4070_v16 = vpop.f32.mrf.mxu0  ;;  %v4385_v40 = vsel %vm4315_vm15, %v4257_v0, %v4340_v19  ;;  %v4367_v26 = vsel %vm4296_vm1, %v4257_v0, %v4340_v19  ;;  %v4189_v46 = vpop.f32.mrf.mxu1  ;;  %v9576_v11 = vsel %vm4277_vm0, %v4257_v0, %v4340_v19 }
 0xb0f   : > { %v9573_v43 = vmul.f32 %v9546_v32, %v4223_v55  ;;  %v4222_v20 = vmul.f32 0.5, %v4070_v16  ;;  %v4407_v3 = vrot.slane %v9565_v41, 1  ;;  %v4228_v22 = vmul.f32 0.5, %v4189_v46 }
 0xb10   : > { %v9580_v8 = vmul.f32 %v9557_v63, %v4229_v52  ;;  %v7733_v33 = vpop.f32.mrf.mxu0  ;;  %v4318_v6 = vsel %vm4315_vm15, %v4256_v18, %v4270_v9  ;;  %v4280_v15 = vsel %vm4277_vm0, %v4256_v18, %v4270_v9  ;;  %v7758_v45 = vpop.f32.mrf.mxu1  ;;  %v4299_v37 = vsel %vm4296_vm1, %v4256_v18, %v4270_v9 }
 0xb11   : > { %v9585_v27 = vmul.f32 %v9546_v32, %v4222_v20  ;;  %v4225_v42 = vmul.f32 0.5, %v7733_v33  ;;  %4319 = vrot.lane.b32.xlu1 %v4318_v6, %s7950_s13  ;;  %4281 = vrot.lane.b32.xlu0 %v4280_v15, %s7950_s13  ;;  %v4271_v14 = vsel %vm4267_vm2, %v4256_v18, %v4270_v9  ;;  %v4258_v30 = vmul.f32 %v9557_v63, %v4228_v22 }
 0xb12   : > { %v4231_v53 = vmul.f32 0.5, %v7758_v45  ;;  %v4080_v56 = vpop.f32.mrf.mxu0  ;;  %v9593_v50 = vsel %vm4267_vm2, %v4257_v0, %v4340_v19  ;;  %v9597_v48 = vsel %vm4315_vm15, %v9580_v8, %v4474_v38  ;;  %v4199_v44 = vpop.f32.mrf.mxu1  ;;  %v9604_v5 = vsel %vm4296_vm1, %v9580_v8, %v4474_v38 }
 0xb13   : > { %v9600_v24 = vmul.f32 %v9546_v32, %v4225_v42  ;;  %v4224_v28 = vmul.f32 0.5, %v4080_v56  ;;  %v9608_v2 = vsel %vm4277_vm0, %v9580_v8, %v4474_v38  ;;  %v4230_v12 = vmul.f32 0.5, %v4199_v44  ;;  %v4805_v56 = vld [vmem:[#allocation3 + $0x8] sm:$0xff] }
 0xb14   : > { %v9611_v1 = vmul.f32 %v9557_v63, %v4231_v53  ;;  %v4452_v51 = vsel %vm4315_vm15, %v4258_v30, %v4407_v3  ;;  %v4434_v23 = vsel %vm4296_vm1, %v4258_v30, %v4407_v3  ;;  %v7761_v47 = vpop.f32.mrf.mxu1  ;;  %v9621_v29 = vsel %vm4277_vm0, %v4258_v30, %v4407_v3  ;;  %5128 = vmatprep.mubr.f32.mxu0 %v4805_v56 }
 0xb15   : > { %v9616_v17 = vmul.f32 %v9546_v32, %v4224_v28  ;;  %4300 = vrot.lane.b32.xlu1 %v4299_v37, %s7950_s13  ;;  %4386 = vrot.lane.b32.xlu0 %v4385_v40, %s7950_s13  ;;  %v9624_v60 = vsel %vm4267_vm2, %v4258_v30, %v4407_v3  ;;  %v4541_v31 = vrot.slane %v9585_v27, 1  ;;  %v4260_v34 = vmul.f32 %v9557_v63, %v4230_v12  ;;  %v4807_v28 = vld [vmem:[#allocation3 + $0x18] sm:$0xff] }
 0xb16   : > { %v4233_v61 = vmul.f32 0.5, %v7761_v47  ;;  %v9630_v32 = vsel %vm4267_vm2, %v9580_v8, %v4474_v38  ;;  %v4608_v36 = vrot.slane %v9573_v43, 1  ;;  %v4209_v39 = vpop.f32.mrf.mxu1  ;;  %v4742_v13 = vrot.slane %v9600_v24, 1  ;;  %5203 = vmatprep.mubr.f32.mxu1 %v4807_v28 }
 0xb17   : > { %v4675_v57 = vrot.slane %v9616_v17, 1  ;;  %v4266_v4 = vrot.slane %v4256_v18, 7  ;;  %v4337_v62 = vrot.slane %v4257_v0, 7  ;;  %v4232_v7 = vmul.f32 0.5, %v4209_v39 }
 0xb18   : > { %v4263_v59 = vmul.f32 %v9557_v63, %v4233_v61  ;;  %v9637_v25 = vsel %vm4315_vm15, %v4260_v34, %v4541_v31  ;;  %v9640_v21 = vsel %vm4296_vm1, %v4260_v34, %v4541_v31  ;;  %v9646_v19 = vsel %vm4315_vm15, %v9611_v1, %v4608_v36 }
 0xb19   : > { %4368 = vrot.lane.b32.xlu0 %v4367_v26, %s7950_s13  ;;  %4272 = vrot.lane.b32.xlu1 %v4271_v14, %s7950_s13  ;;  %v9649_v55 = vsel %vm4277_vm0, %v4260_v34, %v4541_v31  ;;  %v9653_v0 = vsel %vm4296_vm1, %v9611_v1, %v4608_v36  ;;  %v4404_v49 = vrot.slane %v4258_v30, 7  ;;  %v4262_v9 = vmul.f32 %v9557_v63, %v4232_v7 }
 0xb1a   : > { %v9657_v38 = vsel %vm4267_vm2, %v4260_v34, %v4541_v31  ;;  %v9661_v18 = vsel %vm4277_vm0, %v9611_v1, %v4608_v36  ;;  %v9665_v52 = vsel %vm4267_vm2, %v9611_v1, %v4608_v36  ;;  %v9668_v16 = vsel %vm4315_vm15, %v4263_v59, %v4742_v13 }
 0xb1b   : > { %v9671_v40 = vsel %vm4296_vm1, %v4263_v59, %v4742_v13  ;;  %v9674_v26 = vsel %vm4277_vm0, %v4263_v59, %v4742_v13  ;;  %v9677_v63 = vsel %vm4267_vm2, %v4263_v59, %v4742_v13  ;;  %v4720_v20 = vsel %vm4315_vm15, %v4262_v9, %v4675_v57 }
 0xb1c   : > { %v4702_v46 = vsel %vm4296_vm1, %v4262_v9, %v4675_v57  ;;  %v9682_v3 = vsel %vm4277_vm0, %v4262_v9, %v4675_v57  ;;  %v9685_v22 = vsel %vm4267_vm2, %v4262_v9, %v4675_v57  ;;  %v9692_v33 = vsel %vm4315_vm15, %v4266_v4, %v9554_v54 }
 0xb1d   : > { %4350 = vrot.lane.b32.xlu1 %v9576_v11, %s7950_s13  ;;  %4453 = vrot.lane.b32.xlu0 %v4452_v51, %s7950_s13  ;;  %v9696_v6 = vsel %vm4277_vm0, %v4266_v4, %v9554_v54  ;;  %v9700_v15 = vsel %vm4296_vm1, %v4266_v4, %v9554_v54  ;;  %v4471_v42 = vrot.slane %v9580_v8, 7  ;;  %v9705_v45 = vsel %vm4315_vm15, %v4337_v62, %v9550_v35 }
 0xb1e   : > { %v9709_v11 = vsel %vm4296_vm1, %v4337_v62, %v9550_v35  ;;  %v9713_v37 = vsel %vm4267_vm2, %v4266_v4, %v9554_v54  ;;  %v9717_v14 = vsel %vm4277_vm0, %v4337_v62, %v9550_v35  ;;  %v9721_v30 = vsel %vm4315_vm15, %v4404_v49, %v9565_v41 }
 0xb1f   : > { %v9725_v8 = vsel %vm4267_vm2, %v4337_v62, %v9550_v35  ;;  %v9729_v53 = vsel %vm4296_vm1, %v4404_v49, %v9565_v41  ;;  %v9733_v54 = vsel %vm4315_vm15, %v4471_v42, %v9560_v58  ;;  %v9737_v44 = vsel %vm4277_vm0, %v4404_v49, %v9565_v41 }
 0xb20   : > { %v9741_v12 = vsel %vm4296_vm1, %v4471_v42, %v9560_v58  ;;  %v9745_v35 = vsel %vm4267_vm2, %v4404_v49, %v9565_v41  ;;  %v4538_v51 = vrot.slane %v4260_v34, 7  ;;  %v9752_v47 = vsel %vm4277_vm0, %v4471_v42, %v9560_v58 }
 0xb21   : > { %4342 = vrot.lane.b32.xlu1 %v9593_v50, %s7950_s13  ;;  %4435 = vrot.lane.b32.xlu0 %v4434_v23, %s7950_s13  ;;  %v9756_v31 = vsel %vm4267_vm2, %v4471_v42, %v9560_v58  ;;  %v4605_v61 = vrot.slane %v9611_v1, 7  ;;  %v4672_v41 = vrot.slane %v4262_v9, 7  ;;  %v4739_v4 = vrot.slane %v4263_v59, 7 }
 0xb22   : > { %v9761_v36 = vsel %vm4315_vm15, %v4538_v51, %v9585_v27  ;;  %v9765_v50 = vsel %vm4296_vm1, %v4538_v51, %v9585_v27  ;;  %v9769_v23 = vsel %vm4277_vm0, %v4538_v51, %v9585_v27  ;;  %v9773_v34 = vsel %vm4267_vm2, %v4538_v51, %v9585_v27 }
 0xb23   : > { %v9777_v58 = vsel %vm4315_vm15, %v4605_v61, %v9573_v43  ;;  %v9781_v1 = vsel %vm4296_vm1, %v4605_v61, %v9573_v43  ;;  %v9785_v39 = vsel %vm4277_vm0, %v4605_v61, %v9573_v43  ;;  %v9789_v57 = vsel %vm4315_vm15, %v4672_v41, %v9616_v17 }
 0xb24   : > { %v9793_v27 = vsel %vm4267_vm2, %v4605_v61, %v9573_v43  ;;  %v9797_v13 = vsel %vm4296_vm1, %v4672_v41, %v9616_v17  ;;  %v9801_v62 = vsel %vm4277_vm0, %v4672_v41, %v9616_v17  ;;  %v9809_v7 = vsel %vm4267_vm2, %v4672_v41, %v9616_v17 }
 0xb25   : > { %4520 = vrot.lane.b32.xlu0 %v9597_v48, %s7950_s13  ;;  %4417 = vrot.lane.b32.xlu1 %v9621_v29, %s7950_s13  ;;  %v9813_v43 = vsel %vm4315_vm15, %v4739_v4, %v9600_v24  ;;  %v9817_v59 = vsel %vm4296_vm1, %v4739_v4, %v9600_v24  ;;  %v9821_v49 = vsel %vm4277_vm0, %v4739_v4, %v9600_v24 }
 0xb26   : > { %v9825_v48 = vsel %vm4267_vm2, %v4739_v4, %v9600_v24  ;;  %v4876_v24 = vld [vmem:[%s10028_s5] sm:$0xff] }
 0xb29   : > { %4502 = vrot.lane.b32.xlu0 %v9604_v5, %s7950_s13  ;;  %4409 = vrot.lane.b32.xlu1 %v9624_v60, %s7950_s13  ;;  %v4877_v5 = vld [vmem:[%s10028_s5 + $0x8] sm:$0xff] }
 0xb2d   : > { %4484 = vrot.lane.b32.xlu1 %v9608_v2, %s7950_s13  ;;  %4587 = vrot.lane.b32.xlu0 %v9637_v25, %s7950_s13  ;;  %v7951_v2 = vmov 1983009808  }
 0xb2e   : > { %v4287_v17 = vunpack.c.l.s4 %v7951_v2 }
 0xb30   : > { %v4288_v29 = vunpack.c.0.s8 %v4287_v17 }
 0xb31   : > { %4476 = vrot.lane.b32.xlu1 %v9630_v32, %s7950_s13  ;;  %4569 = vrot.lane.b32.xlu0 %v9640_v21, %s7950_s13 }
 0xb32   : > { %v9872_v60 = vsub.s32 %v4288_v29, %v8259_v10 }
 0xb35   : > { %4654 = vrot.lane.b32.xlu0 %v9646_v19, %s7950_s13  ;;  %4551 = vrot.lane.b32.xlu1 %v9649_v55, %s7950_s13 }
 0xb39   : > { %4636 = vrot.lane.b32.xlu0 %v9653_v0, %s7950_s13  ;;  %4543 = vrot.lane.b32.xlu1 %v9657_v38, %s7950_s13 }
 0xb3d   : > { %4618 = vrot.lane.b32.xlu1 %v9661_v18, %s7950_s13  ;;  %4721 = vrot.lane.b32.xlu0 %v4720_v20, %s7950_s13 }
 0xb41   : > { %4610 = vrot.lane.b32.xlu1 %v9665_v52, %s7950_s13  ;;  %4703 = vrot.lane.b32.xlu0 %v4702_v46, %s7950_s13 }
 0xb45   : > { %4788 = vrot.lane.b32.xlu0 %v9668_v16, %s7950_s13  ;;  %4685 = vrot.lane.b32.xlu1 %v9682_v3, %s7950_s13 }
 0xb49   : > { %4770 = vrot.lane.b32.xlu0 %v9671_v40, %s7950_s13  ;;  %4677 = vrot.lane.b32.xlu1 %v9685_v22, %s7950_s13 }
 0xb4d   : > { %4880 = vperm.xlu0 %7821, %v4876_v24   ;;  %4752 = vrot.lane.b32.xlu1 %v9674_v26, %s7950_s13 }
 0xb51   : > { %4744 = vrot.lane.b32.xlu1 %v9677_v63, %s7950_s13  ;;  %s7879_s13 = scalar_lea.vmem %s9975_s28, 512 }
 0xb52   : > { %p7880_p6 = scmp.ne.s32.totalorder %s9975_s28, %s7879_s13  ;;  %p7887_p12 = scmp.lt.s32.totalorder %s7885_s15, %s7879_s13 }
 0xb54   : > { %p7881_p9 = pnand %p7880_p6, %p8029_p5  ;;  %p7888_p13 = por %p7887_p12, %p7886_p11 }
 0xb55   : > { %4885 = vperm.xlu1 %7822, %v4877_v5  }
 0xb56   : > { %p7882_p10 = pneg %p7881_p9 }
 0xb58   : > { %p7889_p0 = pnand %p7888_p13, %p7882_p10 }
 0xb83   : > { %v4320_v32 = vpop.permute.xlu1 %4319  ;;  %v4282_v25 = vpop.permute.xlu0 %4281 }
 0xb84   : > { %v4322_v21 = vsel %vm881_vm3, %v9692_v33, %v4320_v32  ;;  %v4284_v19 = vsel %vm881_vm3, %v9696_v6, %v4282_v25 }
 0xb85   : > { %v4324_v55 = vcombine.high %v4322_v21, %v4322_v21  ;;  %v4292_v0 = vrot.slane %v4284_v19, %v9872_v60 }
 0xb87   : > { %v4331_v9 = vrot.slane %v4324_v55, %v9872_v60  ;;  %v4293_v38 = vcombine.high %v4292_v0, %v4292_v0  ;;  %v4301_v18 = vpop.permute.xlu1 %4300  ;;  %v4387_v52 = vpop.permute.xlu0 %4386 }
 0xb88   : > { %v4303_v10 = vsel %vm881_vm3, %v9700_v15, %v4301_v18  ;;  %v4389_v16 = vsel %vm881_vm3, %v9705_v45, %v4387_v52 }
 0xb89   : > { %v4332_v40 = vcombine.high %v4331_v9, %v4331_v9  ;;  %4295 = vst [vmem:[#allocation2 + $0x2] sm:$0x3] %v4293_v38  ;;  %v4305_v26 = vcombine.high %v4303_v10, %v4303_v10  ;;  %v4391_v63 = vcombine.high %v4389_v16, %v4389_v16  ;;  %v4804_v38 = vld [vmem:[#allocation3] sm:$0xff] }
 0xb8b   : > { %4334 = vst [vmem:[#allocation2 + $0x6] sm:$0x3] %v4332_v40  ;;  %6609 = vst.sshfl [vmem:[#allocation2 + $0x4] sm:$0x3 pattern:$0x76325410] %v4305_v26  ;;  %v4398_v20 = vrot.slane %v4391_v63, %v9872_v60  ;;  %v4369_v46 = vpop.permute.xlu0 %4368  ;;  %v4273_v3 = vpop.permute.xlu1 %4272 }
 0xb8c   : > { %v4371_v22 = vsel %vm881_vm3, %v9709_v11, %v4369_v46  ;;  %v4275_v33 = vsel %vm881_vm3, %v9713_v37, %v4273_v3  ;;  %v4837_v40 = vld [vmem:[#allocation3 + $0x108] sm:$0xff]  ;;  %v4806_v26 = vld [vmem:[#allocation3 + $0x10] sm:$0xff] }
 0xb8d   : > { %v4399_v6 = vcombine.high %v4398_v20, %v4398_v20  ;;  %v4373_v15 = vcombine.high %v4371_v22, %v4371_v22  ;;  %4276 = vst [vmem:[#allocation2] sm:$0x3] %v4275_v33  ;;  %v4839_v22 = vld [vmem:[#allocation3 + $0x118] sm:$0xff] }
 0xb8f   : > { %4401 = vst [vmem:[#allocation2 + $0xe] sm:$0x3] %v4399_v6  ;;  %6610 = vst.sshfl [vmem:[#allocation2 + $0xc] sm:$0x3 pattern:$0x76325410] %v4373_v15  ;;  %v4351_v42 = vpop.permute.xlu1 %4350  ;;  %v4454_v45 = vpop.permute.xlu0 %4453 }
 0xb90   : > { %v4353_v56 = vsel %vm881_vm3, %v9717_v14, %v4351_v42  ;;  %v4456_v28 = vsel %vm881_vm3, %v9721_v30, %v4454_v45  ;;  %v4836_v6 = vld [vmem:[#allocation3 + $0x100] sm:$0xff]  ;;  %v4809_v45 = vld [vmem:[#allocation3 + $0x28] sm:$0xff] }
 0xb91   : > { %v4361_v51 = vrot.slane %v4353_v56, %v9872_v60  ;;  %v4458_v61 = vcombine.high %v4456_v28, %v4456_v28 }
 0xb93   : > { %v4362_v11 = vcombine.high %v4361_v51, %v4361_v51  ;;  %v4465_v41 = vrot.slane %v4458_v61, %v9872_v60  ;;  %v4343_v37 = vpop.permute.xlu1 %4342  ;;  %v4436_v4 = vpop.permute.xlu0 %4435  ;;  %v4838_v51 = vld [vmem:[#allocation3 + $0x110] sm:$0xff] }
 0xb94   : > { %v4345_v24 = vsel %vm881_vm3, %v9725_v8, %v4343_v37  ;;  %v4438_v5 = vsel %vm881_vm3, %v9729_v53, %v4436_v4  ;;  %v4868_v2 = vld [vmem:[#allocation2] sm:$0xff]  ;;  %v4811_v37 = vld [vmem:[#allocation3 + $0x38] sm:$0xff] }
 0xb95   : > { %4364 = vst [vmem:[#allocation2 + $0xa] sm:$0x3] %v4362_v11  ;;  %v4466_v14 = vcombine.high %v4465_v41, %v4465_v41  ;;  %4346 = vst [vmem:[#allocation2 + $0x8] sm:$0x3] %v4345_v24  ;;  %v4440_v17 = vcombine.high %v4438_v5, %v4438_v5  ;;  %v4903_v30 = vrot.slane %v4868_v2, %v9872_v60  ;;  %v4808_v4 = vld [vmem:[#allocation3 + $0x20] sm:$0xff] }
 0xb96   : > { %v4896_v29 = vcombine.high %v4868_v2, %v4868_v2 }
 0xb97   : > { %4468 = vst [vmem:[#allocation2 + $0x16] sm:$0x3] %v4466_v14  ;;  %6611 = vst.sshfl [vmem:[#allocation2 + $0x14] sm:$0x3 pattern:$0x76325410] %v4440_v17  ;;  %v4521_v32 = vpop.permute.xlu0 %4520  ;;  %v4418_v25 = vpop.permute.xlu1 %4417  ;;  %v4911_v21 = vcombine.high %v4903_v30, %v4903_v30 }
 0xb98   : > { %v4910_v19 = vrot.slane %v4896_v29, %v9872_v60  ;;  %v4523_v8 = vsel %vm881_vm3, %v9733_v54, %v4521_v32  ;;  %v4420_v53 = vsel %vm881_vm3, %v9737_v44, %v4418_v25 }
 0xb99   : > { %v4525_v55 = vcombine.high %v4523_v8, %v4523_v8  ;;  %v4428_v0 = vrot.slane %v4420_v53, %v9872_v60  ;;  %5094 = vmatprep.subr.mxu0 %v4911_v21  ;;  %v4840_v53 = vld [vmem:[#allocation3 + $0x120] sm:$0xff] }
 0xb9a   : > { %v4912_v9 = vcombine.high %v4910_v19, %v4910_v19  ;;  %5095 = vmatpush1.xpose.msra.mxu0 %v4903_v30  ;;  %v4810_v30 = vld [vmem:[#allocation3 + $0x30] sm:$0xff] }
 0xb9b   : > { %v4532_v18 = vrot.slane %v4525_v55, %v9872_v60  ;;  %v4429_v52 = vcombine.high %v4428_v0, %v4428_v0  ;;  %v4503_v10 = vpop.permute.xlu0 %4502  ;;  %v4410_v16 = vpop.permute.xlu1 %4409 }
 0xb9c   : > { %5169 = vmatprep.subr.mxu1 %v4912_v9  ;;  %v4505_v54 = vsel %vm881_vm3, %v9741_v12, %v4503_v10  ;;  %v4412_v44 = vsel %vm881_vm3, %v9745_v35, %v4410_v16  ;;  %v4869_v63 = vld [vmem:[#allocation2 + $0x8] sm:$0xff] }
 0xb9d   : > { %5170 = vmatpush1.xpose.msra.mxu1 %v4910_v19  ;;  %v4533_v20 = vcombine.high %v4532_v18, %v4532_v18  ;;  %4431 = vst [vmem:[#allocation2 + $0x12] sm:$0x3] %v4429_v52  ;;  %v4507_v46 = vcombine.high %v4505_v54, %v4505_v54  ;;  %4413 = vst [vmem:[#allocation2 + $0x10] sm:$0x3] %v4412_v44  ;;  %5129 = vmatmul.mubr.f32.vlgmr.msra.gmra.mxu0 %v4804_v38  ;;  %v4843_v19 = vld [vmem:[#allocation3 + $0x138] sm:$0xff]  ;;  %v4813_v9 = vld [vmem:[#allocation3 + $0x48] sm:$0xff] }
 0xb9e   : > { %v4920_v3 = vrot.slane %v4869_v63, %v9872_v60  ;;  %v4913_v33 = vcombine.high %v4869_v63, %v4869_v63  ;;  %5133 = vmatprep.mubr.f32.mxu0 %v4837_v40  ;;  %v4842_v52 = vld [vmem:[#allocation3 + $0x130] sm:$0xff]  ;;  %v4815_v54 = vld [vmem:[#allocation3 + $0x58] sm:$0xff]  ;;  %v4812_v44 = vld [vmem:[#allocation3 + $0x40] sm:$0xff] }
 0xb9f   : > { %4535 = vst [vmem:[#allocation2 + $0x1e] sm:$0x3] %v4533_v20  ;;  %6612 = vst.sshfl [vmem:[#allocation2 + $0x1c] sm:$0x3 pattern:$0x76325410] %v4507_v46  ;;  %v4485_v12 = vpop.permute.xlu1 %4484  ;;  %v4588_v15 = vpop.permute.xlu0 %4587 }
 0xba0   : > { %5204 = vmatmul.mubr.f32.vlgmr.msra.gmra.mxu1 %v4806_v26  ;;  %v4928_v35 = vcombine.high %v4920_v3, %v4920_v3  ;;  %v4927_v42 = vrot.slane %v4913_v33, %v9872_v60  ;;  %v4487_v56 = vsel %vm881_vm3, %v9752_v47, %v4485_v12  ;;  %v4590_v28 = vsel %vm881_vm3, %v9761_v36, %v4588_v15  ;;  %v4841_v36 = vld [vmem:[#allocation3 + $0x128] sm:$0xff] }
 0xba1   : > { %5208 = vmatprep.mubr.f32.mxu1 %v4839_v22  ;;  %v4495_v61 = vrot.slane %v4487_v56, %v9872_v60  ;;  %v4592_v11 = vcombine.high %v4590_v28, %v4590_v28  ;;  %5134 = vmatmul.mubr.f32.gmra.mxu0 %v4836_v6  ;;  %v4814_v22 = vld [vmem:[#allocation3 + $0x50] sm:$0xff] }
 0xba2   : > { %5244 = vmatprep.subr.mxu0 %v4928_v35  ;;  %v4929_v41 = vcombine.high %v4927_v42, %v4927_v42  ;;  %5278 = vmatprep.mubr.f32.mxu0 %v4809_v45  ;;  %v4847_v35 = vld [vmem:[#allocation3 + $0x158] sm:$0xff]  ;;  %v4844_v45 = vld [vmem:[#allocation3 + $0x140] sm:$0xff] }
 0xba3   : > { %5245 = vmatpush1.xpose.msra.mxu0 %v4920_v3  ;;  %v4496_v24 = vcombine.high %v4495_v61, %v4495_v61  ;;  %v4599_v5 = vrot.slane %v4592_v11, %v9872_v60  ;;  %v4477_v47 = vpop.permute.xlu1 %4476  ;;  %v4570_v2 = vpop.permute.xlu0 %4569 }
 0xba4   : > { %5209 = vmatmul.mubr.f32.gmra.mxu1 %v4838_v51  ;;  %5319 = vmatprep.subr.mxu1 %v4929_v41  ;;  %v4479_v14 = vsel %vm881_vm3, %v9756_v31, %v4477_v47  ;;  %v4572_v17 = vsel %vm881_vm3, %v9765_v50, %v4570_v2  ;;  %v4870_v29 = vld [vmem:[#allocation2 + $0x10] sm:$0xff]  ;;  %v4817_v51 = vld [vmem:[#allocation3 + $0x68] sm:$0xff]  ;;  %v4816_v47 = vld [vmem:[#allocation3 + $0x60] sm:$0xff] }
 0xba5   : > { %5320 = vmatpush1.xpose.msra.mxu1 %v4927_v42  ;;  %5353 = vmatprep.mubr.f32.mxu1 %v4811_v37  ;;  %4498 = vst [vmem:[#allocation2 + $0x1a] sm:$0x3] %v4496_v24  ;;  %v4600_v32 = vcombine.high %v4599_v5, %v4599_v5  ;;  %4480 = vst [vmem:[#allocation2 + $0x18] sm:$0x3] %v4479_v14  ;;  %v4574_v25 = vcombine.high %v4572_v17, %v4572_v17  ;;  %v4846_v41 = vld [vmem:[#allocation3 + $0x150] sm:$0xff]  ;;  %v4819_v5 = vld [vmem:[#allocation3 + $0x78] sm:$0xff] }
 0xba6   : > { %5279 = vmatmul.mubr.f32.vlgmr.msra.gmra.mxu0 %v4808_v4  ;;  %v4937_v21 = vrot.slane %v4870_v29, %v9872_v60  ;;  %v4930_v8 = vcombine.high %v4870_v29, %v4870_v29  ;;  %v4818_v29 = vld [vmem:[#allocation3 + $0x70] sm:$0xff] }
 0xba7   : > { %5283 = vmatprep.mubr.f32.mxu0 %v4841_v36  ;;  %4602 = vst [vmem:[#allocation2 + $0x26] sm:$0x3] %v4600_v32  ;;  %6613 = vst.sshfl [vmem:[#allocation2 + $0x24] sm:$0x3 pattern:$0x76325410] %v4574_v25  ;;  %v4655_v31 = vpop.permute.xlu0 %4654  ;;  %v4552_v50 = vpop.permute.xlu1 %4551 }
 0xba8   : > { %5354 = vmatmul.mubr.f32.vlgmr.msra.gmra.mxu1 %v4810_v30  ;;  %v4945_v55 = vcombine.high %v4937_v21, %v4937_v21  ;;  %v4944_v0 = vrot.slane %v4930_v8, %v9872_v60  ;;  %v4657_v38 = vsel %vm881_vm3, %v9777_v58, %v4655_v31  ;;  %v4554_v18 = vsel %vm881_vm3, %v9769_v23, %v4552_v50  ;;  %v4845_v23 = vld [vmem:[#allocation3 + $0x148] sm:$0xff]  ;;  %v4851_v8 = vld [vmem:[#allocation3 + $0x178] sm:$0xff]  ;;  %v4848_v31 = vld [vmem:[#allocation3 + $0x160] sm:$0xff] }
 0xba9   : > { %5358 = vmatprep.mubr.f32.mxu1 %v4843_v19  ;;  %v4659_v10 = vcombine.high %v4657_v38, %v4657_v38  ;;  %v4562_v16 = vrot.slane %v4554_v18, %v9872_v60  ;;  %v4850_v18 = vld [vmem:[#allocation3 + $0x170] sm:$0xff] }
 0xbaa   : > { %5284 = vmatmul.mubr.f32.gmra.mxu0 %v4840_v53  ;;  %5394 = vmatprep.subr.mxu0 %v4945_v55  ;;  %v4946_v40 = vcombine.high %v4944_v0, %v4944_v0 }
 0xbab   : > { %5395 = vmatpush1.xpose.msra.mxu0 %v4937_v21  ;;  %5428 = vmatprep.mubr.f32.mxu0 %v4813_v9  ;;  %v4666_v26 = vrot.slane %v4659_v10, %v9872_v60  ;;  %v4563_v63 = vcombine.high %v4562_v16, %v4562_v16  ;;  %v4637_v58 = vpop.permute.xlu0 %4636  ;;  %v4544_v20 = vpop.permute.xlu1 %4543 }
 0xbac   : > { %5359 = vmatmul.mubr.f32.gmra.mxu1 %v4842_v52  ;;  %5469 = vmatprep.subr.mxu1 %v4946_v40  ;;  %v4639_v46 = vsel %vm881_vm3, %v9781_v1, %v4637_v58  ;;  %v4546_v3 = vsel %vm881_vm3, %v9773_v34, %v4544_v20  ;;  %v4871_v33 = vld [vmem:[#allocation2 + $0x18] sm:$0xff] }
 0xbad   : > { %5470 = vmatpush1.xpose.msra.mxu1 %v4944_v0  ;;  %5503 = vmatprep.mubr.f32.mxu1 %v4815_v54  ;;  %v4667_v6 = vcombine.high %v4666_v26, %v4666_v26  ;;  %4565 = vst [vmem:[#allocation2 + $0x22] sm:$0x3] %v4563_v63  ;;  %v4641_v12 = vcombine.high %v4639_v46, %v4639_v46  ;;  %4547 = vst [vmem:[#allocation2 + $0x20] sm:$0x3] %v4546_v3  ;;  %v4821_v0 = vld [vmem:[#allocation3 + $0x88] sm:$0xff]  ;;  %v4823_v40 = vld [vmem:[#allocation3 + $0x98] sm:$0xff] }
 0xbae   : > { %5429 = vmatmul.mubr.f32.vlgmr.msra.gmra.mxu0 %v4812_v44  ;;  %v4954_v15 = vrot.slane %v4871_v33, %v9872_v60  ;;  %v4947_v42 = vcombine.high %v4871_v33, %v4871_v33  ;;  %v4820_v54 = vld [vmem:[#allocation3 + $0x80] sm:$0xff] }
 0xbaf   : > { %5433 = vmatprep.mubr.f32.mxu0 %v4845_v23  ;;  %4669 = vst [vmem:[#allocation2 + $0x2e] sm:$0x3] %v4667_v6  ;;  %6614 = vst.sshfl [vmem:[#allocation2 + $0x2c] sm:$0x3 pattern:$0x76325410] %v4641_v12  ;;  %v4619_v1 = vpop.permute.xlu1 %4618  ;;  %v4722_v34 = vpop.permute.xlu0 %4721 }
 0xbb0   : > { %5504 = vmatmul.mubr.f32.vlgmr.msra.gmra.mxu1 %v4814_v22  ;;  %v4962_v56 = vcombine.high %v4954_v15, %v4954_v15  ;;  %v4961_v28 = vrot.slane %v4947_v42, %v9872_v60  ;;  %v4621_v61 = vsel %vm881_vm3, %v9785_v39, %v4619_v1  ;;  %v4724_v11 = vsel %vm881_vm3, %v9789_v57, %v4722_v34  ;;  %v4849_v57 = vld [vmem:[#allocation3 + $0x168] sm:$0xff]  ;;  %v4822_v23 = vld [vmem:[#allocation3 + $0x90] sm:$0xff]  ;;  %v4855_v6 = vld [vmem:[#allocation3 + $0x198] sm:$0xff] }
 0xbb1   : > { %5508 = vmatprep.mubr.f32.mxu1 %v4847_v35  ;;  %v4629_v37 = vrot.slane %v4621_v61, %v9872_v60  ;;  %v4726_v4 = vcombine.high %v4724_v11, %v4724_v11  ;;  %v4825_v42 = vld [vmem:[#allocation3 + $0xa8] sm:$0xff]  ;;  %v4854_v1 = vld [vmem:[#allocation3 + $0x190] sm:$0xff] }
 0xbb2   : > { %5434 = vmatmul.mubr.f32.gmra.mxu0 %v4844_v45  ;;  %5544 = vmatprep.subr.mxu0 %v4962_v56  ;;  %v4963_v24 = vcombine.high %v4961_v28, %v4961_v28 }
 0xbb3   : > { %5545 = vmatpush1.xpose.msra.mxu0 %v4954_v15  ;;  %5578 = vmatprep.mubr.f32.mxu0 %v4817_v51  ;;  %v4630_v2 = vcombine.high %v4629_v37, %v4629_v37  ;;  %v4733_v36 = vrot.slane %v4726_v4, %v9872_v60  ;;  %v4611_v39 = vpop.permute.xlu1 %4610  ;;  %v4704_v14 = vpop.permute.xlu0 %4703  ;;  %v4852_v15 = vld [vmem:[#allocation3 + $0x180] sm:$0xff] }
 0xbb4   : > { %5509 = vmatmul.mubr.f32.gmra.mxu1 %v4846_v41  ;;  %5619 = vmatprep.subr.mxu1 %v4963_v24  ;;  %v4613_v17 = vsel %vm881_vm3, %v9793_v27, %v4611_v39  ;;  %v4706_v30 = vsel %vm881_vm3, %v9797_v13, %v4704_v14  ;;  %v4872_v32 = vld [vmem:[#allocation2 + $0x20] sm:$0xff]  ;;  %v4857_v41 = vld [vmem:[#allocation3 + $0x1a8] sm:$0xff] }
 0xbb5   : > { %5620 = vmatpush1.xpose.msra.mxu1 %v4961_v28  ;;  %5653 = vmatprep.mubr.f32.mxu1 %v4819_v5  ;;  %4632 = vst [vmem:[#allocation2 + $0x2a] sm:$0x3] %v4630_v2  ;;  %v4734_v25 = vcombine.high %v4733_v36, %v4733_v36  ;;  %4614 = vst [vmem:[#allocation2 + $0x28] sm:$0x3] %v4613_v17  ;;  %v4708_v21 = vcombine.high %v4706_v30, %v4706_v30  ;;  %v4827_v28 = vld [vmem:[#allocation3 + $0xb8] sm:$0xff]  ;;  %v4824_v51 = vld [vmem:[#allocation3 + $0xa0] sm:$0xff] }
 0xbb6   : > { %5579 = vmatmul.mubr.f32.vlgmr.msra.gmra.mxu0 %v4816_v47  ;;  %v4971_v19 = vrot.slane %v4872_v32, %v9872_v60  ;;  %v4964_v53 = vcombine.high %v4872_v32, %v4872_v32  ;;  %v4859_v5 = vld [vmem:[#allocation3 + $0x1b8] sm:$0xff]  ;;  %v4856_v2 = vld [vmem:[#allocation3 + $0x1a0] sm:$0xff]  ;;  %v4829_v14 = vld [vmem:[#allocation3 + $0xc8] sm:$0xff] }
 0xbb7   : > { %5583 = vmatprep.mubr.f32.mxu0 %v4849_v57  ;;  %4736 = vst [vmem:[#allocation2 + $0x36] sm:$0x3] %v4734_v25  ;;  %6615 = vst.sshfl [vmem:[#allocation2 + $0x34] sm:$0x3 pattern:$0x76325410] %v4708_v21  ;;  %v4789_v27 = vpop.permute.xlu0 %4788  ;;  %v4686_v13 = vpop.permute.xlu1 %4685 }
 0xbb8   : > { %5654 = vmatmul.mubr.f32.vlgmr.msra.gmra.mxu1 %v4818_v29  ;;  %v4979_v50 = vcombine.high %v4971_v19, %v4971_v19  ;;  %v4978_v55 = vrot.slane %v4964_v53, %v9872_v60  ;;  %v4791_v9 = vsel %vm881_vm3, %v9813_v43, %v4789_v27  ;;  %v4688_v38 = vsel %vm881_vm3, %v9801_v62, %v4686_v13  ;;  %v4853_v62 = vld [vmem:[#allocation3 + $0x188] sm:$0xff]  ;;  %v4831_v17 = vld [vmem:[#allocation3 + $0xd8] sm:$0xff]  ;;  %v4828_v30 = vld [vmem:[#allocation3 + $0xc0] sm:$0xff] }
 0xbb9   : > { %5658 = vmatprep.mubr.f32.mxu1 %v4851_v8  ;;  %v4793_v52 = vcombine.high %v4791_v9, %v4791_v9  ;;  %v4696_v10 = vrot.slane %v4688_v38, %v9872_v60  ;;  %v4861_v29 = vld [vmem:[#allocation3 + $0x1c8] sm:$0xff]  ;;  %v4830_v32 = vld [vmem:[#allocation3 + $0xd0] sm:$0xff]  ;;  %v4860_v53 = vld [vmem:[#allocation3 + $0x1c0] sm:$0xff] }
 0xbba   : > { %5584 = vmatmul.mubr.f32.gmra.mxu0 %v4848_v31  ;;  %5694 = vmatprep.subr.mxu0 %v4979_v50  ;;  %v4980_v16 = vcombine.high %v4978_v55, %v4978_v55  ;;  %v4833_v13 = vld [vmem:[#allocation3 + $0xe8] sm:$0xff]  ;;  %v4862_v50 = vld [vmem:[#allocation3 + $0x1d0] sm:$0xff]  ;;  %v4832_v9 = vld [vmem:[#allocation3 + $0xe0] sm:$0xff] }
 0xbbb   : > { %5695 = vmatpush1.xpose.msra.mxu0 %v4971_v19  ;;  %5728 = vmatprep.mubr.f32.mxu0 %v4821_v0  ;;  %v4800_v44 = vrot.slane %v4793_v52, %v9872_v60  ;;  %v4697_v26 = vcombine.high %v4696_v10, %v4696_v10  ;;  %v4771_v43 = vpop.permute.xlu0 %4770  ;;  %v4678_v63 = vpop.permute.xlu1 %4677  ;;  %v4863_v19 = vld [vmem:[#allocation3 + $0x1d8] sm:$0xff]  ;;  %v4865_v38 = vld [vmem:[#allocation3 + $0x1e8] sm:$0xff]  ;;  %v4866_v10 = vld [vmem:[#allocation3 + $0x1f0] sm:$0xff] }
 0xbbc   : > { %5659 = vmatmul.mubr.f32.gmra.mxu1 %v4850_v18  ;;  %5769 = vmatprep.subr.mxu1 %v4980_v16  ;;  %v4773_v58 = vsel %vm881_vm3, %v9817_v59, %v4771_v43  ;;  %v4680_v20 = vsel %vm881_vm3, %v9809_v7, %v4678_v63  ;;  %v4873_v46 = vld [vmem:[#allocation2 + $0x28] sm:$0xff]  ;;  %v4835_v0 = vld [vmem:[#allocation3 + $0xf8] sm:$0xff]  ;;  %v4834_v18 = vld [vmem:[#allocation3 + $0xf0] sm:$0xff] }
 0xbbd   : > { %5770 = vmatpush1.xpose.msra.mxu1 %v4978_v55  ;;  %5803 = vmatprep.mubr.f32.mxu1 %v4823_v40  ;;  %v4801_v3 = vcombine.high %v4800_v44, %v4800_v44  ;;  %4699 = vst [vmem:[#allocation2 + $0x32] sm:$0x3] %v4697_v26  ;;  %v4775_v22 = vcombine.high %v4773_v58, %v4773_v58  ;;  %4681 = vst [vmem:[#allocation2 + $0x30] sm:$0x3] %v4680_v20  ;;  %v4867_v52 = vld [vmem:[#allocation3 + $0x1f8] sm:$0xff] }
 0xbbe   : > { %5729 = vmatmul.mubr.f32.vlgmr.msra.gmra.mxu0 %v4820_v54  ;;  %v4988_v33 = vrot.slane %v4873_v46, %v9872_v60  ;;  %v4981_v12 = vcombine.high %v4873_v46, %v4873_v46 }
 0xbbf   : > { %5733 = vmatprep.mubr.f32.mxu0 %v4853_v62  ;;  %4803 = vst [vmem:[#allocation2 + $0x3e] sm:$0x3] %v4801_v3  ;;  %6616 = vst.sshfl [vmem:[#allocation2 + $0x3c] sm:$0x3 pattern:$0x76325410] %v4775_v22  ;;  %v4753_v59 = vpop.permute.xlu1 %4752 }
 0xbc0   : > { %5804 = vmatmul.mubr.f32.vlgmr.msra.gmra.mxu1 %v4822_v23  ;;  %v4996_v7 = vcombine.high %v4988_v33, %v4988_v33  ;;  %v4995_v35 = vrot.slane %v4981_v12, %v9872_v60  ;;  %v4755_v45 = vsel %vm881_vm3, %v9821_v49, %v4753_v59  ;;  %v4826_v49 = vld [vmem:[#allocation3 + $0xb0] sm:$0xff] }
 0xbc1   : > { %5808 = vmatprep.mubr.f32.mxu1 %v4855_v6  ;;  %v4763_v34 = vrot.slane %v4755_v45, %v9872_v60 }
 0xbc2   : > { %5734 = vmatmul.mubr.f32.gmra.mxu0 %v4852_v15  ;;  %5844 = vmatprep.subr.mxu0 %v4996_v7  ;;  %v4997_v56 = vcombine.high %v4995_v35, %v4995_v35 }
 0xbc3   : > { %5845 = vmatpush1.xpose.msra.mxu0 %v4988_v33  ;;  %5878 = vmatprep.mubr.f32.mxu0 %v4825_v42  ;;  %v4764_v61 = vcombine.high %v4763_v34, %v4763_v34  ;;  %v4745_v11 = vpop.permute.xlu1 %4744 }
 0xbc4   : > { %5809 = vmatmul.mubr.f32.gmra.mxu1 %v4854_v1  ;;  %5919 = vmatprep.subr.mxu1 %v4997_v56  ;;  %v4747_v37 = vsel %vm881_vm3, %v9825_v48, %v4745_v11  ;;  %v4874_v4 = vld [vmem:[#allocation2 + $0x30] sm:$0xff] }
 0xbc5   : > { %5920 = vmatpush1.xpose.msra.mxu1 %v4995_v35  ;;  %5953 = vmatprep.mubr.f32.mxu1 %v4827_v28  ;;  %4766 = vst [vmem:[#allocation2 + $0x3a] sm:$0x3] %v4764_v61  ;;  %4748 = vst [vmem:[#allocation2 + $0x38] sm:$0x3] %v4747_v37  ;;  %v5005_v24 = vrot.slane %v4874_v4, %v9872_v60  ;;  %v4998_v47 = vcombine.high %v4874_v4, %v4874_v4  ;;  %v4858_v48 = vld [vmem:[#allocation3 + $0x1b0] sm:$0xff] }
 0xbc6   : > { %5879 = vmatmul.mubr.f32.vlgmr.msra.gmra.mxu0 %v4824_v51 }
 0xbc7   : > { %5883 = vmatprep.mubr.f32.mxu0 %v4857_v41  ;;  %v5013_v36 = vcombine.high %v5005_v24, %v5005_v24  ;;  %v5012_v39 = vrot.slane %v4998_v47, %v9872_v60 }
 0xbc8   : > { %5954 = vmatmul.mubr.f32.vlgmr.msra.gmra.mxu1 %v4826_v49  ;;  %v4881_v22 = vpop.permute.xlu0 %4880 }
 0xbc9   : > { %5958 = vmatprep.mubr.f32.mxu1 %v4859_v5  ;;  %5994 = vmatprep.subr.mxu0 %v5013_v36  ;;  %v5014_v57 = vcombine.high %v5012_v39, %v5012_v39 }
 0xbca   : > { %5884 = vmatmul.mubr.f32.gmra.mxu0 %v4856_v2 }
 0xbcb   : > { %5995 = vmatpush1.xpose.msra.mxu0 %v5005_v24  ;;  %6028 = vmatprep.mubr.f32.mxu0 %v4829_v14 }
 0xbcc   : > { %5959 = vmatmul.mubr.f32.gmra.mxu1 %v4858_v48  ;;  %6069 = vmatprep.subr.mxu1 %v5014_v57  ;;  %v4875_v25 = vld [vmem:[#allocation2 + $0x38] sm:$0xff] }
 0xbcd   : > { %6070 = vmatpush1.xpose.msra.mxu1 %v5012_v39  ;;  %6103 = vmatprep.mubr.f32.mxu1 %v4831_v17  ;;  %v5022_v21 = vrot.slane %v4875_v25, %v9872_v60  ;;  %v5015_v8 = vcombine.high %v4875_v25, %v4875_v25 }
 0xbce   : > { %6029 = vmatmul.mubr.f32.vlgmr.msra.gmra.mxu0 %v4828_v30 }
 0xbcf   : > { %6033 = vmatprep.mubr.f32.mxu0 %v4861_v29  ;;  %v5030_v31 = vcombine.high %v5022_v21, %v5022_v21  ;;  %v5029_v27 = vrot.slane %v5015_v8, %v9872_v60  ;;  %v4864_v60 = vld [vmem:[#allocation3 + $0x1e0] sm:$0xff] }
 0xbd0   : > { %6104 = vmatmul.mubr.f32.vlgmr.msra.gmra.mxu1 %v4830_v32  ;;  %v4886_v7 = vpop.permute.xlu1 %4885 }
 0xbd1   : > { %6108 = vmatprep.mubr.f32.mxu1 %v4863_v19  ;;  %6144 = vmatprep.subr.mxu0 %v5030_v31  ;;  %v5031_v55 = vcombine.high %v5029_v27, %v5029_v27 }
 0xbd2   : > { %6034 = vmatmul.mubr.f32.gmra.mxu0 %v4860_v53 }
 0xbd3   : > { %6145 = vmatpush1.xpose.msra.mxu0 %v5022_v21  ;;  %6178 = vmatprep.mubr.f32.mxu0 %v4833_v13 }
 0xbd4   : > { %6109 = vmatmul.mubr.f32.gmra.mxu1 %v4862_v50  ;;  %6219 = vmatprep.subr.mxu1 %v5031_v55 }
 0xbd5   : > { %6220 = vmatpush1.xpose.msra.mxu1 %v5029_v27  ;;  %6253 = vmatprep.mubr.f32.mxu1 %v4835_v0 }
 0xbd6   : > { %6179 = vmatmul.mubr.f32.vlgmr.msra.gmra.mxu0 %v4832_v9 }
 0xbd7   : > { %6183 = vmatprep.mubr.f32.mxu0 %v4865_v38 }
 0xbd8   : > { %6254 = vmatmul.mubr.f32.vlgmr.msra.gmra.mxu1 %v4834_v18 }
 0xbd9   : > { %6258 = vmatprep.mubr.f32.mxu1 %v4867_v52 }
 0xbda   : > { %6184 = vmatmul.mubr.f32.gmra.mxu0 %v4864_v60 }
 0xbdc   : > { %6259 = vmatmul.mubr.f32.gmra.mxu1 %v4866_v10 }
 0xc5d   : > { %v5130_v16 = vpop.f32.mrf.mxu0 }
 0xc5e   : > { %v5131_v12 = vadd.f32 %v5130_v16, %v4881_v22 }
 0xc5f   : > { %v5132_v40 = vpop.f32.mrf.mxu0 }
 0xc60   : > { %v5205_v54 = vpop.f32.mrf.mxu1 }
 0xc61   : > { %v5135_v44 = vpop.f32.mrf.mxu0  ;;  %v5206_v45 = vadd.f32 %v5205_v54, %v5131_v12 }
 0xc62   : > { %v5207_v26 = vpop.f32.mrf.mxu1  ;;  %v5136_v1 = vadd.f32 %v5135_v44, %v4886_v7 }
 0xc63   : > { %v5137_v43 = vpop.f32.mrf.mxu0 }
 0xc64   : > { %v5210_v63 = vpop.f32.mrf.mxu1 }
 0xc65   : > { %v5211_v11 = vadd.f32 %v5210_v63, %v5136_v1 }
 0xc66   : > { %v5212_v62 = vpop.f32.mrf.mxu1  ;;  %v5280_v58 = vpop.f32.mrf.mxu0 }
 0xc67   : > { %v5281_v28 = vadd.f32 %v5280_v58, %v5206_v45 }
 0xc68   : > { %v5282_v20 = vpop.f32.mrf.mxu0  ;;  %v5355_v23 = vpop.f32.mrf.mxu1 }
 0xc69   : > { %v5356_v49 = vadd.f32 %v5355_v23, %v5281_v28 }
 0xc6a   : > { %v5285_v46 = vpop.f32.mrf.mxu0  ;;  %v5357_v3 = vpop.f32.mrf.mxu1 }
 0xc6b   : > { %v5286_v4 = vadd.f32 %v5285_v46, %v5211_v11 }
 0xc6c   : > { %v5287_v33 = vpop.f32.mrf.mxu0  ;;  %v5360_v6 = vpop.f32.mrf.mxu1 }
 0xc6d   : > { %v5361_v39 = vadd.f32 %v5360_v6, %v5286_v4 }
 0xc6e   : > { %v5362_v15 = vpop.f32.mrf.mxu1  ;;  %v5430_v59 = vpop.f32.mrf.mxu0 }
 0xc6f   : > { %v5431_v47 = vadd.f32 %v5430_v59, %v5356_v49 }
 0xc70   : > { %v5432_v35 = vpop.f32.mrf.mxu0  ;;  %v5505_v42 = vpop.f32.mrf.mxu1 }
 0xc71   : > { %v5506_v57 = vadd.f32 %v5505_v42, %v5431_v47 }
 0xc72   : > { %v5435_v34 = vpop.f32.mrf.mxu0  ;;  %v5507_v56 = vpop.f32.mrf.mxu1 }
 0xc73   : > { %v5436_v17 = vadd.f32 %v5435_v34, %v5361_v39 }
 0xc74   : > { %v5437_v51 = vpop.f32.mrf.mxu0  ;;  %v5510_v61 = vpop.f32.mrf.mxu1 }
 0xc75   : > { %v5511_v19 = vadd.f32 %v5510_v61, %v5436_v17 }
 0xc76   : > { %v5512_v41 = vpop.f32.mrf.mxu1  ;;  %v5580_v37 = vpop.f32.mrf.mxu0 }
 0xc77   : > { %v5581_v32 = vadd.f32 %v5580_v37, %v5506_v57 }
 0xc78   : > { %v5582_v24 = vpop.f32.mrf.mxu0  ;;  %v5655_v5 = vpop.f32.mrf.mxu1 }
 0xc79   : > { %v5656_v31 = vadd.f32 %v5655_v5, %v5581_v32  ;;  %v7849_v32 = vld [vmem:[%s8061_s26] sm:$0xff] }
 0xc7a   : > { %v5585_v2 = vpop.f32.mrf.mxu0  ;;  %v5657_v36 = vpop.f32.mrf.mxu1 }
 0xc7b   : > { %v5586_v27 = vadd.f32 %v5585_v2, %v5511_v19  ;;  %v7850_v19 = vld [vmem:[%s8061_s26 + $0x8] sm:$0xff] }
 0xc7c   : > { %v5587_v14 = vpop.f32.mrf.mxu0  ;;  %v5660_v48 = vpop.f32.mrf.mxu1 }
 0xc7d   : > { %v5661_v38 = vadd.f32 %v5660_v48, %v5586_v27 }
 0xc7e   : > { %v5662_v30 = vpop.f32.mrf.mxu1  ;;  %v5730_v29 = vpop.f32.mrf.mxu0 }
 0xc7f   : > { %v5731_v55 = vadd.f32 %v5730_v29, %v5656_v31  ;;  %v7952_v30 = vmov 1   ;;  %v7851_v31 = vld [vmem:[%s8061_s26 + $0x10] sm:$0xff] }
 0xc80   : > { %v5732_v25 = vpop.f32.mrf.mxu0  ;;  %v5805_v21 = vpop.f32.mrf.mxu1 }
 0xc81   : > { %v5806_v60 = vadd.f32 %v5805_v21, %v5731_v55 }
 0xc82   : > { %v5735_v8 = vpop.f32.mrf.mxu0  ;;  %v5807_v53 = vpop.f32.mrf.mxu1 }
 0xc83   : > { %v5736_v10 = vadd.f32 %v5735_v8, %v5661_v38 }
 0xc84   : > { %v5737_v13 = vpop.f32.mrf.mxu0  ;;  %v5810_v50 = vpop.f32.mrf.mxu1 }
 0xc85   : > { %v5811_v43 = vadd.f32 %v5810_v50, %v5736_v10  ;;  %v7852_v50 = vld [vmem:[%s8061_s26 + $0x18] sm:$0xff] }
 0xc86   : > { %v5812_v0 = vpop.f32.mrf.mxu1  ;;  %v5880_v9 = vpop.f32.mrf.mxu0 }
 0xc87   : > { %v5881_v54 = vadd.f32 %v5880_v9, %v5806_v60 }
 0xc88   : > { %v5882_v18 = vpop.f32.mrf.mxu0  ;;  %v5955_v52 = vpop.f32.mrf.mxu1 }
 0xc89   : > { %v5956_v58 = vadd.f32 %v5955_v52, %v5881_v54 }
 0xc8a   : > { %v5885_v16 = vpop.f32.mrf.mxu0  ;;  %v5957_v40 = vpop.f32.mrf.mxu1 }
 0xc8b   : > { %v5886_v20 = vadd.f32 %v5885_v16, %v5811_v43 }
 0xc8c   : > { %v5887_v44 = vpop.f32.mrf.mxu0  ;;  %v5960_v26 = vpop.f32.mrf.mxu1 }
 0xc8d   : > { %v5961_v6 = vadd.f32 %v5960_v26, %v5886_v20 }
 0xc8e   : > { %v5962_v63 = vpop.f32.mrf.mxu1  ;;  %v6030_v62 = vpop.f32.mrf.mxu0 }
 0xc8f   : > { %v6031_v3 = vadd.f32 %v6030_v62, %v5956_v58 }
 0xc90   : > { %v6032_v23 = vpop.f32.mrf.mxu0  ;;  %v6105_v46 = vpop.f32.mrf.mxu1 }
 0xc91   : > { %v6106_v59 = vadd.f32 %v6105_v46, %v6031_v3 }
 0xc92   : > { %v6035_v22 = vpop.f32.mrf.mxu0  ;;  %v6107_v33 = vpop.f32.mrf.mxu1 }
 0xc93   : > { %v6036_v7 = vadd.f32 %v6035_v22, %v5961_v6 }
 0xc94   : > { %v6037_v12 = vpop.f32.mrf.mxu0  ;;  %v6110_v15 = vpop.f32.mrf.mxu1 }
 0xc95   : > { %v6111_v56 = vadd.f32 %v6110_v15, %v6036_v7 }
 0xc96   : > { %v6112_v35 = vpop.f32.mrf.mxu1  ;;  %v6180_v42 = vpop.f32.mrf.mxu0 }
 0xc97   : > { %v6181_v45 = vadd.f32 %v6180_v42, %v6106_v59 }
 0xc98   : > { %v6182_v1 = vpop.f32.mrf.mxu0  ;;  %v6255_v34 = vpop.f32.mrf.mxu1 }
 0xc99   : > { %v6256_v28 = vadd.f32 %v6255_v34, %v6181_v45 }
 0xc9a   : > { %v6185_v51 = vpop.f32.mrf.mxu0  ;;  %v6257_v61 = vpop.f32.mrf.mxu1 }
 0xc9b   : > { %v6264_v11 = vsub.f32 0.0, %v6256_v28  ;;  %v6186_v41 = vadd.f32 %v6185_v51, %v6111_v56 }
 0xc9c   : > { %v6260_v37 = vpop.f32.mrf.mxu1  ;;  %v6187_v49 = vpop.f32.mrf.mxu0 }
 0xc9d   : > { %v6266_v4 = vmul.f32 1.442695, %v6264_v11  ;;  %v6261_v24 = vadd.f32 %v6260_v37, %v6186_v41 }
 0xc9e   : > { %v6262_v5 = vpop.f32.mrf.mxu1 }
 0xc9f   : > { %7841 = vpow2.f32 %v6266_v4  ;;  %v6265_v47 = vsub.f32 0.0, %v6261_v24 }
 0xca1   : > { %v6268_v2 = vmul.f32 1.442695, %v6265_v47 }
 0xca3   : > { %7843 = vpow2.f32 %v6268_v2 }
 0xcac   : > { %v7842_v36 = vpop.eup %7841 }
 0xcad   : > { %v6270_v39 = vadd.f32 1.0, %v7842_v36 }
 0xcaf   : > { %7845 = vrcp.f32 %v6270_v39 }
 0xcb0   : > { %v7844_v14 = vpop.eup %7843 }
 0xcb1   : > { %v6271_v48 = vadd.f32 1.0, %v7844_v14 }
 0xcb3   : > { %7847 = vrcp.f32 %v6271_v48 }
 0xcbc   : > { %v7846_v57 = vpop.eup %7845 }
 0xcbd   : > { %6276 = vperm.xlu0 %7821, %v7846_v57  }
 0xcc0   : > { %v7848_v17 = vpop.eup %7847 }
 0xcc1   : > { %6281 = vperm.xlu1 %7822, %v7848_v17   ;;  %7823 = vset.pattern.permute.xlu0 %v7952_v30 }
 0xcc2   : > { %6289 = vperm.xlu0 %7823, %v7846_v57  }
 0xcc5   : > { %7824 = vset.pattern.permute.xlu1 %v7952_v30 }
 0xcc6   : > { %6293 = vperm.xlu1 %7824, %v7848_v17  }
 0xd38   : > { %v6277_v29 = vpop.permute.xlu0 %6276 }
 0xd39   : > { %v6284_v25 = vmul.f32 %v7849_v32, %v6277_v29 }
 0xd3b   : > { %6286 = vst [vmem:[%s262_s20] sm:$0xff] %v6284_v25 }
 0xd3c   : > { %v6282_v21 = vpop.permute.xlu1 %6281 }
 0xd3d   : > { %v6285_v8 = vmul.f32 %v7850_v19, %v6282_v21  ;;  %v6290_v53 = vpop.permute.xlu0 %6289 }
 0xd3e   : > { %v6296_v27 = vmul.f32 %v7851_v31, %v6290_v53 }
 0xd3f   : > { %6287 = vst [vmem:[%s262_s20 + $0x8] sm:$0xff] %v6285_v8 }
 0xd40   : > { %6617 = vst [vmem:[%s262_s20 + $0x10] sm:$0xff] %v6296_v27 }
 0xd41   : > { %v6294_v13 = vpop.permute.xlu1 %6293 }
 0xd42   : > { %v6297_v55 = vmul.f32 %v7852_v50, %v6294_v13 }
 0xd44   : > { %6618 = vst [vmem:[%s262_s20 + $0x18] sm:$0xff] %v6297_v55 }
 0xd45   : > { %7892 = shalt.err (!%p7889_p0)
}
 0xd46   : > { %s7893_s26 = scalar_lea.hbm %s9981_s11, 512  ;;  %s7897_s18 = scalar_lea.hbm %s10029_s6, 1024 }
 0xd47   : > { %p7894_p1 = scmp.ne.s32.totalorder %s9981_s11, %s7893_s26  ;;  %p7898_p4 = scmp.lt.s32.totalorder %s9981_s11, %s10029_s6 }
 0xd48   : > { %p7899_p7 = scmp.lt.s32.totalorder %s7897_s18, %s7893_s26 }
 0xd49   : > { %p7895_p2 = pnand %p7894_p1, %p8029_p5 }
 0xd4a   : > { %p7900_p8 = por %p7899_p7, %p7898_p4 }
 0xd4b   : > { %p7896_p3 = pneg %p7895_p2 }
 0xd4d   : > { %p7901_p6 = pnand %p7900_p8, %p7896_p3 }
 0xd4f   : > { %7904 = shalt.err (!%p7901_p6)
}
 0xd50   : > { %s7954_s29 = smov 128   ;;  %s7955_s9 = smov 8  }
 0xd51   : > { %7766 = dma.vmem_to_hbm [thread:$0]  (%p8029_p5), %s9975_s28, 512, %s9981_s11, %s9983_s12, %s7954_s29, %s7954_s29, %s7955_s9  }
 0xd52 PF: > { %p7778_p9 = scmp.ge.s32.totalorder %s7943_s24, 2  ;;  %s6331_s10 = sand.u32 1, %s7931_s21  }
 0xd53   : > { %p10033_p10 = scmp.ne.s32.totalorder %s10031_s8, 0  ;;  %s6332_s13 = scalar_lea.sflag [#allocation5], %s6331_s10 }
 0xd55   : > { %p7773_p11 = pnand %p7778_p9, %p10033_p10 }
 0xd57   : > { %p7774_p12 = pneg %p7773_p11 }
 0xd59   : > { %7926 = dma.done.wait (%p7774_p12), %s6332_s13, 512  }
 0xd5a   : > { %7928 = vsyncadd (%p7774_p12), %s6332_s13, 4294966784  ;;  %p17_p13 = scmp.ge.s32.totalorder %s8016_s27, 4   ;;  %s10034_s21 = smov %s7935_s22 }
 0xd5b   : > { %s10035_s22 = smov %s7939_s23  ;;  %s10036_s23 = smov %s8027_s30 }
 0xd5c   : > { %s10037_s24 = smov %s8016_s27  ;;  %19 = sbr.rel (!%p17_p13) target bundleno = 4 (0x4), region = 85 }
 0xd61   :  { %6337 = vsyncpa [#allocation4], 1 }
 0xd62   :  { %6339 = vsyncpa [#allocation4 + $0x1], 1 }
 0xd63   :  { %6340 = vsyncpa [#allocation5], 1 }
 0xd64   :  { %6342 = vsyncpa [#allocation5 + $0x1], 1 }

</bundles_post_ra>
